<compile_context>
chip_gen: v7x
topology: tpu7x:2x2x1
jax: 0.10.0
libtpu: 0.0.40
codegen_flags: <defaults>
</compile_context>

<pallas_src>
import functools
import math

import jax
import jax.numpy as jnp
from jax import lax
from jax.experimental import pallas as pl
from jax.experimental.pallas import tpu as pltpu

_LANES = 128


def _focal_loss_kernel(pred_ref, target_ref, out_ref, *,
                       gamma, alpha, rows_total, tile_rows, chunk_rows):
    core = pl.program_id(0)
    j = pl.program_id(1)
    n_cores = pl.num_programs(0)

    @pl.when(j == 0)
    def _init():
        out_ref[...] = jnp.zeros_like(out_ref)

    # Logical (un-clamped) first row of this block.  The index_map may clamp
    # the DMA back in range for fully out-of-bounds blocks; masking below uses
    # the *logical* position, so re-read / garbage rows contribute exactly 0.
    block_row0 = (j * n_cores + core) * tile_rows
    row_iota = lax.broadcasted_iota(jnp.int32, (chunk_rows, _LANES), 0)
    n_chunks = tile_rows // chunk_rows

    def chunk_body(c, acc):
        r0 = pl.multiple_of(c * chunk_rows, chunk_rows)
        x = pred_ref[pl.ds(r0, chunk_rows), :].astype(jnp.float32)
        t = target_ref[pl.ds(r0, chunk_rows), :].astype(jnp.float32)

        # labels = target.long(); valid_inds = (labels >= 0)
        valid = (jnp.trunc(t) >= 0.0).astype(jnp.float32)

        # p = sigmoid(x) (one shared exp, reciprocal on the EUP), then
        # torch-style BCE on the materialized probability with log clamped at
        # -100 -- matches F.binary_cross_entropy(pred.sigmoid(), target)
        # including the f32 saturation behaviour for large |x|.
        e = jnp.exp(-jnp.abs(x))
        inv = pl.reciprocal(1.0 + e, approx=False)
        p = jnp.where(x >= 0.0, inv, e * inv)
        log_p = jnp.maximum(jnp.log(p), -100.0)
        log_1mp = jnp.maximum(jnp.log(1.0 - p), -100.0)
        bce = -(t * log_p + (1.0 - t) * log_1mp)

        # pt = (1 - p) * t + p * (1 - t); weights = pt ** gamma
        pt = (1.0 - p) * t + p * (1.0 - t)
        if gamma == 2.0:
            w = pt * pt                       # avoid pow for the default
        elif float(gamma).is_integer() and gamma >= 0.0:
            w = lax.integer_pow(pt, int(gamma))
        else:
            w = pt ** gamma

        if alpha > 0.0:
            a_t = alpha * t + (1.0 - alpha) * (1.0 - t)
            loss = bce * a_t * w * valid
        else:
            loss = bce * w * valid

        # Tail mask for partial / clamped blocks: any row at or past rows_total
        # is garbage in VMEM; selecting 0 here guarantees NaN/Inf produced from
        # garbage never reaches the accumulator.
        in_bounds = (row_iota + (block_row0 + c * chunk_rows)) < rows_total
        loss = jnp.where(in_bounds, loss, 0.0)

        # VPU-only reduce over the sublane-block axis into one (8,128) vreg.
        return acc + jnp.sum(loss.reshape(chunk_rows // 8, 8, _LANES), axis=0)

    acc = lax.fori_loop(0, n_chunks, chunk_body,
                        jnp.zeros((8, _LANES), jnp.float32), unroll=True)
    out_ref[...] += acc[None]


def _cdiv(a, b):
    return -(-a // b)


def _round_up(x, m):
    return _cdiv(x, m) * m


def _default_num_cores():
    # Best-effort TensorCore count (2 on v7x, 1 elsewhere).  Any failure falls
    # back to 2, which is always correct (on 1-TC chips the spare partition
    # only adds one tiny epilogue).
    try:
        info = pltpu.get_tpu_info()
        for name in ("num_cores", "core_count", "num_tensorcores",
                     "tensorcores_per_chip", "num_tensor_cores"):
            v = getattr(info, name, None)
            if isinstance(v, int) and v > 0:
                return max(1, min(2, v))
    except Exception:
        pass
    return 2


def py_focal_loss_pallas(pred, target, contour=None, *, gamma=2.0, alpha=0.25,
                         loss_weight=1.0, tile_rows=4096, chunk_rows=256,
                         num_cores=None):
    """Forward of PyFocalLoss with default config (mean-reduced scalar loss)."""
    assert pred.shape == target.shape
    assert alpha > 0, "adaptive alpha<0 branch not implemented"
    # TODO(synk): alpha<0 adaptive branch (running_pos/running_neg EMA) and the
    # contour-guided weighting (use_guided=True) are not exercised by defaults.
    del contour

    total = math.prod(pred.shape)
    n_par = _default_num_cores() if num_cores is None else max(1, int(num_cores))

    pred_flat = pred.reshape(-1)          # free row-major reshape
    target_flat = target.reshape(-1)
    lane_pad = (-total) % _LANES
    if lane_pad:
        # TODO(synk): only hit when numel % 128 != 0; pads by < 128 elems so the
        # lane-dense 2-D view exists.  The old pad-to-tile-boundary copy is gone;
        # partial blocks are masked in-kernel instead.
        pred_flat = jnp.pad(pred_flat, (0, lane_pad))
        target_flat = jnp.pad(target_flat, (0, lane_pad), constant_values=-1.0)
    rows = (total + lane_pad) // _LANES
    pred2d = pred_flat.reshape(rows, _LANES)
    target2d = target_flat.reshape(rows, _LANES)

    # Tile sizing: big lane-dense DMA blocks (amortize ~0.35us/step pipeline
    # overhead) + small chunked inner loop (temporaries stay near vreg capacity).
    chunk_rows = max(8, (int(chunk_rows) // 8) * 8)
    tile_rows = min(int(tile_rows), _round_up(_cdiv(rows, n_par), chunk_rows))
    tile_rows = max(chunk_rows, (tile_rows // chunk_rows) * chunk_rows)
    tiles_per_core = _cdiv(rows, tile_rows * n_par)
    last_block = _cdiv(rows, tile_rows) - 1   # clamp target for OOB blocks

    def in_map(p, j):
        # Round-robin blocks over cores for load balance; clamp fully-OOB block
        # indices back in range (their contribution is masked to 0 in-kernel).
        return (jnp.minimum(j * n_par + p, last_block), 0)

    kernel = functools.partial(
        _focal_loss_kernel, gamma=float(gamma), alpha=float(alpha),
        rows_total=rows, tile_rows=tile_rows, chunk_rows=chunk_rows)

    n_elems = rows * _LANES
    cost = pl.CostEstimate(
        flops=30 * n_elems,
        transcendentals=4 * n_elems,
        bytes_accessed=(pred2d.size * pred2d.dtype.itemsize
                        + target2d.size * target2d.dtype.itemsize
                        + n_par * 8 * _LANES * 4))

    partials = pl.pallas_call(
        kernel,
        out_shape=jax.ShapeDtypeStruct((n_par, 8, _LANES), jnp.float32),
        grid_spec=pltpu.PrefetchScalarGridSpec(
            num_scalar_prefetch=0,
            grid=(n_par, tiles_per_core),
            in_specs=[
                pl.BlockSpec((tile_rows, _LANES), in_map),
                pl.BlockSpec((tile_rows, _LANES), in_map),
            ],
            out_specs=pl.BlockSpec((1, 8, _LANES), lambda p, j: (p, 0, 0)),
        ),
        compiler_params=pltpu.CompilerParams(
            dimension_semantics=("parallel", "arbitrary"),
            vmem_limit_bytes=32 * 1024 * 1024),
        cost_estimate=cost,
    )(pred2d, target2d)

    return jnp.sum(partials) * (loss_weight / total)


def _reference_loss(pred, target, gamma=2.0, alpha=0.25, loss_weight=1.0):
    """Pure-JAX mirror of the torch forward (sigmoid + clamped-log BCE)."""
    pred = pred.astype(jnp.float32)
    t = target.astype(jnp.float32)
    p = jax.nn.sigmoid(pred)
    valid = (jnp.trunc(t) >= 0.0).astype(jnp.float32)
    pt = (1.0 - p) * t + p * (1.0 - t)
    weights = pt ** gamma
    alpha_t = alpha * t + (1.0 - alpha) * (1.0 - t)
    bce = -(t * jnp.maximum(jnp.log(p), -100.0)
            + (1.0 - t) * jnp.maximum(jnp.log(1.0 - p), -100.0))
    loss = bce * alpha_t * weights * valid
    return loss_weight * jnp.mean(loss)


if __name__ == "__main__":
    key = jax.random.PRNGKey(0)
    k1, k2, k3, k4, k5, k6 = jax.random.split(key, 6)

    # NCHW inputs: (2, 4, 16, 16) -> 2048 elements.
    N, C, H, W = 2, 4, 16, 16
    pred = jax.random.normal(k1, (N, C, H, W), dtype=jnp.float32)
    # target in {-1 (ignore), 0, 1}
    target = jax.random.randint(k2, (N, C, H, W), -1, 2).astype(jnp.float32)

    loss = jax.block_until_ready(py_focal_loss_pallas(pred, target))
    ref = _reference_loss(pred, target)
    assert jnp.allclose(loss, ref, rtol=1e-5, atol=1e-6), (loss, ref)

    # Awkward size: exercises the lane pad (< 128 elems) and the masked
    # partial-block path (no pad-to-tile-boundary copy anymore).
    pred_b = jax.random.normal(k3, (1, 3, 17, 19), dtype=jnp.float32)
    target_b = jax.random.randint(k4, (1, 3, 17, 19), -1, 2).astype(jnp.float32)
    loss_b = jax.block_until_ready(py_focal_loss_pallas(pred_b, target_b))
    ref_b = _reference_loss(pred_b, target_b)
    assert jnp.allclose(loss_b, ref_b, rtol=1e-5, atol=1e-6), (loss_b, ref_b)

    # 128-divisible but tile-misaligned size: partial boundary block, no pad.
    pred_c = jax.random.normal(k5, (2, 4, 30, 40), dtype=jnp.float32)
    target_c = jax.random.randint(k6, (2, 4, 30, 40), -1, 2).astype(jnp.float32)
    loss_c = jax.block_until_ready(py_focal_loss_pallas(pred_c, target_c))
    ref_c = _reference_loss(pred_c, target_c)
    assert jnp.allclose(loss_c, ref_c, rtol=1e-5, atol=1e-6), (loss_c, ref_c)

    print("KERNEL_OK")
</pallas_src>

<mosaic_0001>
module attributes {stable_mosaic.version = 11 : i64} {
  func.func @_focal_loss_kernel(%arg0: i32, %arg1: i32, %arg2: memref<256x128xf32, #tpu.memory_space<vmem>>, %arg3: memref<256x128xf32, #tpu.memory_space<vmem>>, %arg4: memref<1x8x128xf32, #tpu.memory_space<vmem>>) attributes {dimension_semantics = [#tpu.dimension_semantics<parallel>, #tpu.dimension_semantics<arbitrary>], iteration_bounds = array<i64: 2, 1>, scalar_prefetch = 0 : i64, scratch_operands = 0 : i64, tpu.core_type = #tpu.core_type<tc>, window_params = [{transform_indices = @transform_0, window_bounds = array<i64: 256, 128>}, {transform_indices = @transform_1, window_bounds = array<i64: 256, 128>}, {transform_indices = @transform_2, window_bounds = array<i64: 1, 8, 128>}]} {
    %c0_i32 = arith.constant 0 : i32
    %0 = arith.cmpi eq, %arg1, %c0_i32 : i32
    %1 = arith.extui %0 : i1 to i32
    %c0_i32_0 = arith.constant 0 : i32
    %2 = arith.cmpi ne, %1, %c0_i32_0 : i32
    scf.if %2 {
      %cst_28 = arith.constant 0.000000e+00 : f32
      %82 = vector.broadcast %cst_28 : f32 to vector<1x8x128xf32>
      %c0_29 = arith.constant 0 : index
      %c0_30 = arith.constant 0 : index
      %c0_31 = arith.constant 0 : index
      %83 = vector.load %arg4[%c0_29, %c0_30, %c0_31] : memref<1x8x128xf32, #tpu.memory_space<vmem>>, vector<1x8x128xf32>
      tpu.vector_store %arg4[%c0_29, %c0_30, %c0_31], %82 {strides = array<i32>} : memref<1x8x128xf32, #tpu.memory_space<vmem>>, vector<1x8x128xf32>,
    } else {
    }
    %c2_i32 = arith.constant 2 : i32
    %3 = arith.muli %arg1, %c2_i32 : i32
    %4 = arith.addi %3, %arg0 : i32
    %c256_i32 = arith.constant 256 : i32
    %5 = arith.muli %4, %c256_i32 : i32
    %6 = tpu.iota {dimensions = array<i32: 0>} : vector<256x128xi32>
    %cst = arith.constant 0.000000e+00 : f32
    %7 = vector.broadcast %cst : f32 to vector<8x128xf32>
    %c0_i32_1 = arith.constant 0 : i32
    %c256_i32_2 = arith.constant 256 : i32
    %8 = arith.muli %c0_i32_1, %c256_i32_2 : i32
    %9 = tpu.assume_multiple %8, 256 : i32
    %10 = arith.index_cast %9 : i32 to index
    %c0 = arith.constant 0 : index
    %11 = vector.load %arg2[%10, %c0] : memref<256x128xf32, #tpu.memory_space<vmem>>, vector<256x128xf32>
    %12 = arith.index_cast %9 : i32 to index
    %c0_3 = arith.constant 0 : index
    %13 = vector.load %arg3[%12, %c0_3] : memref<256x128xf32, #tpu.memory_space<vmem>>, vector<256x128xf32>
    %cst_4 = arith.constant 0.000000e+00 : f32
    %14 = vector.broadcast %cst_4 : f32 to vector<256x128xf32>
    %15 = arith.cmpf olt, %13, %14 : vector<256x128xf32>
    %16 = math.ceil %13 : vector<256x128xf32>
    %17 = math.floor %13 : vector<256x128xf32>
    %18 = arith.select %15, %16, %17 : vector<256x128xi1>, vector<256x128xf32>
    %cst_5 = arith.constant 0.000000e+00 : f32
    %19 = vector.broadcast %cst_5 : f32 to vector<256x128xf32>
    %20 = arith.cmpf oge, %18, %19 : vector<256x128xf32>
    %21 = arith.extui %20 : vector<256x128xi1> to vector<256x128xi32>
    %22 = arith.sitofp %21 : vector<256x128xi32> to vector<256x128xf32>
    %23 = math.absf %11 : vector<256x128xf32>
    %cst_6 = arith.constant 0.000000e+00 : f32
    %24 = vector.broadcast %cst_6 : f32 to vector<256x128xf32>
    %25 = arith.subf %24, %23 : vector<256x128xf32>
    %26 = math.exp %25 : vector<256x128xf32>
    %cst_7 = arith.constant 1.000000e+00 : f32
    %27 = vector.broadcast %cst_7 : f32 to vector<256x128xf32>
    %28 = arith.addf %27, %26 : vector<256x128xf32>
    %29 = tpu.reciprocal %28 : vector<256x128xf32> -> vector<256x128xf32>
    %cst_8 = arith.constant 0.000000e+00 : f32
    %30 = vector.broadcast %cst_8 : f32 to vector<256x128xf32>
    %31 = arith.cmpf oge, %11, %30 : vector<256x128xf32>
    %32 = arith.mulf %26, %29 : vector<256x128xf32>
    %33 = arith.select %31, %29, %32 : vector<256x128xi1>, vector<256x128xf32>
    %34 = math.log %33 : vector<256x128xf32>
    %cst_9 = arith.constant -1.000000e+02 : f32
    %35 = vector.broadcast %cst_9 : f32 to vector<256x128xf32>
    %36 = arith.maximumf %34, %35 : vector<256x128xf32>
    %cst_10 = arith.constant 1.000000e+00 : f32
    %37 = vector.broadcast %cst_10 : f32 to vector<256x128xf32>
    %38 = arith.subf %37, %33 : vector<256x128xf32>
    %39 = math.log %38 : vector<256x128xf32>
    %cst_11 = arith.constant -1.000000e+02 : f32
    %40 = vector.broadcast %cst_11 : f32 to vector<256x128xf32>
    %41 = arith.maximumf %39, %40 : vector<256x128xf32>
    %42 = arith.mulf %13, %36 : vector<256x128xf32>
    %cst_12 = arith.constant 1.000000e+00 : f32
    %43 = vector.broadcast %cst_12 : f32 to vector<256x128xf32>
    %44 = arith.subf %43, %13 : vector<256x128xf32>
    %45 = arith.mulf %44, %41 : vector<256x128xf32>
    %46 = arith.addf %42, %45 : vector<256x128xf32>
    %cst_13 = arith.constant 0.000000e+00 : f32
    %47 = vector.broadcast %cst_13 : f32 to vector<256x128xf32>
    %48 = arith.subf %47, %46 : vector<256x128xf32>
    %cst_14 = arith.constant 1.000000e+00 : f32
    %49 = vector.broadcast %cst_14 : f32 to vector<256x128xf32>
    %50 = arith.subf %49, %33 : vector<256x128xf32>
    %51 = arith.mulf %50, %13 : vector<256x128xf32>
    %cst_15 = arith.constant 1.000000e+00 : f32
    %52 = vector.broadcast %cst_15 : f32 to vector<256x128xf32>
    %53 = arith.subf %52, %13 : vector<256x128xf32>
    %54 = arith.mulf %33, %53 : vector<256x128xf32>
    %55 = arith.addf %51, %54 : vector<256x128xf32>
    %56 = arith.mulf %55, %55 : vector<256x128xf32>
    %cst_16 = arith.constant 2.500000e-01 : f32
    %57 = vector.broadcast %cst_16 : f32 to vector<256x128xf32>
    %58 = arith.mulf %57, %13 : vector<256x128xf32>
    %cst_17 = arith.constant 1.000000e+00 : f32
    %59 = vector.broadcast %cst_17 : f32 to vector<256x128xf32>
    %60 = arith.subf %59, %13 : vector<256x128xf32>
    %cst_18 = arith.constant 7.500000e-01 : f32
    %61 = vector.broadcast %cst_18 : f32 to vector<256x128xf32>
    %62 = arith.mulf %61, %60 : vector<256x128xf32>
    %63 = arith.addf %58, %62 : vector<256x128xf32>
    %64 = arith.mulf %48, %63 : vector<256x128xf32>
    %65 = arith.mulf %64, %56 : vector<256x128xf32>
    %66 = arith.mulf %65, %22 : vector<256x128xf32>
    %c256_i32_19 = arith.constant 256 : i32
    %67 = arith.muli %c0_i32_1, %c256_i32_19 : i32
    %68 = arith.addi %5, %67 : i32
    %69 = vector.broadcast %68 : i32 to vector<256x128xi32>
    %70 = arith.addi %6, %69 : vector<256x128xi32>
    %c16_i32 = arith.constant 16 : i32
    %71 = vector.broadcast %c16_i32 : i32 to vector<256x128xi32>
    %72 = arith.cmpi slt, %70, %71 : vector<256x128xi32>
    %cst_20 = arith.constant 0.000000e+00 : f32
    %73 = vector.broadcast %cst_20 : f32 to vector<256x128xf32>
    %74 = arith.select %72, %66, %73 : vector<256x128xi1>, vector<256x128xf32>
    %75 = vector.shape_cast %74 : vector<256x128xf32> to vector<32x8x128xf32>
    %cst_21 = arith.constant dense<0.000000e+00> : vector<8x128xf32>
    %76 = vector.multi_reduction <add>, %75, %cst_21 [0] : vector<32x8x128xf32> to vector<8x128xf32>
    %77 = arith.addf %7, %76 : vector<8x128xf32>
    %c1_i32 = arith.constant 1 : i32
    %c0_22 = arith.constant 0 : index
    %c0_23 = arith.constant 0 : index
    %c0_24 = arith.constant 0 : index
    %78 = vector.load %arg4[%c0_22, %c0_23, %c0_24] : memref<1x8x128xf32, #tpu.memory_space<vmem>>, vector<1x8x128xf32>
    %79 = vector.shape_cast %77 : vector<8x128xf32> to vector<1x8x128xf32>
    %80 = arith.addf %78, %79 : vector<1x8x128xf32>
    %c0_25 = arith.constant 0 : index
    %c0_26 = arith.constant 0 : index
    %c0_27 = arith.constant 0 : index
    %81 = vector.load %arg4[%c0_25, %c0_26, %c0_27] : memref<1x8x128xf32, #tpu.memory_space<vmem>>, vector<1x8x128xf32>
    tpu.vector_store %arg4[%c0_25, %c0_26, %c0_27], %80 {strides = array<i32>} : memref<1x8x128xf32, #tpu.memory_space<vmem>>, vector<1x8x128xf32>,
    return
  }
  func.func @transform_0(%arg0: i32, %arg1: i32) -> (i32, i32) {
    %c2_i32 = arith.constant 2 : i32
    %0 = arith.muli %arg1, %c2_i32 : i32
    %1 = arith.addi %0, %arg0 : i32
    %c0_i32 = arith.constant 0 : i32
    %2 = arith.minsi %1, %c0_i32 : i32
    %c0_i32_0 = arith.constant 0 : i32
    %c0_i32_1 = arith.constant 0 : i32
    return %2, %c0_i32_0 : i32, i32
  }
  func.func @transform_1(%arg0: i32, %arg1: i32) -> (i32, i32) {
    %c2_i32 = arith.constant 2 : i32
    %0 = arith.muli %arg1, %c2_i32 : i32
    %1 = arith.addi %0, %arg0 : i32
    %c0_i32 = arith.constant 0 : i32
    %2 = arith.minsi %1, %c0_i32 : i32
    %c0_i32_0 = arith.constant 0 : i32
    %c0_i32_1 = arith.constant 0 : i32
    return %2, %c0_i32_0 : i32, i32
  }
  func.func @transform_2(%arg0: i32, %arg1: i32) -> (i32, i32, i32) {
    %c0_i32 = arith.constant 0 : i32
    %c0_i32_0 = arith.constant 0 : i32
    %c0_i32_1 = arith.constant 0 : i32
    return %arg0, %c0_i32, %c0_i32_0 : i32, i32, i32
  }
}

</mosaic_0001>

<bundles_post_ra>
// kernel: tpu_custom_call.1
= control target key start
LH: loop header
LB: loop body
LE: loop exit
PB: predicated region body
PF: predicated region fallthrough
CT: control target
= control target key end

     0   :  { %7 = vsyncpa [#allocation3], 0  ;;  %s5139_s0 = inlined_call_operand.hbm [shape: f32[16,128], index: 0, kind: input, shape index: {}]   ;;  %s5140_s1 = inlined_call_operand.hbm [shape: f32[16,128], index: 1, kind: input, shape index: {}]   ;;  %s5141_s2 = inlined_call_operand.hbm [shape: f32[2,8,128], index: 2, kind: output, shape index: {}]  }
   0x1   :  { %9 = vsyncpa [#allocation3 + $0x1], 0 }
   0x2   :  { %10 = vsyncpa [#allocation6], 0 }
   0x3   :  { %12 = vsyncpa [#allocation6 + $0x1], 0 }
   0x4   :  { %13 = vsyncpa [#allocation4], 0 }
   0x5   :  { %15 = vsyncpa [#allocation4 + $0x1], 0  ;;  %s2455_s9 = smov 0   ;;  %s2457_s10 = smov 0  }
   0x6   :  { %s2459_s11 = smov 0   ;;  %s2461_s12 = smov 0  }
   0x7   :  { %s2463_s13 = smov 0   ;;  %s2465_s14 = smov 0  }
   0x8   :  { %s2467_s15 = smov 0   ;;  %s2469_s16 = smov 0  }
   0x9 LB: > { %s1828_s17 = sadd.s32 4294967295, %s2430_s16   ;;  %s1829_s18 = sadd.s32 4294967294, %s2430_s16   ;;  %s2430_s16 = sphi %s2469_s16, %s21_s16   ;;  %s2426_s15 = sphi %s2467_s15, %s6394_s15   ;;  %s2422_s14 = sphi %s2465_s14, %s6393_s14   ;;  %s2418_s13 = sphi %s2463_s13, %s5129_s13   ;;  %s2414_s12 = sphi %s2461_s12, %s6392_s12   ;;  %s2410_s11 = sphi %s2459_s11, %s6391_s11   ;;  %s2406_s10 = sphi %s2457_s10, %s6390_s10   ;;  %s2402_s9 = sphi %s2455_s9, %s6389_s9  }
   0xa   : > { %s33_s19 = sadd.s32 1, %s2426_s15  ;;  %p2399_p1 = scmp.ne.s32.totalorder %s2418_s13, 0 }
   0xb   : > { %p35_p0 = scmp.ge.s32.totalorder %s33_s19, 2  ;;  %p56_p2 = scmp.eq.s32.totalorder %s2430_s16, 0 }
   0xc   : > { %p61_p3 = scmp.ne.s32.totalorder %s2418_s13, %s2414_s12  ;;  %p62_p5 = scmp.eq.s32.totalorder %s1828_s17, 0 }
   0xd   : > { %s6396_s19 = smov (%p35_p0, %s33_s19), 0  ;;  %p2501_p4 = por %p2399_p1, %p56_p2 }
   0xe   : > { %p2505_p6 = por %p62_p5, %p61_p3  ;;  %s105_s22 = ssub.s32 %s2426_s15, %s6396_s19 }
   0xf   : > { %p106_p7 = scmp.eq.s32.totalorder %s105_s22, 0  ;;  %s108_s23 = sadd.s32 1, %s2410_s11 }
  0x10   : > { %p118_p8 = scmp.ne.s32.totalorder %s2410_s11, %s2406_s10  ;;  %p119_p9 = scmp.eq.s32.totalorder %s1828_s17, 1 }
  0x11   : > { %s2513_s24 = scalar_select %p106_p7, %s2410_s11, %s108_s23  }
  0x12   : > { %p124_p10 = scmp.ne.s32.totalorder %s2406_s10, %s2402_s9  ;;  %p125_p11 = scmp.eq.s32.totalorder %s1829_s18, 1 }
  0x13   : > { %p2519_p12 = por %p119_p9, %p118_p8  ;;  %p5142_p0 = scmp.ge.s32.totalorder %s2430_s16, 2 }
  0x14   : > { %p2523_p13 = por %p125_p11, %p124_p10 }
  0x15   : > { %141 = sbr.rel (%p5142_p0) target bundleno = 82 (0x52), region = 16 }
  0x1c   : > { %144 = sbr.rel (!%p2501_p4) target bundleno = 55 (0x37), region = 20 }
  0x23   : > { %159 = vsyncadd [#allocation3], 3840  ;;  %s2432_s27 = smov [#allocation2]   ;;  %s2263_s3 = scalar_lea.hbm %s5139_s0, 256 }
  0x24   : > { %s164_s28 = sshll.u32 %s2432_s27, 4  ;;  %p2264_p1 = scmp.ne.s32.totalorder %s5139_s0, %s2263_s3  ;;  %s165_s28 = int_to_ptr.vmem [resolvable:$true] %s164_s28 }
  0x25   : > { %p2269_p2 = scmp.lt.u32.totalorder %s2263_s3, %s2263_s3  ;;  %p2271_p3 = scmp.lt.u32.totalorder %s2263_s3, %s5139_s0 }
  0x27   : > { %p2272_p5 = por %p2271_p3, %p2269_p2 }
  0x29   : > { %p2273_p7 = pnand %p2272_p5, %p2264_p1 }
  0x2b   : > { %2276 = shalt.err (!%p2273_p7)
}
  0x2c   : > { %s2277_s8 = scalar_lea.vmem %s165_s28, 256  ;;  %s2283_s12 = scalar_lea.vmem %s165_s28, 8192 }
  0x2d   : > { %p2278_p8 = scmp.ne.s32.totalorder %s165_s28, %s2277_s8  ;;  %p2284_p9 = scmp.lt.s32.totalorder %s165_s28, %s165_s28 }
  0x2e   : > { %p2285_p10 = scmp.lt.s32.totalorder %s2283_s12, %s2277_s8 }
  0x30   : > { %p2286_p11 = por %p2285_p10, %p2284_p9 }
  0x32   : > { %p2287_p0 = pnand %p2286_p11, %p2278_p8 }
  0x34   : > { %2290 = shalt.err (!%p2287_p0)
}
  0x35   : > { %s2433_s17 = smov 128   ;;  %s2434_s18 = smov 8  }
  0x36   : > { %170 = dma.hbm_to_vmem [thread:$0]  %s5139_s0, 256, %s165_s28, [#allocation3], %s2433_s17, %s2433_s17, %s2434_s18  }
  0x37 PF: > { %173 = sbr.rel (!%p2501_p4) target bundleno = 82 (0x52), region = 24 }
  0x3e   : > { %188 = vsyncadd [#allocation6], 3840  ;;  %s2435_s27 = smov [#allocation5]   ;;  %s2291_s4 = scalar_lea.hbm %s5140_s1, 256 }
  0x3f   : > { %s193_s29 = sshll.u32 %s2435_s27, 4  ;;  %p2292_p0 = scmp.ne.s32.totalorder %s5140_s1, %s2291_s4  ;;  %s194_s29 = int_to_ptr.vmem [resolvable:$true] %s193_s29 }
  0x40   : > { %p2297_p1 = scmp.lt.u32.totalorder %s2291_s4, %s2291_s4  ;;  %p2299_p2 = scmp.lt.u32.totalorder %s2291_s4, %s5140_s1 }
  0x42   : > { %p2300_p3 = por %p2299_p2, %p2297_p1 }
  0x44   : > { %p2301_p5 = pnand %p2300_p3, %p2292_p0 }
  0x46   : > { %2304 = shalt.err (!%p2301_p5)
}
  0x47   : > { %s2305_s20 = scalar_lea.vmem %s194_s29, 256  ;;  %s2311_s28 = scalar_lea.vmem %s194_s29, 8192 }
  0x48   : > { %p2306_p4 = scmp.ne.s32.totalorder %s194_s29, %s2305_s20  ;;  %p2312_p7 = scmp.lt.s32.totalorder %s194_s29, %s194_s29 }
  0x49   : > { %p2313_p8 = scmp.lt.s32.totalorder %s2311_s28, %s2305_s20 }
  0x4b   : > { %p2314_p9 = por %p2313_p8, %p2312_p7 }
  0x4d   : > { %p2315_p10 = pnand %p2314_p9, %p2306_p4 }
  0x4f   : > { %2318 = shalt.err (!%p2315_p10)
}
  0x50   : > { %s2436_s12 = smov 128   ;;  %s2437_s17 = smov 8  }
  0x51   : > { %199 = dma.hbm_to_vmem [thread:$0]  %s5140_s1, 256, %s194_s29, [#allocation6], %s2436_s12, %s2436_s12, %s2437_s17  }
  0x52 PF: > { %p1846_p11 = scmp.ge.s32.totalorder %s2430_s16, 1  ;;  %p201_p0 = scmp.lt.s32.totalorder %s2430_s16, 3 }
  0x54   : > { %p202_p1 = pnand %p1846_p11, %p201_p0 }
  0x56   : > { %205 = sbr.rel (%p202_p1) target bundleno = 500 (0x1f4), region = 28 }
  0x5d   : > { %s207_s23 = sand.u32 1, %s2418_s13  }
  0x5e   : > { %s1847_s27 = sshll.u32 %s207_s23, 8  ;;  %s208_s30 = scalar_lea.sflag [#allocation3], %s207_s23 }
  0x5f   : > { %s2561_s3 = scalar_lea.vmem [#allocation2], %s1847_s27 }
  0x60   : > { %2384 = dma.done.wait (%p2505_p6), %s208_s30, 4096  }
  0x61   : > { %2386 = vsyncadd (%p2505_p6), %s208_s30, 4294963200  ;;  %s217_s29 = scalar_lea.sflag [#allocation6], %s207_s23  ;;  %s2567_s4 = scalar_lea.vmem [#allocation5], %s1847_s27 }
  0x62   : > { %2388 = dma.done.wait (%p2505_p6), %s217_s29, 4096  }
  0x63   : > { %2390 = vsyncadd (%p2505_p6), %s217_s29, 4294963200  ;;  %v268_v0 = vlaneseq  ;;  %v2612_v14 = vld [vmem:[%s2561_s3] sm:$0xff]  ;;  %v2624_v18 = vld [vmem:[%s2561_s3 + $0x8] sm:$0xff]  ;;  %s1850_s21 = sshll.u32 %s2422_s14, 8  ;;  %s243_s5 = sand.u32 1, %s2406_s10  }
  0x64   : > { %5478 = vst [vmem:[#allocation24_spill] sm:$0xff] %v2612_v14  ;;  %5482 = vst [vmem:[#allocation28_spill] sm:$0xff] %v2624_v18  ;;  %v2627_v19 = vld [vmem:[%s2561_s3 + $0x10] sm:$0xff]  ;;  %v2630_v20 = vld [vmem:[%s2561_s3 + $0x18] sm:$0xff]  ;;  %v589_v30 = vand.u32 2147483647, %v2612_v14 }
  0x65   : > { %v2573_v1 = vshrl.u32 %v268_v0, 7  ;;  %5483 = vst [vmem:[#allocation29_spill] sm:$0xff] %v2627_v19  ;;  %5484 = vst [vmem:[#allocation30_spill] sm:$0xff] %v2630_v20  ;;  %v2645_v25 = vld [vmem:[%s2561_s3 + $0x20] sm:$0xff]  ;;  %v2657_v29 = vld [vmem:[%s2561_s3 + $0x28] sm:$0xff]  ;;  %s1849_s6 = sshll.u32 %s243_s5, 3 }
  0x66   : > { %5489 = vst [vmem:[#allocation35_spill] sm:$0xff] %v2645_v25  ;;  %5493 = vst [vmem:[#allocation39_spill] sm:$0xff] %v2657_v29  ;;  %v590_v31 = vand.u32 2147483647, %v2624_v18  ;;  %v591_v32 = vand.u32 2147483647, %v2627_v19 }
  0x67   : > { %5465 = vst [vmem:[#allocation11_spill] sm:$0xff] %v2573_v1  ;;  %v2576_v2 = vadd.s32 8, %v2573_v1  ;;  %v2579_v3 = vadd.s32 16, %v2573_v1  ;;  %v2582_v4 = vadd.s32 24, %v2573_v1  ;;  %v2585_v5 = vadd.s32 32, %v2573_v1  ;;  %v2683_v41 = vld [vmem:[%s2561_s3 + $0x30] sm:$0xff] }
  0x68   : > { %v2588_v6 = vadd.s32 40, %v2573_v1  ;;  %v2591_v7 = vadd.s32 48, %v2573_v1  ;;  %v2594_v8 = vadd.s32 56, %v2573_v1  ;;  %v2597_v9 = vadd.s32 64, %v2573_v1  ;;  %5500 = vst [vmem:[#allocation46_spill] sm:$0xff] %v2683_v41  ;;  %v2696_v46 = vld [vmem:[%s2561_s3 + $0x38] sm:$0xff] }
  0x69   : > { %5466 = vst [vmem:[#allocation12_spill] sm:$0xff] %v2576_v2  ;;  %5467 = vst [vmem:[#allocation13_spill] sm:$0xff] %v2579_v3  ;;  %v2600_v10 = vadd.s32 72, %v2573_v1  ;;  %v2603_v11 = vadd.s32 80, %v2573_v1  ;;  %v2606_v12 = vadd.s32 88, %v2573_v1  ;;  %v2609_v13 = vadd.s32 96, %v2573_v1 }
  0x6a   : > { %5468 = vst [vmem:[#allocation14_spill] sm:$0xff] %v2582_v4  ;;  %5469 = vst [vmem:[#allocation15_spill] sm:$0xff] %v2585_v5  ;;  %v2615_v15 = vadd.s32 104, %v2573_v1  ;;  %v2618_v16 = vadd.s32 112, %v2573_v1  ;;  %v2621_v17 = vadd.s32 120, %v2573_v1  ;;  %v2633_v21 = vadd.s32 128, %v2573_v1 }
  0x6b   : > { %5470 = vst [vmem:[#allocation16_spill] sm:$0xff] %v2588_v6  ;;  %5471 = vst [vmem:[#allocation17_spill] sm:$0xff] %v2591_v7  ;;  %v2636_v22 = vadd.s32 136, %v2573_v1  ;;  %v2639_v23 = vadd.s32 144, %v2573_v1  ;;  %v2642_v24 = vadd.s32 152, %v2573_v1  ;;  %v2648_v26 = vadd.s32 160, %v2573_v1 }
  0x6c   : > { %5472 = vst [vmem:[#allocation18_spill] sm:$0xff] %v2594_v8  ;;  %5473 = vst [vmem:[#allocation19_spill] sm:$0xff] %v2597_v9  ;;  %v2651_v27 = vadd.s32 168, %v2573_v1  ;;  %v2654_v28 = vadd.s32 176, %v2573_v1  ;;  %v592_v33 = vand.u32 2147483647, %v2630_v20 }
  0x6d   : > { %5474 = vst [vmem:[#allocation20_spill] sm:$0xff] %v2600_v10  ;;  %5475 = vst [vmem:[#allocation21_spill] sm:$0xff] %v2603_v11  ;;  %v2664_v34 = vadd.s32 184, %v2573_v1  ;;  %v2667_v35 = vadd.s32 192, %v2573_v1  ;;  %v2670_v36 = vadd.s32 200, %v2573_v1  ;;  %v2674_v38 = vadd.s32 208, %v2573_v1 }
  0x6e   : > { %5476 = vst [vmem:[#allocation22_spill] sm:$0xff] %v2606_v12  ;;  %5477 = vst [vmem:[#allocation23_spill] sm:$0xff] %v2609_v13  ;;  %v593_v37 = vand.u32 2147483647, %v2645_v25  ;;  %v2677_v39 = vadd.s32 216, %v2573_v1  ;;  %v2680_v40 = vadd.s32 224, %v2573_v1 }
  0x6f   : > { %5479 = vst [vmem:[#allocation25_spill] sm:$0xff] %v2615_v15  ;;  %5480 = vst [vmem:[#allocation26_spill] sm:$0xff] %v2618_v16  ;;  %v594_v42 = vand.u32 2147483647, %v2657_v29  ;;  %v2687_v43 = vadd.s32 232, %v2573_v1  ;;  %v2690_v44 = vadd.s32 240, %v2573_v1 }
  0x70   : > { %5481 = vst [vmem:[#allocation27_spill] sm:$0xff] %v2621_v17  ;;  %5485 = vst [vmem:[#allocation31_spill] sm:$0xff] %v2633_v21  ;;  %v2693_v45 = vadd.s32 248, %v2573_v1  ;;  %v2698_v47 = vsub.f32 0.0, %v589_v30  ;;  %v2701_v48 = vld [vmem:[%s2567_s4] sm:$0xff]  ;;  %v2704_v49 = vld [vmem:[%s2567_s4 + $0x8] sm:$0xff] }
  0x71   : > { %5486 = vst [vmem:[#allocation32_spill] sm:$0xff] %v2636_v22  ;;  %5487 = vst [vmem:[#allocation33_spill] sm:$0xff] %v2639_v23  ;;  %v2707_v50 = vld [vmem:[%s2567_s4 + $0x10] sm:$0xff]  ;;  %v2710_v51 = vld [vmem:[%s2567_s4 + $0x18] sm:$0xff]  ;;  %v2712_v52 = vsub.f32 0.0, %v590_v31  ;;  %v2714_v53 = vsub.f32 0.0, %v591_v32  ;;  %v429_v23 = vfloor.f32 %v2701_v48 }
  0x72   : > { %5488 = vst [vmem:[#allocation34_spill] sm:$0xff] %v2642_v24  ;;  %5490 = vst [vmem:[#allocation36_spill] sm:$0xff] %v2648_v26  ;;  %v2716_v54 = vsub.f32 0.0, %v592_v33  ;;  %v2719_v55 = vld [vmem:[%s2567_s4 + $0x20] sm:$0xff]  ;;  %v2722_v56 = vld [vmem:[%s2567_s4 + $0x28] sm:$0xff]  ;;  %v2731_v60 = vsub.f32 0.0, %v593_v37  ;;  %v430_v24 = vfloor.f32 %v2704_v49  ;;  %v431_v15 = vfloor.f32 %v2707_v50 }
  0x73   : > { %5491 = vst [vmem:[#allocation37_spill] sm:$0xff] %v2651_v27  ;;  %5492 = vst [vmem:[#allocation38_spill] sm:$0xff] %v2654_v28  ;;  %v2725_v57 = vld [vmem:[%s2567_s4 + $0x30] sm:$0xff]  ;;  %v2728_v58 = vld [vmem:[%s2567_s4 + $0x38] sm:$0xff]  ;;  %v2743_v30 = vsub.f32 0.0, %v594_v42  ;;  %vm365_vm0 = vcmp.lt.f32.partialorder %v2701_v48, 0.0  ;;  %v432_v13 = vfloor.f32 %v2710_v51  ;;  %v433_v27 = vfloor.f32 %v2719_v55 }
  0x74   : > { %5494 = vst [vmem:[#allocation40_spill] sm:$0xff] %v2664_v34  ;;  %5495 = vst [vmem:[#allocation41_spill] sm:$0xff] %v2667_v35  ;;  %v2734_v61 = vld [vmem:[%s2567_s4 + $0x40] sm:$0xff]  ;;  %v2737_v62 = vld [vmem:[%s2567_s4 + $0x48] sm:$0xff]  ;;  %vm366_vm1 = vcmp.lt.f32.partialorder %v2704_v49, 0.0  ;;  %vm367_vm2 = vcmp.lt.f32.partialorder %v2707_v50, 0.0  ;;  %v434_v28 = vfloor.f32 %v2722_v56  ;;  %v435_v12 = vfloor.f32 %v2725_v57 }
  0x75   : > { %5496 = vst [vmem:[#allocation42_spill] sm:$0xff] %v2670_v36  ;;  %5497 = vst [vmem:[#allocation43_spill] sm:$0xff] %v2674_v38  ;;  %v2740_v63 = vld [vmem:[%s2567_s4 + $0x50] sm:$0xff]  ;;  %v2746_v31 = vld [vmem:[%s2567_s4 + $0x58] sm:$0xff]  ;;  %vm368_vm3 = vcmp.lt.f32.partialorder %v2710_v51, 0.0  ;;  %vm369_vm4 = vcmp.lt.f32.partialorder %v2719_v55, 0.0  ;;  %v436_v11 = vfloor.f32 %v2728_v58  ;;  %v437_v10 = vfloor.f32 %v2734_v61 }
  0x76   : > { %5498 = vst [vmem:[#allocation44_spill] sm:$0xff] %v2677_v39  ;;  %5499 = vst [vmem:[#allocation45_spill] sm:$0xff] %v2680_v40  ;;  %v2749_v32 = vld [vmem:[%s2567_s4 + $0x60] sm:$0xff]  ;;  %v2752_v33 = vld [vmem:[%s2567_s4 + $0x68] sm:$0xff]  ;;  %vm370_vm5 = vcmp.lt.f32.partialorder %v2722_v56, 0.0  ;;  %vm371_vm6 = vcmp.lt.f32.partialorder %v2725_v57, 0.0  ;;  %v438_v9 = vfloor.f32 %v2737_v62  ;;  %v439_v8 = vfloor.f32 %v2740_v63 }
  0x77   : > { %5501 = vst [vmem:[#allocation47_spill] sm:$0xff] %v2687_v43  ;;  %5502 = vst [vmem:[#allocation48_spill] sm:$0xff] %v2690_v44  ;;  %v2759_v42 = vld [vmem:[%s2567_s4 + $0x70] sm:$0xff]  ;;  %v2762_v44 = vld [vmem:[%s2567_s4 + $0x78] sm:$0xff]  ;;  %vm372_vm7 = vcmp.lt.f32.partialorder %v2728_v58, 0.0  ;;  %vm373_vm8 = vcmp.lt.f32.partialorder %v2734_v61, 0.0  ;;  %v440_v7 = vfloor.f32 %v2746_v31  ;;  %v441_v6 = vfloor.f32 %v2749_v32 }
  0x78   : > { %5503 = vst [vmem:[#allocation49_spill] sm:$0xff] %v2693_v45  ;;  %5504 = vst [vmem:[#allocation50_spill] sm:$0xff] %v2696_v46  ;;  %v2765_v43 = vld [vmem:[%s2567_s4 + $0x80] sm:$0xff]  ;;  %v2772_v59 = vld [vmem:[%s2567_s4 + $0x88] sm:$0xff]  ;;  %vm374_vm9 = vcmp.lt.f32.partialorder %v2737_v62, 0.0  ;;  %v442_v5 = vfloor.f32 %v2752_v33  ;;  %v443_v4 = vfloor.f32 %v2759_v42  ;;  %v444_v3 = vfloor.f32 %v2762_v44  ;;  %s1884_s7 = sshll.u32 %s2422_s14, 7 }
  0x79   : > { %5505 = vst [vmem:[#allocation51_spill] sm:$0xff] %v2698_v47  ;;  %5506 = vst [vmem:[#allocation52_spill] sm:$0xff] %v2712_v52  ;;  %v2775_v0 = vld [vmem:[%s2567_s4 + $0x90] sm:$0xff]  ;;  %v2778_v38 = vld [vmem:[%s2567_s4 + $0x98] sm:$0xff]  ;;  %v445_v2 = vfloor.f32 %v2765_v43  ;;  %v446_v1 = vfloor.f32 %v2772_v59  ;;  %s245_s8 = scalar_lea.vmem [#allocation7], %s1849_s6  ;;  %s5086_s17 = scalar_lea.hbm %s5141_s2, %s1884_s7 }
  0x7a   : > { %5507 = vst [vmem:[#allocation53_spill] sm:$0xff] %v2714_v53  ;;  %5508 = vst [vmem:[#allocation54_spill] sm:$0xff] %v2716_v54  ;;  %v2785_v39 = vld [vmem:[%s2567_s4 + $0xa0] sm:$0xff]  ;;  %v2788_v45 = vld [vmem:[%s2567_s4 + $0xa8] sm:$0xff]  ;;  %v447_v29 = vfloor.f32 %v2775_v0  ;;  %v448_v25 = vfloor.f32 %v2778_v38  ;;  %s1727_s20 = sshll.u32 %s245_s8, 4  ;;  %s1714_s18 = scalar_lea.sflag [#allocation4], %s243_s5  ;;  %s5088_s20 = int_to_ptr.vmem [resolvable:$true] %s1727_s20 }
  0x7b   : > { %5509 = vst [vmem:[#allocation55_spill] sm:$0xff] %v2731_v60  ;;  %5510 = vst [vmem:[#allocation56_spill] sm:$0xff] %v2734_v61  ;;  %v2791_v34 = vld [vmem:[%s2567_s4 + $0xb0] sm:$0xff]  ;;  %v2798_v40 = vld [vmem:[%s2567_s4 + $0xb8] sm:$0xff]  ;;  %vm386_vm14 = vcmp.lt.f32.partialorder %v2788_v45, 0.0  ;;  %v449_v20 = vfloor.f32 %v2785_v39  ;;  %v450_v19 = vfloor.f32 %v2788_v45  ;;  %s2319_s22 = scalar_lea.vmem %s5088_s20, 128 }
  0x7c   : > { %5511 = vst [vmem:[#allocation57_spill] sm:$0xff] %v2737_v62  ;;  %5512 = vst [vmem:[#allocation58_spill] sm:$0xff] %v2740_v63  ;;  %v2801_v26 = vld [vmem:[%s2567_s4 + $0xc0] sm:$0xff]  ;;  %v2804_v37 = vld [vmem:[%s2567_s4 + $0xc8] sm:$0xff]  ;;  %v451_v18 = vfloor.f32 %v2791_v34  ;;  %v452_v14 = vfloor.f32 %v2798_v40  ;;  %p2320_p6 = scmp.ne.s32.totalorder %s5088_s20, %s2319_s22  ;;  %s2439_s14 = smov [#allocation7]  }
  0x7d   : > { %5513 = vst [vmem:[#allocation59_spill] sm:$0xff] %v2743_v30  ;;  %5514 = vst [vmem:[#allocation60_spill] sm:$0xff] %v2746_v31  ;;  %v2811_v36 = vld [vmem:[%s2567_s4 + $0xd0] sm:$0xff]  ;;  %v2814_v35 = vld [vmem:[%s2567_s4 + $0xd8] sm:$0xff]  ;;  %v453_v30 = vfloor.f32 %v2801_v26  ;;  %v454_v60 = vfloor.f32 %v2804_v37  ;;  %s2323_s23 = sshll.u32 %s2439_s14, 4  ;;  %s2324_s23 = int_to_ptr.vmem [resolvable:$false] %s2323_s23 }
  0x7e   : > { %5515 = vst [vmem:[#allocation61_spill] sm:$0xff] %v2749_v32  ;;  %5516 = vst [vmem:[#allocation62_spill] sm:$0xff] %v2752_v33  ;;  %v2817_v22 = vld [vmem:[%s2567_s4 + $0xe0] sm:$0xff]  ;;  %v2828_v21 = vld [vmem:[%s2567_s4 + $0xe8] sm:$0xff]  ;;  %vm392_vm10 = vcmp.lt.f32.partialorder %v2814_v35, 0.0  ;;  %v455_v54 = vfloor.f32 %v2811_v36  ;;  %v456_v46 = vfloor.f32 %v2814_v35  ;;  %p2321_p2 = pnand %p2320_p6, %p2519_p12  ;;  %s2325_s27 = scalar_lea.vmem %s2324_s23, 256 }
  0x7f   : > { %5517 = vst [vmem:[#allocation63_spill] sm:$0xff] %v2759_v42  ;;  %5518 = vst [vmem:[#allocation64_spill] sm:$0xff] %v2762_v44  ;;  %v2831_v17 = vld [vmem:[%s2567_s4 + $0xf0] sm:$0xff]  ;;  %v2834_v16 = vld [vmem:[%s2567_s4 + $0xf8] sm:$0xff]  ;;  %vm393_vm11 = vcmp.lt.f32.partialorder %v2817_v22, 0.0  ;;  %vm394_vm15 = vcmp.lt.f32.partialorder %v2828_v21, 0.0  ;;  %v457_v53 = vfloor.f32 %v2817_v22  ;;  %v458_v41 = vfloor.f32 %v2828_v21  ;;  %p2326_p5 = scmp.lt.s32.totalorder %s5088_s20, %s2324_s23  ;;  %p2327_p4 = scmp.lt.s32.totalorder %s2325_s27, %s2319_s22 }
  0x80   : > { %5519 = vst [vmem:[#allocation65_spill] sm:$0xff] %v2765_v43  ;;  %5520 = vst [vmem:[#allocation66_spill] sm:$0xff] %v2772_v59  ;;  %vm395_vm12 = vcmp.lt.f32.partialorder %v2831_v17, 0.0  ;;  %vm396_vm13 = vcmp.lt.f32.partialorder %v2834_v16, 0.0  ;;  %v459_v52 = vfloor.f32 %v2831_v17  ;;  %v460_v47 = vfloor.f32 %v2834_v16  ;;  %p2322_p3 = pneg %p2321_p2 }
  0x81   : > { %5521 = vst [vmem:[#allocation67_spill] sm:$0xff] %v2775_v0  ;;  %5522 = vst [vmem:[#allocation68_spill] sm:$0xff] %v2778_v38  ;;  %p2328_p7 = por %p2327_p4, %p2326_p5 }
  0x82   : > { %5523 = vst [vmem:[#allocation69_spill] sm:$0xff] %v2785_v39  ;;  %5524 = vst [vmem:[#allocation70_spill] sm:$0xff] %v2788_v45 }
  0x83   : > { %5525 = vst [vmem:[#allocation71_spill] sm:$0xff] %v2791_v34  ;;  %5526 = vst [vmem:[#allocation72_spill] sm:$0xff] %v2798_v40  ;;  %v5535_v34 = vceil.f32 %v2701_v48  ;;  %p2329_p8 = pnand %p2328_p7, %p2322_p3 }
  0x84   : > { %5527 = vst [vmem:[#allocation73_spill] sm:$0xff] %v2801_v26  ;;  %5528 = vst [vmem:[#allocation74_spill] sm:$0xff] %v2804_v37  ;;  %v5536_v26 = vceil.f32 %v2704_v49 }
  0x85   : > { %5529 = vst [vmem:[#allocation75_spill] sm:$0xff] %v2811_v36  ;;  %5530 = vst [vmem:[#allocation76_spill] sm:$0xff] %v2814_v35  ;;  %v461_v40 = vsel %vm365_vm0, %v5535_v34, %v429_v23  ;;  %v5537_v35 = vceil.f32 %v2707_v50  ;;  %v5540_v34 = vceil.f32 %v2722_v56  ;;  %vm5546_vm0 = vcmp.lt.f32.partialorder %v2740_v63, 0.0 }
  0x86   : > { %5531 = vst [vmem:[#allocation77_spill] sm:$0xff] %v2817_v22  ;;  %5532 = vst [vmem:[#allocation78_spill] sm:$0xff] %v2828_v21  ;;  %v462_v36 = vsel %vm366_vm1, %v5536_v26, %v430_v24  ;;  %v5538_v21 = vceil.f32 %v2710_v51  ;;  %v5541_v26 = vceil.f32 %v2725_v57  ;;  %vm5548_vm1 = vcmp.lt.f32.partialorder %v2746_v31, 0.0 }
  0x87   : > { %5533 = vst [vmem:[#allocation79_spill] sm:$0xff] %v2831_v17  ;;  %5534 = vst [vmem:[#allocation80_spill] sm:$0xff] %v2834_v16  ;;  %v463_v22 = vsel %vm367_vm2, %v5537_v35, %v431_v15  ;;  %v5539_v17 = vceil.f32 %v2719_v55  ;;  %v2928_v24 = vsel %vm370_vm5, %v5540_v34, %v434_v28  ;;  %v5542_v35 = vceil.f32 %v2728_v58 }
  0x88   : > { %v464_v16 = vsel %vm368_vm3, %v5538_v21, %v432_v13  ;;  %v2934_v15 = vsel %vm371_vm6, %v5541_v26, %v435_v12  ;;  %v5545_v12 = vceil.f32 %v2740_v63  ;;  %vm5550_vm2 = vcmp.lt.f32.partialorder %v2749_v32, 0.0 }
  0x89   : > { %v465_v23 = vsel %vm369_vm4, %v5539_v17, %v433_v27  ;;  %v2940_v13 = vsel %vm372_vm7, %v5542_v35, %v436_v11  ;;  %v5543_v17 = vceil.f32 %v2734_v61  ;;  %v5544_v27 = vceil.f32 %v2737_v62  ;;  %v3228_v62 = vld [vmem:[%s2561_s3 + $0xf8] sm:$0xff] }
  0x8a   : > { %v2958_v34 = vsel %vm5546_vm0, %v5545_v12, %v439_v8  ;;  %v5547_v11 = vceil.f32 %v2746_v31  ;;  %vm5552_vm3 = vcmp.lt.f32.partialorder %v2752_v33, 0.0  ;;  %v5553_v8 = vceil.f32 %v2759_v42  ;;  %5633 = vst [vmem:[#allocation106_spill] sm:$0xff] %v3228_v62 }
  0x8b   : > { %v2946_v21 = vsel %vm373_vm8, %v5543_v17, %v437_v10  ;;  %v2952_v28 = vsel %vm374_vm9, %v5544_v27, %v438_v9  ;;  %v5549_v10 = vceil.f32 %v2749_v32  ;;  %v5551_v9 = vceil.f32 %v2752_v33  ;;  %v3204_v32 = vld [vmem:[%s2561_s3 + $0xe0] sm:$0xff] }
  0x8c   : > { %v2964_v26 = vsel %vm5548_vm1, %v5547_v11, %v440_v7  ;;  %vm5554_vm4 = vcmp.lt.f32.partialorder %v2759_v42, 0.0  ;;  %v5555_v7 = vceil.f32 %v2762_v44  ;;  %vm5556_vm5 = vcmp.lt.f32.partialorder %v2762_v44, 0.0  ;;  %5630 = vst [vmem:[#allocation103_spill] sm:$0xff] %v3204_v32 }
  0x8d   : > { %v2970_v35 = vsel %vm5550_vm2, %v5549_v10, %v441_v6  ;;  %v2976_v17 = vsel %vm5552_vm3, %v5551_v9, %v442_v5  ;;  %v2982_v27 = vsel %vm5554_vm4, %v5553_v8, %v443_v4  ;;  %v5557_v6 = vceil.f32 %v2765_v43 }
  0x8e   : > { %v2988_v12 = vsel %vm5556_vm5, %v5555_v7, %v444_v3  ;;  %vm5558_vm6 = vcmp.lt.f32.partialorder %v2765_v43, 0.0  ;;  %v5559_v5 = vceil.f32 %v2772_v59  ;;  %vm5560_vm7 = vcmp.lt.f32.partialorder %v2772_v59, 0.0  ;;  %v3102_v59 = vld [vmem:[%s2561_s3 + $0x68] sm:$0xff] }
  0x8f   : > { %v2994_v11 = vsel %vm5558_vm6, %v5557_v6, %v445_v2  ;;  %v5561_v4 = vceil.f32 %v2775_v0  ;;  %vm5562_vm8 = vcmp.lt.f32.partialorder %v2775_v0, 0.0  ;;  %v5563_v3 = vceil.f32 %v2778_v38  ;;  %v5568_v6 = vld [vmem:[#allocation71_spill] sm:$0xff]  ;;  %5600 = vst [vmem:[#allocation89_spill] sm:$0xff] %v3102_v59 }
  0x90   : > { %v3000_v10 = vsel %vm5560_vm7, %v5559_v5, %v446_v1  ;;  %vm5564_vm9 = vcmp.lt.f32.partialorder %v2778_v38, 0.0  ;;  %v5565_v2 = vceil.f32 %v2785_v39  ;;  %vm5566_vm0 = vcmp.lt.f32.partialorder %v2785_v39, 0.0 }
  0x91   : > { %v3006_v9 = vsel %vm5562_vm8, %v5561_v4, %v447_v29  ;;  %v3012_v8 = vsel %vm5564_vm9, %v5563_v3, %v448_v25  ;;  %v5567_v7 = vceil.f32 %v2788_v45  ;;  %v5569_v5 = vceil.f32 %v5568_v6  ;;  %v5571_v4 = vld [vmem:[#allocation72_spill] sm:$0xff] }
  0x92   : > { %v3018_v1 = vsel %vm5566_vm0, %v5565_v2, %v449_v20  ;;  %vm5570_vm1 = vcmp.lt.f32.partialorder %v5568_v6, 0.0  ;;  %v5572_v3 = vceil.f32 %v5571_v4  ;;  %vm5573_vm2 = vcmp.lt.f32.partialorder %v5571_v4, 0.0  ;;  %v3039_v20 = vld [vmem:[%s2561_s3 + $0x40] sm:$0xff]  ;;  %v5584_v4 = vld [vmem:[#allocation76_spill] sm:$0xff] }
  0x93   : > { %v3024_v29 = vsel %vm386_vm14, %v5567_v7, %v450_v19  ;;  %v3030_v25 = vsel %vm5570_vm1, %v5569_v5, %v451_v18  ;;  %5574 = vst [vmem:[#allocation81_spill] sm:$0xff] %v3039_v20  ;;  %v5575_v2 = vld [vmem:[#allocation73_spill] sm:$0xff]  ;;  %v5578_v7 = vceil.f32 %v2804_v37  ;;  %vm5579_vm14 = vcmp.lt.f32.partialorder %v2804_v37, 0.0  ;;  %v5580_v5 = vld [vmem:[#allocation75_spill] sm:$0xff] }
  0x94   : > { %v3036_v39 = vsel %vm5573_vm2, %v5572_v3, %v452_v14  ;;  %v5576_v38 = vceil.f32 %v5575_v2  ;;  %vm5577_vm3 = vcmp.lt.f32.partialorder %v5575_v2, 0.0  ;;  %v5581_v6 = vceil.f32 %v5580_v5  ;;  %v3060_v3 = vld [vmem:[%s2561_s3 + $0x48] sm:$0xff] }
  0x95   : > { %v3051_v18 = vsel %vm5579_vm14, %v5578_v7, %v454_v60  ;;  %vm5582_vm4 = vcmp.lt.f32.partialorder %v5580_v5, 0.0  ;;  %vm493_vm5 = vcmp.ge.f32.partialorder %v461_v40, 0.0  ;;  %5583 = vst [vmem:[#allocation82_spill] sm:$0xff] %v3060_v3  ;;  %v5585_v2 = vceil.f32 %v5584_v4  ;;  %v3081_v7 = vld [vmem:[%s2561_s3 + $0x60] sm:$0xff]  ;;  %v5591_v5 = vld [vmem:[#allocation78_spill] sm:$0xff] }
  0x96   : > { %v3045_v19 = vsel %vm5577_vm3, %v5576_v38, %v453_v30  ;;  %v3057_v14 = vsel %vm5582_vm4, %v5581_v6, %v455_v54  ;;  %v5586_v30 = vld [vmem:[#allocation77_spill] sm:$0xff]  ;;  %vm494_vm6 = vcmp.ge.f32.partialorder %v462_v36, 0.0  ;;  %vm495_vm7 = vcmp.ge.f32.partialorder %v463_v22, 0.0  ;;  %v3075_v54 = vld [vmem:[%s2561_s3 + $0x50] sm:$0xff]  ;;  %v3078_v6 = vld [vmem:[%s2561_s3 + $0x58] sm:$0xff]  ;;  %5590 = vst [vmem:[#allocation85_spill] sm:$0xff] %v3081_v7 }
  0x97   : > { %v3066_v38 = vsel %vm392_vm10, %v5585_v2, %v456_v46  ;;  %v5587_v37 = vceil.f32 %v5586_v30  ;;  %5588 = vst [vmem:[#allocation83_spill] sm:$0xff] %v3075_v54  ;;  %5589 = vst [vmem:[#allocation84_spill] sm:$0xff] %v3078_v6  ;;  %v5592_v45 = vceil.f32 %v5591_v5  ;;  %v5594_v2 = vld [vmem:[#allocation79_spill] sm:$0xff]  ;;  %vm496_vm10 = vcmp.ge.f32.partialorder %v464_v16, 0.0  ;;  %v5610_v36 = vld [vmem:[#allocation53_spill] sm:$0xff] }
  0x98   : > { %v5595_v4 = vceil.f32 %v5594_v2  ;;  %v5203_v43 = vmov 0.0   ;;  %v598_v40 = vand.u32 2147483647, %v3060_v3  ;;  %v5612_v2 = vld [vmem:[#allocation50_spill] sm:$0xff]  ;;  %vm501_vm8 = vcmp.ge.f32.partialorder %v2946_v21, 0.0 }
  0x99   : > { %v3072_v60 = vsel %vm393_vm11, %v5587_v37, %v457_v53  ;;  %v3087_v46 = vsel %vm394_vm15, %v5592_v45, %v458_v41  ;;  %v5597_v37 = vld [vmem:[#allocation80_spill] sm:$0xff]  ;;  %vm497_vm11 = vcmp.ge.f32.partialorder %v465_v23, 0.0  ;;  %v3106_v41 = vsel %vm493_vm5, 1.0, %v5203_v43 }
  0x9a   : > { %5593 = vst [vmem:[#allocation86_spill] sm:$0xff] %v3087_v46  ;;  %v3093_v53 = vsel %vm395_vm12, %v5595_v4, %v459_v52  ;;  %v5598_v30 = vceil.f32 %v5597_v37  ;;  %5601 = vst [vmem:[#allocation90_spill] sm:$0xff] %v3106_v41  ;;  %v597_v45 = vand.u32 2147483647, %v3039_v20  ;;  %v5602_v52 = vld [vmem:[#allocation51_spill] sm:$0xff]  ;;  %v3119_v16 = vsel %vm495_vm7, 1.0, %v5203_v43 }
  0x9b   : > { %5596 = vst [vmem:[#allocation87_spill] sm:$0xff] %v3093_v53  ;;  %v653_v4 = vmul.f32 1.442695, %v5602_v52  ;;  %v3111_v53 = vld [vmem:[%s2561_s3 + $0x70] sm:$0xff]  ;;  %5605 = vst [vmem:[#allocation92_spill] sm:$0xff] %v3119_v16  ;;  %v5606_v23 = vld [vmem:[#allocation52_spill] sm:$0xff] }
  0x9c   : > { %v3099_v0 = vsel %vm396_vm13, %v5598_v30, %v460_v47  ;;  %5603 = vst [vmem:[#allocation51_spill] sm:$0xff] %v3111_v53  ;;  %v3115_v47 = vsel %vm494_vm6, 1.0, %v5203_v43  ;;  %v655_v30 = vmul.f32 1.442695, %v5606_v23  ;;  %v599_v52 = vand.u32 2147483647, %v3075_v54 }
  0x9d   : > { %5599 = vst [vmem:[#allocation88_spill] sm:$0xff] %v3099_v0  ;;  %5604 = vst [vmem:[#allocation91_spill] sm:$0xff] %v3115_v47  ;;  %v3124_v0 = vsel %vm496_vm10, 1.0, %v5203_v43  ;;  %v5608_v46 = vld [vmem:[#allocation46_spill] sm:$0xff]  ;;  %v657_v47 = vmul.f32 1.442695, %v5610_v36  ;;  %1975 = vpow2.f32 %v653_v4 }
  0x9e   : > { %5607 = vst [vmem:[#allocation52_spill] sm:$0xff] %v3124_v0  ;;  %v5609_v41 = vand.u32 2147483647, %v5608_v46  ;;  %v3131_v22 = vsel %vm497_vm11, 1.0, %v5203_v43  ;;  %v600_v16 = vand.u32 2147483647, %v3078_v6  ;;  %1977 = vpow2.f32 %v655_v30 }
  0x9f   : > { %5611 = vst [vmem:[#allocation53_spill] sm:$0xff] %v3131_v22  ;;  %v5613_v5 = vand.u32 2147483647, %v5612_v2  ;;  %v5614_v23 = vld [vmem:[#allocation54_spill] sm:$0xff]  ;;  %v3138_v0 = vld [vmem:[%s2561_s3 + $0x78] sm:$0xff]  ;;  %v629_v46 = vsub.f32 0.0, %v597_v45  ;;  %1979 = vpow2.f32 %v657_v47 }
  0xa0   : > { %v627_v37 = vsub.f32 0.0, %v5609_v41  ;;  %v659_v20 = vmul.f32 1.442695, %v5614_v23  ;;  %5615 = vst [vmem:[#allocation54_spill] sm:$0xff] %v3138_v0  ;;  %v601_v54 = vand.u32 2147483647, %v3081_v7 }
  0xa1   : > { %v628_v3 = vsub.f32 0.0, %v5613_v5  ;;  %v5616_v41 = vld [vmem:[#allocation55_spill] sm:$0xff]  ;;  %v3143_v36 = vld [vmem:[%s2561_s3 + $0x80] sm:$0xff]  ;;  %v602_v43 = vand.u32 2147483647, %v3102_v59  ;;  %v630_v22 = vsub.f32 0.0, %v598_v40 }
  0xa2   : > { %v661_v44 = vmul.f32 1.442695, %v5616_v41  ;;  %5617 = vst [vmem:[#allocation55_spill] sm:$0xff] %v3143_v36  ;;  %v5618_v6 = vld [vmem:[#allocation59_spill] sm:$0xff]  ;;  %v3148_v23 = vld [vmem:[%s2561_s3 + $0x88] sm:$0xff]  ;;  %v631_v42 = vsub.f32 0.0, %v599_v52  ;;  %1981 = vpow2.f32 %v659_v20 }
  0xa3   : > { %v663_v5 = vmul.f32 1.442695, %v5618_v6  ;;  %5619 = vst [vmem:[#allocation59_spill] sm:$0xff] %v3148_v23  ;;  %v603_v2 = vand.u32 2147483647, %v3111_v53  ;;  %v3152_v4 = vld [vmem:[%s2561_s3 + $0x90] sm:$0xff] }
  0xa4   : > { %v665_v45 = vmul.f32 1.442695, %v627_v37  ;;  %5620 = vst [vmem:[#allocation93_spill] sm:$0xff] %v3152_v4  ;;  %v604_v41 = vand.u32 2147483647, %v3138_v0  ;;  %v632_v7 = vsub.f32 0.0, %v600_v16  ;;  %1983 = vpow2.f32 %v661_v44 }
  0xa5   : > { %v667_v59 = vmul.f32 1.442695, %v628_v3  ;;  %v3156_v40 = vld [vmem:[%s2561_s3 + $0x98] sm:$0xff]  ;;  %v605_v6 = vand.u32 2147483647, %v3143_v36  ;;  %v633_v30 = vsub.f32 0.0, %v601_v54  ;;  %1985 = vpow2.f32 %v663_v5 }
  0xa6   : > { %5621 = vst [vmem:[#allocation94_spill] sm:$0xff] %v3156_v40  ;;  %v669_v33 = vmul.f32 1.442695, %v629_v46  ;;  %v3160_v52 = vld [vmem:[%s2561_s3 + $0xa0] sm:$0xff]  ;;  %v606_v37 = vand.u32 2147483647, %v3148_v23  ;;  %1987 = vpow2.f32 %v665_v45 }
  0xa7   : > { %5622 = vst [vmem:[#allocation95_spill] sm:$0xff] %v3160_v52  ;;  %v634_v47 = vsub.f32 0.0, %v602_v43  ;;  %v671_v53 = vmul.f32 1.442695, %v630_v22  ;;  %v3164_v16 = vld [vmem:[%s2561_s3 + $0xa8] sm:$0xff]  ;;  %v635_v3 = vsub.f32 0.0, %v603_v2  ;;  %1989 = vpow2.f32 %v667_v59  ;;  %v3180_v59 = vpop.eup %1975 }
  0xa8   : > { %5623 = vst [vmem:[#allocation96_spill] sm:$0xff] %v3164_v16  ;;  %v607_v20 = vand.u32 2147483647, %v3152_v4  ;;  %v673_v0 = vmul.f32 1.442695, %v631_v42  ;;  %v3168_v36 = vld [vmem:[%s2561_s3 + $0xb0] sm:$0xff]  ;;  %1991 = vpow2.f32 %v669_v33 }
  0xa9   : > { %5624 = vst [vmem:[#allocation97_spill] sm:$0xff] %v3168_v36  ;;  %v608_v44 = vand.u32 2147483647, %v3156_v40  ;;  %v636_v54 = vsub.f32 0.0, %v604_v41  ;;  %v675_v46 = vmul.f32 1.442695, %v632_v7  ;;  %1993 = vpow2.f32 %v671_v53 }
  0xaa   : > { %v3172_v23 = vld [vmem:[%s2561_s3 + $0xb8] sm:$0xff]  ;;  %v609_v43 = vand.u32 2147483647, %v3160_v52  ;;  %v637_v22 = vsub.f32 0.0, %v605_v6  ;;  %v677_v5 = vmul.f32 1.442695, %v633_v30  ;;  %1995 = vpow2.f32 %v673_v0  ;;  %v3187_v30 = vpop.eup %1977 }
  0xab   : > { %5625 = vst [vmem:[#allocation98_spill] sm:$0xff] %v3172_v23  ;;  %v3176_v4 = vld [vmem:[%s2561_s3 + $0xc0] sm:$0xff]  ;;  %vm498_vm12 = vcmp.ge.f32.partialorder %v2928_v24, 0.0  ;;  %v610_v42 = vand.u32 2147483647, %v3164_v16  ;;  %v638_v2 = vsub.f32 0.0, %v606_v37  ;;  %1997 = vpow2.f32 %v675_v46  ;;  %v3194_v16 = vpop.eup %1979 }
  0xac   : > { %5626 = vst [vmem:[#allocation99_spill] sm:$0xff] %v3176_v4  ;;  %v679_v45 = vmul.f32 1.442695, %v634_v47  ;;  %v3183_v7 = vld [vmem:[%s2561_s3 + $0xc8] sm:$0xff]  ;;  %vm499_vm13 = vcmp.ge.f32.partialorder %v2934_v15, 0.0  ;;  %v639_v41 = vsub.f32 0.0, %v607_v20  ;;  %1999 = vpow2.f32 %v677_v5 }
  0xad   : > { %5627 = vst [vmem:[#allocation100_spill] sm:$0xff] %v3183_v7  ;;  %v611_v33 = vand.u32 2147483647, %v3168_v36  ;;  %v681_v6 = vmul.f32 1.442695, %v635_v3  ;;  %v3190_v52 = vld [vmem:[%s2561_s3 + $0xd0] sm:$0xff]  ;;  %v3201_v36 = vpop.eup %1981 }
  0xae   : > { %5628 = vst [vmem:[#allocation101_spill] sm:$0xff] %v3190_v52  ;;  %vm500_vm15 = vcmp.ge.f32.partialorder %v2940_v13, 0.0  ;;  %v612_v53 = vand.u32 2147483647, %v3172_v23  ;;  %v640_v37 = vsub.f32 0.0, %v608_v44  ;;  %v3197_v40 = vld [vmem:[%s2561_s3 + $0xd8] sm:$0xff]  ;;  %2001 = vpow2.f32 %v679_v45  ;;  %v3209_v23 = vpop.eup %1983 }
  0xaf   : > { %v683_v47 = vmul.f32 1.442695, %v636_v54  ;;  %5629 = vst [vmem:[#allocation102_spill] sm:$0xff] %v3197_v40  ;;  %v613_v0 = vand.u32 2147483647, %v3176_v4  ;;  %v641_v20 = vsub.f32 0.0, %v609_v43  ;;  %2003 = vpow2.f32 %v681_v6  ;;  %v3217_v31 = vpop.eup %1985 }
  0xb0   : > { %v685_v3 = vmul.f32 1.442695, %v637_v22  ;;  %vm502_vm9 = vcmp.ge.f32.partialorder %v2952_v28, 0.0  ;;  %vm503_vm0 = vcmp.ge.f32.partialorder %v2958_v34, 0.0  ;;  %v614_v44 = vand.u32 2147483647, %v3183_v7  ;;  %v3225_v63 = vpop.eup %1987 }
  0xb1   : > { %v642_v54 = vsub.f32 0.0, %v610_v42  ;;  %v687_v46 = vmul.f32 1.442695, %v638_v2  ;;  %v3212_v4 = vld [vmem:[%s2561_s3 + $0xe8] sm:$0xff]  ;;  %vm504_vm1 = vcmp.ge.f32.partialorder %v2964_v26, 0.0  ;;  %vm505_vm2 = vcmp.ge.f32.partialorder %v2970_v35, 0.0 }
  0xb2   : > { %5631 = vst [vmem:[#allocation104_spill] sm:$0xff] %v3212_v4  ;;  %v615_v43 = vand.u32 2147483647, %v3190_v52  ;;  %v643_v22 = vsub.f32 0.0, %v611_v33  ;;  %v689_v5 = vmul.f32 1.442695, %v639_v41  ;;  %2005 = vpow2.f32 %v683_v47  ;;  %v3233_v52 = vpop.eup %1989 }
  0xb3   : > { %v3220_v7 = vld [vmem:[%s2561_s3 + $0xf0] sm:$0xff]  ;;  %vm506_vm3 = vcmp.ge.f32.partialorder %v2976_v17, 0.0  ;;  %vm507_vm14 = vcmp.ge.f32.partialorder %v2982_v27, 0.0  ;;  %v616_v42 = vand.u32 2147483647, %v3197_v40  ;;  %v644_v2 = vsub.f32 0.0, %v612_v53  ;;  %v3238_v40 = vpop.eup %1991 }
  0xb4   : > { %5632 = vst [vmem:[#allocation105_spill] sm:$0xff] %v3220_v7  ;;  %v691_v45 = vmul.f32 1.442695, %v640_v37  ;;  %vm508_vm4 = vcmp.ge.f32.partialorder %v2988_v12, 0.0  ;;  %vm509_vm5 = vcmp.ge.f32.partialorder %v2994_v11, 0.0  ;;  %v645_v41 = vsub.f32 0.0, %v613_v0 }
  0xb5   : > { %v617_v33 = vand.u32 2147483647, %v3204_v32  ;;  %2007 = vpow2.f32 %v685_v3  ;;  %v693_v6 = vmul.f32 1.442695, %v641_v20  ;;  %v618_v53 = vand.u32 2147483647, %v3212_v4  ;;  %v3243_v32 = vpop.eup %1993 }
  0xb6   : > { %v646_v37 = vsub.f32 0.0, %v614_v44  ;;  %2009 = vpow2.f32 %v687_v46  ;;  %v695_v47 = vmul.f32 1.442695, %v642_v54  ;;  %v619_v0 = vand.u32 2147483647, %v3220_v7  ;;  %v3248_v4 = vpop.eup %1995 }
  0xb7   : > { %v647_v20 = vsub.f32 0.0, %v615_v43  ;;  %2011 = vpow2.f32 %v689_v5  ;;  %v697_v3 = vmul.f32 1.442695, %v643_v22  ;;  %v620_v44 = vand.u32 2147483647, %v3228_v62  ;;  %v3257_v61 = vpop.eup %1997 }
  0xb8   : > { %v648_v54 = vsub.f32 0.0, %v616_v42  ;;  %2013 = vpow2.f32 %v691_v45  ;;  %v699_v46 = vmul.f32 1.442695, %v644_v2  ;;  %vm516_vm11 = vcmp.ge.f32.partialorder %v3036_v39, 0.0  ;;  %v3266_v24 = vpop.eup %1999 }
  0xb9   : > { %v5634_v43 = vmov 0.0   ;;  %v649_v5 = vsub.f32 0.0, %v617_v33  ;;  %2015 = vpow2.f32 %v693_v6  ;;  %v701_v7 = vmul.f32 1.442695, %v645_v41  ;;  %v3275_v15 = vpop.eup %2001 }
  0xba   : > { %v3255_v22 = vsel %vm498_vm12, 1.0, %v5634_v43  ;;  %vm518_vm6 = vcmp.ge.f32.partialorder %v3051_v18, 0.0  ;;  %vm519_vm7 = vcmp.ge.f32.partialorder %v3057_v14, 0.0  ;;  %v3264_v42 = vsel %vm499_vm13, 1.0, %v5634_v43 }
  0xbb   : > { %5635 = vst [vmem:[#allocation107_spill] sm:$0xff] %v3255_v22  ;;  %5636 = vst [vmem:[#allocation108_spill] sm:$0xff] %v3264_v42  ;;  %v650_v2 = vsub.f32 0.0, %v618_v53  ;;  %2017 = vpow2.f32 %v695_v47  ;;  %v703_v45 = vmul.f32 1.442695, %v646_v37  ;;  %vm520_vm12 = vcmp.ge.f32.partialorder %v3066_v38, 0.0  ;;  %v3282_v42 = vpop.eup %2003 }
  0xbc   : > { %vm521_vm10 = vcmp.ge.f32.partialorder %v3072_v60, 0.0  ;;  %v3273_v33 = vsel %vm500_vm15, 1.0, %v5634_v43  ;;  %v651_v41 = vsub.f32 0.0, %v619_v0  ;;  %2019 = vpow2.f32 %v697_v3  ;;  %v3294_v21 = vpop.eup %2005  ;;  %v5695_v22 = vld [vmem:[#allocation63_spill] sm:$0xff] }
  0xbd   : > { %5637 = vst [vmem:[#allocation109_spill] sm:$0xff] %v3273_v33  ;;  %v705_v6 = vmul.f32 1.442695, %v647_v20  ;;  %v3280_v53 = vsel %vm501_vm8, 1.0, %v5634_v43  ;;  %v652_v37 = vsub.f32 0.0, %v620_v44  ;;  %2021 = vpow2.f32 %v699_v46 }
  0xbe   : > { %5638 = vst [vmem:[#allocation110_spill] sm:$0xff] %v3280_v53  ;;  %v707_v47 = vmul.f32 1.442695, %v648_v54  ;;  %v3287_v13 = vsel %vm502_vm9, 1.0, %v5634_v43  ;;  %v3292_v0 = vsel %vm503_vm0, 1.0, %v5634_v43  ;;  %2023 = vpow2.f32 %v701_v7 }
  0xbf   : > { %5639 = vst [vmem:[#allocation111_spill] sm:$0xff] %v3287_v13  ;;  %5640 = vst [vmem:[#allocation112_spill] sm:$0xff] %v3292_v0  ;;  %v709_v20 = vmul.f32 1.442695, %v649_v5  ;;  %v3299_v3 = vsel %vm504_vm1, 1.0, %v5634_v43  ;;  %v3304_v28 = vsel %vm505_vm2, 1.0, %v5634_v43  ;;  %2025 = vpow2.f32 %v703_v45  ;;  %v3306_v54 = vpop.eup %2007 }
  0xc0   : > { %5641 = vst [vmem:[#allocation113_spill] sm:$0xff] %v3299_v3  ;;  %5642 = vst [vmem:[#allocation114_spill] sm:$0xff] %v3304_v28  ;;  %v711_v44 = vmul.f32 1.442695, %v650_v2  ;;  %v3311_v34 = vsel %vm506_vm3, 1.0, %v5634_v43  ;;  %v3316_v26 = vsel %vm507_vm14, 1.0, %v5634_v43  ;;  %2027 = vpow2.f32 %v705_v6  ;;  %v3318_v46 = vpop.eup %2009 }
  0xc1   : > { %5643 = vst [vmem:[#allocation115_spill] sm:$0xff] %v3311_v34  ;;  %5644 = vst [vmem:[#allocation116_spill] sm:$0xff] %v3316_v26  ;;  %v713_v7 = vmul.f32 1.442695, %v651_v41  ;;  %v3323_v35 = vsel %vm508_vm4, 1.0, %v5634_v43  ;;  %v3328_v17 = vsel %vm509_vm5, 1.0, %v5634_v43  ;;  %2029 = vpow2.f32 %v707_v47  ;;  %v3330_v2 = vpop.eup %2011 }
  0xc2   : > { %5645 = vst [vmem:[#allocation117_spill] sm:$0xff] %v3323_v35  ;;  %5646 = vst [vmem:[#allocation118_spill] sm:$0xff] %v3328_v17  ;;  %v715_v5 = vmul.f32 1.442695, %v652_v37  ;;  %vm5647_vm13 = vcmp.ge.f32.partialorder %v3000_v10, 0.0  ;;  %vm5649_vm15 = vcmp.ge.f32.partialorder %v3006_v9, 0.0  ;;  %2031 = vpow2.f32 %v709_v20  ;;  %v3343_v11 = vpop.eup %2013 }
  0xc3   : > { %v3335_v27 = vsel %vm5647_vm13, 1.0, %v5634_v43  ;;  %v3340_v12 = vsel %vm5649_vm15, 1.0, %v5634_v43  ;;  %v717_v45 = vadd.f32 1.0, %v3180_v59  ;;  %vm5651_vm8 = vcmp.ge.f32.partialorder %v3012_v8, 0.0  ;;  %v3356_v6 = vpop.eup %2015 }
  0xc4   : > { %5648 = vst [vmem:[#allocation119_spill] sm:$0xff] %v3335_v27  ;;  %5650 = vst [vmem:[#allocation120_spill] sm:$0xff] %v3340_v12  ;;  %v3348_v41 = vsel %vm5651_vm8, 1.0, %v5634_v43  ;;  %vm5653_vm9 = vcmp.ge.f32.partialorder %v3018_v1, 0.0  ;;  %2033 = vpow2.f32 %v711_v44  ;;  %v718_v9 = vadd.f32 1.0, %v3187_v30 }
  0xc5   : > { %5652 = vst [vmem:[#allocation121_spill] sm:$0xff] %v3348_v41  ;;  %v3353_v10 = vsel %vm5653_vm9, 1.0, %v5634_v43  ;;  %vm5655_vm0 = vcmp.ge.f32.partialorder %v3024_v29, 0.0  ;;  %vm5657_vm1 = vcmp.ge.f32.partialorder %v3030_v25, 0.0  ;;  %2035 = vpow2.f32 %v713_v7  ;;  %v3369_v47 = vpop.eup %2017 }
  0xc6   : > { %5654 = vst [vmem:[#allocation122_spill] sm:$0xff] %v3353_v10  ;;  %v3361_v37 = vsel %vm5655_vm0, 1.0, %v5634_v43  ;;  %v3366_v8 = vsel %vm5657_vm1, 1.0, %v5634_v43  ;;  %v719_v1 = vadd.f32 1.0, %v3194_v16  ;;  %5659 = vst [vmem:[#allocation125_spill] sm:$0xff] %v3369_v47  ;;  %v3374_v20 = vsel %vm516_vm11, 1.0, %v5634_v43  ;;  %v3382_v44 = vpop.eup %2019 }
  0xc7   : > { %5656 = vst [vmem:[#allocation123_spill] sm:$0xff] %v3361_v37  ;;  %5658 = vst [vmem:[#allocation124_spill] sm:$0xff] %v3366_v8  ;;  %vm5661_vm2 = vcmp.ge.f32.partialorder %v3045_v19, 0.0  ;;  %2037 = vpow2.f32 %v715_v5  ;;  %v720_v25 = vadd.f32 1.0, %v3201_v36  ;;  %v3387_v7 = vsel %vm518_vm6, 1.0, %v5634_v43  ;;  %v3395_v19 = vpop.eup %2021 }
  0xc8   : > { %5660 = vst [vmem:[#allocation126_spill] sm:$0xff] %v3374_v20  ;;  %v3379_v29 = vsel %vm5661_vm2, 1.0, %v5634_v43  ;;  %5663 = vst [vmem:[#allocation128_spill] sm:$0xff] %v3382_v44  ;;  %v3392_v39 = vsel %vm519_vm7, 1.0, %v5634_v43  ;;  %v721_v20 = vadd.f32 1.0, %v3209_v23  ;;  %2039 = vrcp.f32 %v717_v45  ;;  %v3408_v14 = vpop.eup %2023 }
  0xc9   : > { %5662 = vst [vmem:[#allocation127_spill] sm:$0xff] %v3379_v29  ;;  %5664 = vst [vmem:[#allocation129_spill] sm:$0xff] %v3387_v7  ;;  %v3400_v5 = vsel %vm520_vm12, 1.0, %v5634_v43  ;;  %v3405_v18 = vsel %vm521_vm10, 1.0, %v5634_v43  ;;  %v722_v7 = vadd.f32 1.0, %v3217_v31  ;;  %2041 = vrcp.f32 %v718_v9  ;;  %v3413_v38 = vpop.eup %2025 }
  0xca   : > { %5665 = vst [vmem:[#allocation130_spill] sm:$0xff] %v3392_v39  ;;  %5666 = vst [vmem:[#allocation131_spill] sm:$0xff] %v3395_v19  ;;  %v723_v39 = vadd.f32 1.0, %v3225_v63  ;;  %v724_v45 = vadd.f32 1.0, %v3233_v52  ;;  %v725_v29 = vadd.f32 1.0, %v3238_v40  ;;  %2043 = vrcp.f32 %v719_v1  ;;  %v3418_v43 = vpop.eup %2027 }
  0xcb   : > { %5667 = vst [vmem:[#allocation132_spill] sm:$0xff] %v3400_v5  ;;  %5668 = vst [vmem:[#allocation133_spill] sm:$0xff] %v3405_v18  ;;  %v726_v5 = vadd.f32 1.0, %v3243_v32  ;;  %v727_v60 = vadd.f32 1.0, %v3248_v4  ;;  %v728_v18 = vadd.f32 1.0, %v3257_v61  ;;  %2045 = vrcp.f32 %v720_v25  ;;  %v3427_v1 = vpop.eup %2029 }
  0xcc   : > { %5669 = vst [vmem:[#allocation134_spill] sm:$0xff] %v3408_v14  ;;  %5670 = vst [vmem:[#allocation135_spill] sm:$0xff] %v3413_v38  ;;  %v729_v9 = vadd.f32 1.0, %v3266_v24  ;;  %2047 = vrcp.f32 %v721_v20  ;;  %v3422_v8 = vsub.f32 1.0, %v2701_v48  ;;  %v3425_v37 = vsub.f32 1.0, %v2704_v49  ;;  %v3436_v12 = vpop.eup %2031 }
  0xcd   : > { %5671 = vst [vmem:[#allocation136_spill] sm:$0xff] %v3418_v43  ;;  %5674 = vst [vmem:[#allocation139_spill] sm:$0xff] %v3427_v1  ;;  %v730_v10 = vadd.f32 1.0, %v3275_v15  ;;  %2049 = vrcp.f32 %v722_v7  ;;  %v3431_v41 = vsub.f32 1.0, %v2707_v50  ;;  %v3434_v25 = vsub.f32 1.0, %v2710_v51 }
  0xce   : > { %5672 = vst [vmem:[#allocation137_spill] sm:$0xff] %v3422_v8  ;;  %5673 = vst [vmem:[#allocation138_spill] sm:$0xff] %v3425_v37  ;;  %v731_v20 = vadd.f32 1.0, %v3282_v42  ;;  %2051 = vrcp.f32 %v723_v39  ;;  %v3440_v48 = vsub.f32 1.0, %v2719_v55  ;;  %v3443_v49 = vsub.f32 1.0, %v2722_v56  ;;  %v3445_v27 = vpop.eup %2033  ;;  %v5681_v55 = vld [vmem:[#allocation56_spill] sm:$0xff] }
  0xcf   : > { %5675 = vst [vmem:[#allocation140_spill] sm:$0xff] %v3431_v41  ;;  %5676 = vst [vmem:[#allocation141_spill] sm:$0xff] %v3434_v25  ;;  %v732_v7 = vadd.f32 1.0, %v3294_v21  ;;  %2053 = vrcp.f32 %v724_v45  ;;  %v3449_v50 = vsub.f32 1.0, %v2725_v57  ;;  %v3452_v51 = vsub.f32 1.0, %v2728_v58  ;;  %v3454_v17 = vpop.eup %2035  ;;  %v5683_v56 = vld [vmem:[#allocation57_spill] sm:$0xff] }
  0xd0   : > { %5677 = vst [vmem:[#allocation142_spill] sm:$0xff] %v3440_v48  ;;  %5678 = vst [vmem:[#allocation143_spill] sm:$0xff] %v3443_v49  ;;  %v733_v39 = vadd.f32 1.0, %v3306_v54  ;;  %2055 = vrcp.f32 %v725_v29  ;;  %v3458_v35 = vsub.f32 1.0, %v5681_v55  ;;  %v3461_v26 = vsub.f32 1.0, %v5683_v56  ;;  %v5685_v57 = vld [vmem:[#allocation58_spill] sm:$0xff] }
  0xd1   : > { %5679 = vst [vmem:[#allocation144_spill] sm:$0xff] %v3449_v50  ;;  %5680 = vst [vmem:[#allocation145_spill] sm:$0xff] %v3452_v51  ;;  %v3463_v34 = vpop.eup %2037  ;;  %v734_v45 = vadd.f32 1.0, %v3318_v46  ;;  %2057 = vrcp.f32 %v726_v5  ;;  %v3467_v28 = vsub.f32 1.0, %v5685_v57  ;;  %v5687_v58 = vld [vmem:[#allocation60_spill] sm:$0xff]  ;;  %v735_v29 = vadd.f32 1.0, %v3330_v2 }
  0xd2   : > { %5682 = vst [vmem:[#allocation56_spill] sm:$0xff] %v3458_v35  ;;  %5684 = vst [vmem:[#allocation57_spill] sm:$0xff] %v3461_v26  ;;  %v3470_v3 = vsub.f32 1.0, %v5687_v58  ;;  %v3472_v0 = vpop.eup %2039  ;;  %2059 = vrcp.f32 %v727_v60  ;;  %v5689_v55 = vld [vmem:[#allocation61_spill] sm:$0xff]  ;;  %v5691_v56 = vld [vmem:[#allocation62_spill] sm:$0xff]  ;;  %v736_v5 = vadd.f32 1.0, %v3343_v11 }
  0xd3   : > { %5686 = vst [vmem:[#allocation58_spill] sm:$0xff] %v3467_v28  ;;  %v3476_v13 = vsub.f32 1.0, %v5689_v55  ;;  %v3479_v53 = vsub.f32 1.0, %v5691_v56  ;;  %v3481_v33 = vpop.eup %2041  ;;  %2061 = vrcp.f32 %v728_v18  ;;  %v5693_v57 = vld [vmem:[#allocation24_spill] sm:$0xff]  ;;  %v737_v56 = vadd.f32 1.0, %v3356_v6  ;;  %v5702_v18 = vld [vmem:[#allocation66_spill] sm:$0xff] }
  0xd4   : > { %5688 = vst [vmem:[#allocation60_spill] sm:$0xff] %v3470_v3  ;;  %vm781_vm3 = vcmp.ge.f32.partialorder %v5693_v57, 0.0  ;;  %v5694_v58 = vld [vmem:[#allocation28_spill] sm:$0xff]  ;;  %v3487_v3 = vsub.f32 1.0, %v5695_v22  ;;  %v3492_v55 = vpop.eup %2043  ;;  %2063 = vrcp.f32 %v729_v9  ;;  %v3500_v35 = vsub.f32 1.0, %v5702_v18  ;;  %v5709_v18 = vld [vmem:[#allocation69_spill] sm:$0xff] }
  0xd5   : > { %5690 = vst [vmem:[#allocation61_spill] sm:$0xff] %v3476_v13  ;;  %5692 = vst [vmem:[#allocation62_spill] sm:$0xff] %v3479_v53  ;;  %vm782_vm14 = vcmp.ge.f32.partialorder %v5694_v58, 0.0  ;;  %v5697_v28 = vld [vmem:[#allocation64_spill] sm:$0xff]  ;;  %v5699_v53 = vld [vmem:[#allocation29_spill] sm:$0xff]  ;;  %v3502_v51 = vpop.eup %2045  ;;  %v738_v22 = vadd.f32 1.0, %v3369_v47  ;;  %2065 = vrcp.f32 %v730_v10 }
  0xd6   : > { %5696 = vst [vmem:[#allocation24_spill] sm:$0xff] %v3487_v3  ;;  %v3490_v60 = vsub.f32 1.0, %v5697_v28  ;;  %vm783_vm4 = vcmp.ge.f32.partialorder %v5699_v53, 0.0  ;;  %v5700_v13 = vld [vmem:[#allocation65_spill] sm:$0xff]  ;;  %5703 = vst [vmem:[#allocation64_spill] sm:$0xff] %v3500_v35  ;;  %v5704_v28 = vld [vmem:[#allocation30_spill] sm:$0xff]  ;;  %v3512_v49 = vpop.eup %2047  ;;  %2067 = vrcp.f32 %v731_v20 }
  0xd7   : > { %v3497_v26 = vsub.f32 1.0, %v5700_v13  ;;  %vm784_vm5 = vcmp.ge.f32.partialorder %v5704_v28, 0.0  ;;  %v5707_v50 = vld [vmem:[#allocation68_spill] sm:$0xff]  ;;  %v739_v13 = vadd.f32 1.0, %v3382_v44  ;;  %v3516_v35 = vsub.f32 1.0, %v5709_v18  ;;  %v3521_v10 = vpop.eup %2049  ;;  %v5717_v18 = vld [vmem:[#allocation35_spill] sm:$0xff] }
  0xd8   : > { %5698 = vst [vmem:[#allocation28_spill] sm:$0xff] %v3490_v60  ;;  %v5705_v60 = vld [vmem:[#allocation67_spill] sm:$0xff]  ;;  %v3510_v9 = vsub.f32 1.0, %v5707_v50  ;;  %v740_v25 = vadd.f32 1.0, %v3395_v19  ;;  %2069 = vrcp.f32 %v732_v7  ;;  %v5715_v50 = vld [vmem:[#allocation72_spill] sm:$0xff]  ;;  %v3530_v41 = vpop.eup %2051  ;;  %v741_v20 = vadd.f32 1.0, %v3408_v14 }
  0xd9   : > { %5701 = vst [vmem:[#allocation63_spill] sm:$0xff] %v3497_v26  ;;  %v3507_v3 = vsub.f32 1.0, %v5705_v60  ;;  %5710 = vst [vmem:[#allocation66_spill] sm:$0xff] %v3516_v35  ;;  %v5711_v26 = vld [vmem:[#allocation70_spill] sm:$0xff]  ;;  %v5713_v60 = vld [vmem:[#allocation71_spill] sm:$0xff]  ;;  %2071 = vrcp.f32 %v733_v39  ;;  %vm785_vm6 = vcmp.ge.f32.partialorder %v5717_v18, 0.0  ;;  %v3540_v7 = vpop.eup %2053 }
  0xda   : > { %5708 = vst [vmem:[#allocation65_spill] sm:$0xff] %v3510_v9  ;;  %v3519_v48 = vsub.f32 1.0, %v5711_v26  ;;  %v3528_v9 = vsub.f32 1.0, %v5715_v50  ;;  %v5718_v26 = vld [vmem:[#allocation73_spill] sm:$0xff]  ;;  %v5720_v35 = vld [vmem:[#allocation74_spill] sm:$0xff]  ;;  %2073 = vrcp.f32 %v734_v45  ;;  %v5722_v50 = vld [vmem:[#allocation39_spill] sm:$0xff]  ;;  %v813_v45 = vmul.f32 %v3472_v0, %v3180_v59 }
  0xdb   : > { %5706 = vst [vmem:[#allocation29_spill] sm:$0xff] %v3507_v3  ;;  %v3525_v3 = vsub.f32 1.0, %v5713_v60  ;;  %v3538_v37 = vsub.f32 1.0, %v5720_v35  ;;  %v742_v60 = vadd.f32 1.0, %v3413_v38  ;;  %vm786_vm7 = vcmp.ge.f32.partialorder %v5722_v50, 0.0  ;;  %v5725_v39 = vld [vmem:[#allocation75_spill] sm:$0xff] }
  0xdc   : > { %5712 = vst [vmem:[#allocation30_spill] sm:$0xff] %v3519_v48  ;;  %5716 = vst [vmem:[#allocation68_spill] sm:$0xff] %v3528_v9  ;;  %v3535_v48 = vsub.f32 1.0, %v5718_v26  ;;  %v5723_v9 = vld [vmem:[#allocation46_spill] sm:$0xff]  ;;  %v3547_v8 = vsub.f32 1.0, %v5725_v39  ;;  %v5727_v14 = vld [vmem:[#allocation76_spill] sm:$0xff]  ;;  %2075 = vrcp.f32 %v735_v29  ;;  %v814_v38 = vmul.f32 %v3481_v33, %v3187_v30 }
  0xdd   : > { %5714 = vst [vmem:[#allocation67_spill] sm:$0xff] %v3525_v3  ;;  %5721 = vst [vmem:[#allocation70_spill] sm:$0xff] %v3538_v37  ;;  %vm787_vm10 = vcmp.ge.f32.partialorder %v5723_v9, 0.0  ;;  %v5724_v3 = vld [vmem:[#allocation50_spill] sm:$0xff]  ;;  %v3550_v26 = vsub.f32 1.0, %v5727_v14  ;;  %v743_v35 = vadd.f32 1.0, %v3418_v43  ;;  %2077 = vrcp.f32 %v736_v5 }
  0xde   : > { %5719 = vst [vmem:[#allocation69_spill] sm:$0xff] %v3535_v48  ;;  %vm788_vm11 = vcmp.ge.f32.partialorder %v5724_v3, 0.0  ;;  %5726 = vst [vmem:[#allocation71_spill] sm:$0xff] %v3547_v8  ;;  %v3552_v48 = vpop.eup %2055  ;;  %v5729_v37 = vld [vmem:[#allocation81_spill] sm:$0xff]  ;;  %v5730_v39 = vld [vmem:[#allocation82_spill] sm:$0xff]  ;;  %v815_v14 = vmul.f32 %v3492_v55, %v3194_v16  ;;  %v744_v59 = vadd.f32 1.0, %v3427_v1  ;;  %2079 = vrcp.f32 %v737_v56 }
  0xdf   : > { %5728 = vst [vmem:[#allocation72_spill] sm:$0xff] %v3550_v26  ;;  %vm789_vm12 = vcmp.ge.f32.partialorder %v5729_v37, 0.0  ;;  %v3560_v19 = vpop.eup %2057  ;;  %vm790_vm13 = vcmp.ge.f32.partialorder %v5730_v39, 0.0  ;;  %v5731_v26 = vld [vmem:[#allocation77_spill] sm:$0xff]  ;;  %v5733_v29 = vld [vmem:[#allocation78_spill] sm:$0xff]  ;;  %v816_v30 = vmul.f32 %v3502_v51, %v3201_v36  ;;  %v5735_v5 = vld [vmem:[#allocation79_spill] sm:$0xff]  ;;  %2081 = vrcp.f32 %v738_v22 }
  0xe0   : > { %v3566_v8 = vsub.f32 1.0, %v5731_v26  ;;  %v3569_v43 = vsub.f32 1.0, %v5733_v29  ;;  %v3571_v62 = vpop.eup %2059  ;;  %v3577_v44 = vsub.f32 1.0, %v5735_v5  ;;  %v745_v16 = vadd.f32 1.0, %v3436_v12  ;;  %v5737_v29 = vld [vmem:[#allocation80_spill] sm:$0xff]  ;;  %v5739_v1 = vld [vmem:[#allocation83_spill] sm:$0xff] }
  0xe1   : > { %v3579_v47 = vpop.eup %2061  ;;  %v746_v26 = vadd.f32 1.0, %v3445_v27  ;;  %v747_v56 = vadd.f32 1.0, %v3454_v17  ;;  %2083 = vrcp.f32 %v739_v13  ;;  %vm791_vm15 = vcmp.ge.f32.partialorder %v5739_v1, 0.0  ;;  %v5740_v36 = vld [vmem:[#allocation84_spill] sm:$0xff]  ;;  %v5744_v13 = vld [vmem:[#allocation89_spill] sm:$0xff]  ;;  %v5752_v28 = vld [vmem:[#allocation59_spill] sm:$0xff] }
  0xe2   : > { %5732 = vst [vmem:[#allocation35_spill] sm:$0xff] %v3566_v8  ;;  %5734 = vst [vmem:[#allocation73_spill] sm:$0xff] %v3569_v43  ;;  %v3584_v43 = vsub.f32 1.0, %v5737_v29  ;;  %v3586_v8 = vpop.eup %2063  ;;  %vm792_vm8 = vcmp.ge.f32.partialorder %v5740_v36, 0.0  ;;  %v3594_v5 = vsel %vm781_vm3, %v3472_v0, %v813_v45  ;;  %v3599_v22 = vsel %vm782_vm14, %v3481_v33, %v814_v38  ;;  %v5746_v38 = vld [vmem:[#allocation51_spill] sm:$0xff]  ;;  %v5765_v39 = vld [vmem:[#allocation98_spill] sm:$0xff] }
  0xe3   : > { %5736 = vst [vmem:[#allocation74_spill] sm:$0xff] %v3577_v44  ;;  %5741 = vst [vmem:[#allocation46_spill] sm:$0xff] %v3594_v5  ;;  %v3601_v29 = vpop.eup %2065  ;;  %2085 = vrcp.f32 %v740_v25  ;;  %vm794_vm0 = vcmp.ge.f32.partialorder %v5744_v13, 0.0  ;;  %v817_v44 = vmul.f32 %v3512_v49, %v3209_v23  ;;  %v818_v0 = vmul.f32 %v3521_v10, %v3217_v31  ;;  %v5768_v36 = vld [vmem:[#allocation99_spill] sm:$0xff] }
  0xe4   : > { %5738 = vst [vmem:[#allocation39_spill] sm:$0xff] %v3584_v43  ;;  %5742 = vst [vmem:[#allocation50_spill] sm:$0xff] %v3599_v22  ;;  %v5743_v43 = vld [vmem:[#allocation85_spill] sm:$0xff]  ;;  %v3612_v57 = vsel %vm783_vm4, %v3492_v55, %v815_v14  ;;  %v3614_v33 = vpop.eup %2067  ;;  %2087 = vrcp.f32 %v741_v20  ;;  %vm795_vm1 = vcmp.ge.f32.partialorder %v5746_v38, 0.0  ;;  %v819_v25 = vmul.f32 %v3530_v41, %v3225_v63 }
  0xe5   : > { %vm793_vm9 = vcmp.ge.f32.partialorder %v5743_v43, 0.0  ;;  %5745 = vst [vmem:[#allocation75_spill] sm:$0xff] %v3612_v57  ;;  %v820_v58 = vmul.f32 %v3540_v7, %v3233_v52  ;;  %v3624_v31 = vsel %vm784_vm5, %v3502_v51, %v816_v30  ;;  %v3626_v23 = vpop.eup %2069  ;;  %v748_v53 = vadd.f32 1.0, %v3463_v34  ;;  %v3632_v20 = vld [vmem:[%s2567_s4] sm:$0xff] }
  0xe6   : > { %5747 = vst [vmem:[#allocation76_spill] sm:$0xff] %v3624_v31  ;;  %2089 = vrcp.f32 %v742_v60  ;;  %v821_v55 = vmul.f32 %v3552_v48, %v3238_v40  ;;  %v3635_v63 = vmul.f32 0.25, %v3632_v20  ;;  %v3637_v45 = vpop.eup %2071  ;;  %v822_v52 = vmul.f32 %v3560_v19, %v3243_v32  ;;  %v5749_v60 = vld [vmem:[#allocation54_spill] sm:$0xff]  ;;  %v5751_v32 = vld [vmem:[#allocation55_spill] sm:$0xff] }
  0xe7   : > { %2091 = vrcp.f32 %v743_v35  ;;  %v5294_v51 = vsub.f32 1.0, %v3594_v5  ;;  %v3643_v14 = vpop.eup %2073  ;;  %vm796_vm2 = vcmp.ge.f32.partialorder %v5749_v60, 0.0  ;;  %v3649_v40 = vsel %vm785_vm6, %v3512_v49, %v817_v44  ;;  %v5757_v35 = vld [vmem:[#allocation94_spill] sm:$0xff] }
  0xe8   : > { %5748 = vst [vmem:[#allocation81_spill] sm:$0xff] %v3635_v63  ;;  %2093 = vrcp.f32 %v744_v59  ;;  %5750 = vst [vmem:[#allocation82_spill] sm:$0xff] %v3649_v40  ;;  %v3653_v63 = vpop.eup %2075  ;;  %vm797_vm3 = vcmp.ge.f32.partialorder %v5751_v32, 0.0  ;;  %vm798_vm14 = vcmp.ge.f32.partialorder %v5752_v28, 0.0  ;;  %v3660_v59 = vsel %vm786_vm7, %v3521_v10, %v818_v0  ;;  %v5784_v32 = vld [vmem:[#allocation131_spill] sm:$0xff] }
  0xe9   : > { %2095 = vrcp.f32 %v745_v16  ;;  %5753 = vst [vmem:[#allocation77_spill] sm:$0xff] %v3660_v59  ;;  %v3665_v44 = vsel %vm787_vm10, %v3530_v41, %v819_v25  ;;  %v3670_v49 = vsel %vm788_vm11, %v3540_v7, %v820_v58  ;;  %v3672_v18 = vpop.eup %2077  ;;  %v5756_v16 = vld [vmem:[#allocation93_spill] sm:$0xff]  ;;  %vm800_vm5 = vcmp.ge.f32.partialorder %v5757_v35, 0.0  ;;  %v5759_v7 = vld [vmem:[#allocation95_spill] sm:$0xff] }
  0xea   : > { %5754 = vst [vmem:[#allocation78_spill] sm:$0xff] %v3665_v44  ;;  %5755 = vst [vmem:[#allocation79_spill] sm:$0xff] %v3670_v49  ;;  %2097 = vrcp.f32 %v746_v26  ;;  %vm799_vm4 = vcmp.ge.f32.partialorder %v5756_v16, 0.0  ;;  %v823_v10 = vmul.f32 %v3571_v62, %v3248_v4  ;;  %v824_v9 = vmul.f32 %v3579_v47, %v3257_v61  ;;  %v3685_v3 = vpop.eup %2079  ;;  %v5762_v58 = vld [vmem:[#allocation97_spill] sm:$0xff] }
  0xeb   : > { %v3683_v41 = vsel %vm789_vm12, %v3552_v48, %v821_v55  ;;  %2099 = vrcp.f32 %v747_v56  ;;  %vm801_vm6 = vcmp.ge.f32.partialorder %v5759_v7, 0.0  ;;  %v825_v50 = vmul.f32 %v3586_v8, %v3266_v24  ;;  %v3697_v4 = vpop.eup %2081  ;;  %v5761_v24 = vld [vmem:[#allocation96_spill] sm:$0xff]  ;;  %v5774_v55 = vld [vmem:[#allocation103_spill] sm:$0xff] }
  0xec   : > { %5758 = vst [vmem:[#allocation80_spill] sm:$0xff] %v3683_v41  ;;  %v826_v26 = vmul.f32 %v3601_v29, %v3275_v15  ;;  %v3695_v61 = vsel %vm790_vm13, %v3560_v19, %v822_v52  ;;  %2101 = vrcp.f32 %v748_v53  ;;  %v827_v37 = vmul.f32 %v3614_v33, %v3282_v42  ;;  %v3703_v0 = vpop.eup %2083  ;;  %v5776_v15 = vld [vmem:[#allocation125_spill] sm:$0xff]  ;;  %v5791_v7 = vld [vmem:[#allocation139_spill] sm:$0xff] }
  0xed   : > { %5760 = vst [vmem:[#allocation83_spill] sm:$0xff] %v3695_v61  ;;  %vm802_vm7 = vcmp.ge.f32.partialorder %v5761_v24, 0.0  ;;  %2103 = vlog2.f32 %v3594_v5  ;;  %v3710_v25 = vpop.eup %2085  ;;  %vm803_vm10 = vcmp.ge.f32.partialorder %v5762_v58, 0.0  ;;  %v3716_v42 = vsel %vm791_vm15, %v3571_v62, %v823_v10  ;;  %v5790_v24 = vld [vmem:[#allocation136_spill] sm:$0xff] }
  0xee   : > { %5763 = vst [vmem:[#allocation84_spill] sm:$0xff] %v3716_v42  ;;  %v3721_v53 = vsel %vm792_vm8, %v3579_v47, %v824_v9  ;;  %2105 = vlog2.f32 %v3599_v22  ;;  %v3725_v52 = vpop.eup %2087  ;;  %vm804_vm11 = vcmp.ge.f32.partialorder %v5765_v39, 0.0  ;;  %v828_v19 = vmul.f32 %v3626_v23, %v3294_v21  ;;  %v5770_v9 = vld [vmem:[#allocation100_spill] sm:$0xff] }
  0xef   : > { %5764 = vst [vmem:[#allocation85_spill] sm:$0xff] %v3721_v53  ;;  %v3733_v62 = vsel %vm793_vm9, %v3586_v8, %v825_v50  ;;  %v3738_v47 = vsel %vm794_vm0, %v3601_v29, %v826_v26  ;;  %2107 = vlog2.f32 %v3612_v57  ;;  %vm805_vm12 = vcmp.ge.f32.partialorder %v5768_v36, 0.0  ;;  %v5772_v26 = vld [vmem:[#allocation102_spill] sm:$0xff] }
  0xf0   : > { %5766 = vst [vmem:[#allocation89_spill] sm:$0xff] %v3733_v62  ;;  %5767 = vst [vmem:[#allocation51_spill] sm:$0xff] %v3738_v47  ;;  %v3741_v1 = vpop.eup %2089  ;;  %v829_v10 = vmul.f32 %v3637_v45, %v3306_v54  ;;  %v830_v21 = vmul.f32 %v3643_v14, %v3318_v46  ;;  %v3751_v43 = vsel %vm795_vm1, %v3614_v33, %v827_v37  ;;  %2109 = vlog2.f32 %v3624_v31  ;;  %v5779_v54 = vld [vmem:[#allocation105_spill] sm:$0xff] }
  0xf1   : > { %5769 = vst [vmem:[#allocation54_spill] sm:$0xff] %v3751_v43  ;;  %v3754_v8 = vpop.eup %2091  ;;  %v831_v29 = vmul.f32 %v3653_v63, %v3330_v2  ;;  %v832_v13 = vmul.f32 %v3672_v18, %v3343_v11  ;;  %2111 = vlog2.f32 %v3649_v40  ;;  %vm806_vm13 = vcmp.ge.f32.partialorder %v5770_v9, 0.0  ;;  %v5771_v11 = vld [vmem:[#allocation101_spill] sm:$0xff]  ;;  %v5775_v2 = vld [vmem:[#allocation104_spill] sm:$0xff] }
  0xf2   : > { %v3762_v46 = vpop.eup %2093  ;;  %v833_v33 = vmul.f32 %v3685_v3, %v3356_v6  ;;  %2113 = vlog2.f32 %v3660_v59  ;;  %vm807_vm15 = vcmp.ge.f32.partialorder %v5771_v11, 0.0  ;;  %vm808_vm8 = vcmp.ge.f32.partialorder %v5772_v26, 0.0  ;;  %v5780_v6 = vld [vmem:[#allocation128_spill] sm:$0xff] }
  0xf3   : > { %v3770_v50 = vpop.eup %2095  ;;  %v3777_v37 = vsel %vm796_vm2, %v3626_v23, %v828_v19  ;;  %2115 = vlog2.f32 %v3665_v44  ;;  %vm809_vm9 = vcmp.ge.f32.partialorder %v5774_v55, 0.0  ;;  %vm810_vm0 = vcmp.ge.f32.partialorder %v5775_v2, 0.0 }
  0xf4   : > { %5773 = vst [vmem:[#allocation55_spill] sm:$0xff] %v3777_v37  ;;  %v2098_v38 = vpop.eup %2097  ;;  %v834_v56 = vmul.f32 %v3697_v4, %v5776_v15  ;;  %v3789_v60 = vsel %vm797_vm3, %v3637_v45, %v829_v10  ;;  %v3794_v23 = vsel %vm798_vm14, %v3643_v14, %v830_v21  ;;  %2117 = vlog2.f32 %v3670_v49  ;;  %v5783_v14 = vld [vmem:[#allocation106_spill] sm:$0xff] }
  0xf5   : > { %5777 = vst [vmem:[#allocation59_spill] sm:$0xff] %v3789_v60  ;;  %5778 = vst [vmem:[#allocation93_spill] sm:$0xff] %v3794_v23  ;;  %v2100_v19 = vpop.eup %2099  ;;  %vm811_vm1 = vcmp.ge.f32.partialorder %v5779_v54, 0.0  ;;  %v835_v48 = vmul.f32 %v3703_v0, %v5780_v6  ;;  %v3803_v15 = vsel %vm799_vm4, %v3653_v63, %v831_v29  ;;  %v3808_v45 = vsel %vm800_vm5, %v3672_v18, %v832_v13  ;;  %v5786_v18 = vld [vmem:[#allocation134_spill] sm:$0xff] }
  0xf6   : > { %5781 = vst [vmem:[#allocation94_spill] sm:$0xff] %v3803_v15  ;;  %5782 = vst [vmem:[#allocation95_spill] sm:$0xff] %v3808_v45  ;;  %2119 = vlog2.f32 %v3683_v41  ;;  %v2102_v28 = vpop.eup %2101  ;;  %vm812_vm2 = vcmp.ge.f32.partialorder %v5783_v14, 0.0  ;;  %v836_v10 = vmul.f32 %v3710_v25, %v5784_v32  ;;  %v3817_v21 = vsel %vm801_vm6, %v3685_v3, %v833_v33 }
  0xf7   : > { %5785 = vst [vmem:[#allocation96_spill] sm:$0xff] %v3817_v21  ;;  %2121 = vlog2.f32 %v3695_v61  ;;  %v2104_v35 = vpop.eup %2103  ;;  %v837_v16 = vmul.f32 %v3725_v52, %v5786_v18  ;;  %v3829_v3 = vsel %vm802_vm7, %v3697_v4, %v834_v56  ;;  %v5788_v18 = vld [vmem:[#allocation135_spill] sm:$0xff]  ;;  %v3839_v13 = vsel %vm803_vm10, %v3703_v0, %v835_v48 }
  0xf8   : > { %2123 = vlog2.f32 %v3716_v42  ;;  %v2106_v6 = vpop.eup %2105  ;;  %5787 = vst [vmem:[#allocation97_spill] sm:$0xff] %v3829_v3  ;;  %v838_v63 = vmul.f32 %v3741_v1, %v5788_v18  ;;  %5789 = vst [vmem:[#allocation98_spill] sm:$0xff] %v3839_v13  ;;  %v839_v29 = vmul.f32 %v3754_v8, %v5790_v24  ;;  %v840_v33 = vmul.f32 %v3762_v46, %v5791_v7 }
  0xf9   : > { %2125 = vlog2.f32 %v3721_v53  ;;  %v2108_v32 = vpop.eup %2107  ;;  %v3850_v18 = vsel %vm804_vm11, %v3710_v25, %v836_v10  ;;  %v841_v0 = vmul.f32 %v3770_v50, %v3436_v12  ;;  %v842_v58 = vmul.f32 %v2098_v38, %v3445_v27  ;;  %v3929_v10 = vld [vmem:[%s2567_s4 + $0x8] sm:$0xff] }
  0xfa   : > { %2127 = vlog2.f32 %v3733_v62  ;;  %v2110_v56 = vpop.eup %2109  ;;  %5792 = vst [vmem:[#allocation99_spill] sm:$0xff] %v3850_v18  ;;  %v3859_v24 = vsel %vm805_vm12, %v3725_v52, %v837_v16  ;;  %v843_v39 = vmul.f32 %v2100_v19, %v3454_v17  ;;  %v844_v12 = vmul.f32 %v2102_v28, %v3463_v34  ;;  %5802 = vst [vmem:[#allocation131_spill] sm:$0xff] %v3929_v10 }
  0xfb   : > { %2129 = vlog2.f32 %v3738_v47  ;;  %v2112_v48 = vpop.eup %2111  ;;  %5793 = vst [vmem:[#allocation100_spill] sm:$0xff] %v3859_v24  ;;  %v3870_v27 = vsel %vm806_vm13, %v3741_v1, %v838_v63  ;;  %v3877_v17 = vsel %vm807_vm15, %v3754_v8, %v839_v29  ;;  %v3882_v16 = vsel %vm808_vm8, %v3762_v46, %v840_v33 }
  0xfc   : > { %2131 = vlog2.f32 %v3751_v43  ;;  %v2114_v7 = vpop.eup %2113  ;;  %5794 = vst [vmem:[#allocation101_spill] sm:$0xff] %v3870_v27  ;;  %5795 = vst [vmem:[#allocation102_spill] sm:$0xff] %v3877_v17  ;;  %v3889_v9 = vsel %vm809_vm9, %v3770_v50, %v841_v0  ;;  %v3893_v11 = vsel %vm810_vm0, %v2098_v38, %v842_v58  ;;  %v878_v8 = vmul.f32 0.6931472, %v2104_v35 }
  0xfd   : > { %2133 = vlog2.f32 %v3777_v37  ;;  %v2116_v4 = vpop.eup %2115  ;;  %5796 = vst [vmem:[#allocation103_spill] sm:$0xff] %v3882_v16  ;;  %5797 = vst [vmem:[#allocation104_spill] sm:$0xff] %v3889_v9  ;;  %v3898_v46 = vsel %vm811_vm1, %v2100_v19, %v843_v39  ;;  %v880_v63 = vmul.f32 0.6931472, %v2106_v6  ;;  %v3904_v50 = vsel %vm812_vm2, %v2102_v28, %v844_v12 }
  0xfe   : > { %2135 = vlog2.f32 %v3789_v60  ;;  %v2118_v36 = vpop.eup %2117  ;;  %5798 = vst [vmem:[#allocation125_spill] sm:$0xff] %v3893_v11  ;;  %5799 = vst [vmem:[#allocation105_spill] sm:$0xff] %v3898_v46  ;;  %v882_v54 = vmul.f32 0.6931472, %v2108_v32  ;;  %v884_v0 = vmul.f32 0.6931472, %v2110_v56  ;;  %v3919_v32 = vmul.f32 %v3632_v20, %v5294_v51 }
  0xff   : > { %2137 = vlog2.f32 %v3794_v23  ;;  %5800 = vst [vmem:[#allocation128_spill] sm:$0xff] %v3904_v50  ;;  %v941_v28 = vmax.f32 %v878_v8, -100.0  ;;  %v942_v39 = vmax.f32 %v880_v63, -100.0  ;;  %v886_v6 = vmul.f32 0.6931472, %v2112_v48 }
 0x100   : > { %v2120_v1 = vpop.eup %2119  ;;  %2139 = vlog2.f32 %v3803_v15  ;;  %5801 = vst [vmem:[#allocation106_spill] sm:$0xff] %v3919_v32  ;;  %v888_v2 = vmul.f32 0.6931472, %v2114_v7  ;;  %v890_v56 = vmul.f32 0.6931472, %v2116_v4  ;;  %v943_v63 = vmax.f32 %v882_v54, -100.0 }
 0x101   : > { %v2122_v26 = vpop.eup %2121  ;;  %2141 = vlog2.f32 %v3808_v45  ;;  %v892_v14 = vmul.f32 0.6931472, %v2118_v36  ;;  %v894_v38 = vmul.f32 0.6931472, %v2120_v1  ;;  %v944_v34 = vmax.f32 %v884_v0, -100.0 }
 0x102   : > { %v2124_v55 = vpop.eup %2123  ;;  %2143 = vlog2.f32 %v3817_v21  ;;  %v896_v12 = vmul.f32 0.6931472, %v2122_v26  ;;  %v3925_v52 = vmul.f32 %v3632_v20, %v941_v28  ;;  %v3932_v36 = vmul.f32 %v3929_v10, %v942_v39  ;;  %v3979_v10 = vld [vmem:[%s2567_s4 + $0x40] sm:$0xff] }
 0x103   : > { %v2126_v35 = vpop.eup %2125  ;;  %2145 = vlog2.f32 %v3829_v3  ;;  %v898_v4 = vmul.f32 0.6931472, %v2124_v55  ;;  %v945_v26 = vmax.f32 %v886_v6, -100.0  ;;  %v946_v54 = vmax.f32 %v888_v2, -100.0  ;;  %v3944_v2 = vld [vmem:[%s2567_s4 + $0x18] sm:$0xff]  ;;  %5813 = vst [vmem:[#allocation150_spill] sm:$0xff] %v3979_v10 }
 0x104   : > { %v2128_v33 = vpop.eup %2127  ;;  %2147 = vlog2.f32 %v3839_v13  ;;  %v900_v7 = vmul.f32 0.6931472, %v2126_v35  ;;  %v947_v0 = vmax.f32 %v890_v56, -100.0  ;;  %v948_v28 = vmax.f32 %v892_v14, -100.0  ;;  %v3937_v35 = vld [vmem:[%s2567_s4 + $0x10] sm:$0xff]  ;;  %5804 = vst [vmem:[#allocation135_spill] sm:$0xff] %v3944_v2 }
 0x105   : > { %v2130_v58 = vpop.eup %2129  ;;  %2149 = vlog2.f32 %v3850_v18  ;;  %v949_v55 = vmax.f32 %v894_v38, -100.0  ;;  %5803 = vst [vmem:[#allocation134_spill] sm:$0xff] %v3937_v35  ;;  %v3940_v25 = vmul.f32 %v3937_v35, %v943_v63  ;;  %v902_v30 = vmul.f32 0.6931472, %v2128_v33  ;;  %v3953_v35 = vld [vmem:[%s2567_s4 + $0x20] sm:$0xff] }
 0x106   : > { %v2132_v19 = vpop.eup %2131  ;;  %2151 = vlog2.f32 %v3859_v24  ;;  %v950_v6 = vmax.f32 %v896_v12, -100.0  ;;  %v3947_v56 = vmul.f32 %v3944_v2, %v944_v34  ;;  %v904_v38 = vmul.f32 0.6931472, %v2130_v58  ;;  %5806 = vst [vmem:[#allocation136_spill] sm:$0xff] %v3953_v35  ;;  %v3959_v34 = vld [vmem:[%s2567_s4 + $0x28] sm:$0xff]  ;;  %v3965_v58 = vld [vmem:[%s2567_s4 + $0x30] sm:$0xff] }
 0x107   : > { %v2134_v8 = vpop.eup %2133  ;;  %2153 = vlog2.f32 %v3870_v27  ;;  %v951_v63 = vmax.f32 %v898_v4, -100.0  ;;  %v952_v51 = vmax.f32 %v900_v7, -100.0  ;;  %v5805_v33 = vsub.f32 1.0, %v3594_v5  ;;  %5807 = vst [vmem:[#allocation139_spill] sm:$0xff] %v3959_v34  ;;  %5809 = vst [vmem:[#allocation147_spill] sm:$0xff] %v3965_v58 }
 0x108   : > { %v2136_v29 = vpop.eup %2135  ;;  %2155 = vlog2.f32 %v3877_v17  ;;  %v3956_v12 = vmul.f32 %v3953_v35, %v945_v26  ;;  %v3962_v2 = vmul.f32 %v3959_v34, %v946_v54  ;;  %v3968_v4 = vmul.f32 %v3965_v58, %v947_v0  ;;  %v3973_v26 = vld [vmem:[%s2567_s4 + $0x38] sm:$0xff] }
 0x109   : > { %v2138_v48 = vpop.eup %2137  ;;  %2157 = vlog2.f32 %v3882_v16  ;;  %v906_v5 = vmul.f32 0.6931472, %v2132_v19  ;;  %5812 = vst [vmem:[#allocation149_spill] sm:$0xff] %v3973_v26  ;;  %v3976_v35 = vmul.f32 %v3973_v26, %v948_v28  ;;  %v3982_v54 = vmul.f32 %v3979_v10, %v949_v55  ;;  %v3987_v19 = vld [vmem:[%s2567_s4 + $0x48] sm:$0xff]  ;;  %v3995_v26 = vld [vmem:[%s2567_s4 + $0x50] sm:$0xff] }
 0x10a   : > { %v2140_v1 = vpop.eup %2139  ;;  %2159 = vlog2.f32 %v3889_v9  ;;  %5808 = vst [vmem:[#allocation146_spill] sm:$0xff] %v3962_v2  ;;  %5810 = vst [vmem:[#allocation148_spill] sm:$0xff] %v3968_v4  ;;  %v908_v0 = vmul.f32 0.6931472, %v2134_v8  ;;  %v953_v58 = vmax.f32 %v902_v30, -100.0  ;;  %v5815_v4 = vsub.f32 1.0, %v3612_v57 }
 0x10b   : > { %v2142_v20 = vpop.eup %2141  ;;  %2161 = vlog2.f32 %v3893_v11  ;;  %5814 = vst [vmem:[#allocation151_spill] sm:$0xff] %v3982_v54  ;;  %5816 = vst [vmem:[#allocation152_spill] sm:$0xff] %v3987_v19  ;;  %v954_v2 = vmax.f32 %v904_v38, -100.0  ;;  %v5818_v28 = vsub.f32 1.0, %v3624_v31  ;;  %v3998_v55 = vmul.f32 %v3995_v26, %v951_v63  ;;  %v4001_v8 = vld [vmem:[%s2567_s4 + $0x58] sm:$0xff] }
 0x10c   : > { %v2144_v39 = vpop.eup %2143  ;;  %2163 = vlog2.f32 %v3898_v46  ;;  %5819 = vst [vmem:[#allocation154_spill] sm:$0xff] %v3995_v26  ;;  %5821 = vst [vmem:[#allocation156_spill] sm:$0xff] %v4001_v8  ;;  %v4004_v30 = vmul.f32 %v4001_v8, %v952_v51  ;;  %v910_v10 = vmul.f32 0.6931472, %v2136_v29  ;;  %v5822_v38 = vsub.f32 1.0, %v3649_v40  ;;  %v4013_v29 = vld [vmem:[%s2567_s4 + $0x60] sm:$0xff] }
 0x10d   : > { %v2146_v14 = vpop.eup %2145  ;;  %2165 = vlog2.f32 %v3904_v50  ;;  %5820 = vst [vmem:[#allocation155_spill] sm:$0xff] %v3998_v55  ;;  %v916_v31 = vmul.f32 0.6931472, %v2142_v20  ;;  %v918_v57 = vmul.f32 0.6931472, %v2144_v39  ;;  %v5823_v63 = vsub.f32 1.0, %v3660_v59 }
 0x10e   : > { %v2148_v32 = vpop.eup %2147  ;;  %2167 = vlog2.f32 %v5805_v33  ;;  %v5811_v33 = vsub.f32 1.0, %v3599_v22  ;;  %v920_v55 = vmul.f32 0.6931472, %v2146_v14  ;;  %v956_v54 = vmax.f32 %v908_v0, -100.0  ;;  %5825 = vst [vmem:[#allocation157_spill] sm:$0xff] %v4013_v29  ;;  %v4021_v39 = vld [vmem:[%s2567_s4 + $0x68] sm:$0xff] }
 0x10f   : > { %v2150_v7 = vpop.eup %2149  ;;  %v5824_v51 = vsub.f32 1.0, %v3665_v44  ;;  %5827 = vst [vmem:[#allocation158_spill] sm:$0xff] %v4021_v39  ;;  %v4024_v14 = vmul.f32 %v4021_v39, %v954_v2  ;;  %v960_v44 = vmax.f32 %v916_v31, -100.0 }
 0x110   : > { %2169 = vlog2.f32 %v5811_v33  ;;  %v2152_v34 = vpop.eup %2151  ;;  %v3990_v33 = vmul.f32 %v3987_v19, %v950_v6  ;;  %v912_v6 = vmul.f32 0.6931472, %v2138_v48  ;;  %v914_v19 = vmul.f32 0.6931472, %v2140_v1 }
 0x111   : > { %2171 = vlog2.f32 %v5815_v4  ;;  %v2154_v22 = vpop.eup %2153  ;;  %v4016_v48 = vmul.f32 %v4013_v29, %v953_v58  ;;  %v924_v20 = vmul.f32 0.6931472, %v2150_v7  ;;  %v5828_v58 = vsub.f32 1.0, %v3683_v41 }
 0x112   : > { %5817 = vst [vmem:[#allocation153_spill] sm:$0xff] %v3990_v33  ;;  %2173 = vlog2.f32 %v5818_v28  ;;  %v2156_v4 = vpop.eup %2155  ;;  %v955_v33 = vmax.f32 %v906_v5, -100.0  ;;  %v5826_v5 = vsub.f32 1.0, %v3670_v49  ;;  %v959_v8 = vmax.f32 %v914_v19, -100.0 }
 0x113   : > { %2175 = vlog2.f32 %v5822_v38  ;;  %v2158_v28 = vpop.eup %2157  ;;  %v922_v38 = vmul.f32 0.6931472, %v2148_v32  ;;  %v961_v32 = vmax.f32 %v918_v57, -100.0  ;;  %v5829_v7 = vsub.f32 1.0, %v3695_v61 }
 0x114   : > { %2177 = vlog2.f32 %v5823_v63  ;;  %v2160_v26 = vpop.eup %2159  ;;  %v957_v63 = vmax.f32 %v910_v10, -100.0  ;;  %v926_v10 = vmul.f32 0.6931472, %v2152_v34  ;;  %v962_v19 = vmax.f32 %v920_v55, -100.0 }
 0x115   : > { %2179 = vlog2.f32 %v5824_v51  ;;  %v2162_v1 = vpop.eup %2161  ;;  %v958_v51 = vmax.f32 %v912_v6, -100.0  ;;  %v5831_v6 = vsub.f32 1.0, %v3716_v42  ;;  %v963_v61 = vmax.f32 %v922_v38, -100.0  ;;  %v4049_v42 = vld [vmem:[%s2567_s4 + $0x80] sm:$0xff]  ;;  %v4061_v38 = vld [vmem:[%s2567_s4 + $0x90] sm:$0xff] }
 0x116   : > { %2181 = vlog2.f32 %v5826_v5  ;;  %v2164_v0 = vpop.eup %2163  ;;  %v4031_v5 = vld [vmem:[%s2567_s4 + $0x70] sm:$0xff]  ;;  %v5834_v55 = vsub.f32 1.0, %v3733_v62  ;;  %5835 = vst [vmem:[#allocation161_spill] sm:$0xff] %v4049_v42  ;;  %5837 = vst [vmem:[#allocation163_spill] sm:$0xff] %v4061_v38  ;;  %v4075_v62 = vld [vmem:[%s2567_s4 + $0xa0] sm:$0xff] }
 0x117   : > { %2183 = vlog2.f32 %v5828_v58  ;;  %v2166_v29 = vpop.eup %2165  ;;  %5830 = vst [vmem:[#allocation159_spill] sm:$0xff] %v4031_v5  ;;  %v4034_v2 = vmul.f32 %v4031_v5, %v955_v33  ;;  %v4039_v58 = vld [vmem:[%s2567_s4 + $0x78] sm:$0xff]  ;;  %v964_v33 = vmax.f32 %v924_v20, -100.0  ;;  %v5833_v5 = vsub.f32 1.0, %v3721_v53  ;;  %5840 = vst [vmem:[#allocation165_spill] sm:$0xff] %v4075_v62 }
 0x118   : > { %2185 = vlog2.f32 %v5829_v7  ;;  %v2168_v39 = vpop.eup %2167  ;;  %5832 = vst [vmem:[#allocation160_spill] sm:$0xff] %v4039_v58  ;;  %v4042_v57 = vmul.f32 %v4039_v58, %v956_v54  ;;  %v928_v7 = vmul.f32 0.6931472, %v2154_v22  ;;  %v4055_v54 = vld [vmem:[%s2567_s4 + $0x88] sm:$0xff]  ;;  %v4064_v20 = vmul.f32 %v4061_v38, %v959_v8 }
 0x119   : > { %2187 = vlog2.f32 %v5831_v6  ;;  %v4052_v6 = vmul.f32 %v4049_v42, %v957_v63  ;;  %5836 = vst [vmem:[#allocation162_spill] sm:$0xff] %v4055_v54  ;;  %v4058_v22 = vmul.f32 %v4055_v54, %v958_v51  ;;  %v930_v58 = vmul.f32 0.6931472, %v2156_v4  ;;  %v4069_v63 = vld [vmem:[%s2567_s4 + $0x98] sm:$0xff]  ;;  %v4083_v4 = vld [vmem:[%s2567_s4 + $0xa8] sm:$0xff] }
 0x11a   : > { %v2170_v31 = vpop.eup %2169  ;;  %2189 = vlog2.f32 %v5833_v5  ;;  %5839 = vst [vmem:[#allocation164_spill] sm:$0xff] %v4069_v63  ;;  %v4072_v42 = vmul.f32 %v4069_v63, %v960_v44  ;;  %v4078_v51 = vmul.f32 %v4075_v62, %v961_v32  ;;  %v932_v8 = vmul.f32 0.6931472, %v2158_v28  ;;  %5843 = vst [vmem:[#allocation167_spill] sm:$0xff] %v4083_v4  ;;  %v4091_v63 = vld [vmem:[%s2567_s4 + $0xb0] sm:$0xff]  ;;  %v4097_v28 = vld [vmem:[%s2567_s4 + $0xb8] sm:$0xff] }
 0x11b   : > { %v2172_v34 = vpop.eup %2171  ;;  %2191 = vlog2.f32 %v5834_v55  ;;  %v5838_v55 = vsub.f32 1.0, %v3738_v47  ;;  %v965_v38 = vmax.f32 %v926_v10, -100.0  ;;  %v5842_v53 = vsub.f32 1.0, %v3751_v43  ;;  %5846 = vst [vmem:[#allocation169_spill] sm:$0xff] %v4091_v63  ;;  %5848 = vst [vmem:[#allocation171_spill] sm:$0xff] %v4097_v28 }
 0x11c   : > { %v2174_v5 = vpop.eup %2173  ;;  %5841 = vst [vmem:[#allocation166_spill] sm:$0xff] %v4078_v51  ;;  %v966_v41 = vmax.f32 %v928_v7, -100.0  ;;  %v5845_v44 = vsub.f32 1.0, %v3777_v37  ;;  %v4094_v32 = vmul.f32 %v4091_v63, %v963_v61  ;;  %v934_v62 = vmul.f32 0.6931472, %v2160_v26  ;;  %v4109_v26 = vld [vmem:[%s2567_s4 + $0xc0] sm:$0xff] }
 0x11d   : > { %2193 = vlog2.f32 %v5838_v55  ;;  %v2176_v54 = vpop.eup %2175  ;;  %v4086_v55 = vmul.f32 %v4083_v4, %v962_v19  ;;  %v936_v19 = vmul.f32 0.6931472, %v2162_v1  ;;  %v938_v4 = vmul.f32 0.6931472, %v2164_v0  ;;  %5853 = vst [vmem:[#allocation173_spill] sm:$0xff] %v4109_v26 }
 0x11e   : > { %2195 = vlog2.f32 %v5842_v53  ;;  %v2178_v47 = vpop.eup %2177  ;;  %5847 = vst [vmem:[#allocation170_spill] sm:$0xff] %v4094_v32  ;;  %v4100_v53 = vmul.f32 %v4097_v28, %v964_v33  ;;  %v5850_v7 = vsub.f32 1.0, %v3789_v60  ;;  %v940_v37 = vmul.f32 0.6931472, %v2166_v29  ;;  %v5895_v32 = vld [vmem:[#allocation62_spill] sm:$0xff] }
 0x11f   : > { %5844 = vst [vmem:[#allocation168_spill] sm:$0xff] %v4086_v55  ;;  %2197 = vlog2.f32 %v5845_v44  ;;  %v2180_v10 = vpop.eup %2179  ;;  %v967_v43 = vmax.f32 %v930_v58, -100.0  ;;  %v1006_v49 = vmul.f32 0.6931472, %v2168_v39  ;;  %v5851_v61 = vsub.f32 1.0, %v3794_v23  ;;  %v4117_v58 = vld [vmem:[%s2567_s4 + $0xc8] sm:$0xff] }
 0x120   : > { %5849 = vst [vmem:[#allocation172_spill] sm:$0xff] %v4100_v53  ;;  %2199 = vlog2.f32 %v5850_v7  ;;  %v2182_v44 = vpop.eup %2181  ;;  %v968_v59 = vmax.f32 %v932_v8, -100.0  ;;  %v1008_v40 = vmul.f32 0.6931472, %v2170_v31  ;;  %v5852_v33 = vsub.f32 1.0, %v3803_v15  ;;  %5856 = vst [vmem:[#allocation175_spill] sm:$0xff] %v4117_v58 }
 0x121   : > { %2201 = vlog2.f32 %v5851_v61  ;;  %v2184_v63 = vpop.eup %2183  ;;  %v4112_v1 = vmul.f32 %v4109_v26, %v965_v38  ;;  %v1010_v7 = vmul.f32 0.6931472, %v2172_v34  ;;  %v1012_v29 = vmul.f32 0.6931472, %v2174_v5  ;;  %v5880_v23 = vld [vmem:[#allocation140_spill] sm:$0xff] }
 0x122   : > { %2203 = vlog2.f32 %v5852_v33  ;;  %v2186_v0 = vpop.eup %2185  ;;  %v5855_v39 = vsub.f32 1.0, %v3808_v45  ;;  %v4120_v8 = vmul.f32 %v4117_v58, %v966_v41  ;;  %v969_v61 = vmax.f32 %v934_v62, -100.0 }
 0x123   : > { %5854 = vst [vmem:[#allocation174_spill] sm:$0xff] %v4112_v1  ;;  %v2188_v31 = vpop.eup %2187  ;;  %v970_v33 = vmax.f32 %v936_v19, -100.0  ;;  %v971_v28 = vmax.f32 %v938_v4, -100.0  ;;  %v5858_v38 = vsub.f32 1.0, %v3817_v21  ;;  %v972_v15 = vmax.f32 %v940_v37, -100.0  ;;  %v5892_v1 = vld [vmem:[#allocation58_spill] sm:$0xff] }
 0x124   : > { %2205 = vlog2.f32 %v5855_v39  ;;  %5857 = vst [vmem:[#allocation176_spill] sm:$0xff] %v4120_v8  ;;  %v2190_v26 = vpop.eup %2189  ;;  %v5859_v34 = vsub.f32 1.0, %v3829_v3  ;;  %v1069_v5 = vmax.f32 %v1006_v49, -100.0  ;;  %v4127_v39 = vld [vmem:[%s2567_s4 + $0xd0] sm:$0xff]  ;;  %v1014_v62 = vmul.f32 0.6931472, %v2176_v54 }
 0x125   : > { %2207 = vlog2.f32 %v5858_v38  ;;  %5860 = vst [vmem:[#allocation177_spill] sm:$0xff] %v4127_v39  ;;  %v4130_v41 = vmul.f32 %v4127_v39, %v967_v43  ;;  %v2192_v58 = vpop.eup %2191  ;;  %v5862_v4 = vsub.f32 1.0, %v3839_v13  ;;  %v1070_v19 = vmax.f32 %v1008_v40, -100.0  ;;  %v4135_v38 = vld [vmem:[%s2567_s4 + $0xd8] sm:$0xff]  ;;  %v4145_v13 = vld [vmem:[%s2567_s4 + $0xe0] sm:$0xff] }
 0x126   : > { %2209 = vlog2.f32 %v5859_v34  ;;  %5863 = vst [vmem:[#allocation179_spill] sm:$0xff] %v4135_v38  ;;  %v4138_v37 = vmul.f32 %v4135_v38, %v968_v59  ;;  %v1016_v34 = vmul.f32 0.6931472, %v2178_v47  ;;  %v5865_v3 = vsub.f32 1.0, %v3850_v18  ;;  %5867 = vst [vmem:[#allocation181_spill] sm:$0xff] %v4145_v13  ;;  %v4157_v47 = vld [vmem:[%s2567_s4 + $0xf0] sm:$0xff] }
 0x127   : > { %5861 = vst [vmem:[#allocation178_spill] sm:$0xff] %v4130_v41  ;;  %2211 = vlog2.f32 %v5862_v4  ;;  %v2194_v49 = vpop.eup %2193  ;;  %v1071_v43 = vmax.f32 %v1010_v7, -100.0  ;;  %v1072_v39 = vmax.f32 %v1012_v29, -100.0  ;;  %v5866_v54 = vsub.f32 1.0, %v3859_v24  ;;  %v4151_v4 = vld [vmem:[%s2567_s4 + $0xe8] sm:$0xff]  ;;  %5871 = vst [vmem:[#allocation185_spill] sm:$0xff] %v4157_v47 }
 0x128   : > { %5864 = vst [vmem:[#allocation180_spill] sm:$0xff] %v4138_v37  ;;  %2213 = vlog2.f32 %v5865_v3  ;;  %v2196_v21 = vpop.eup %2195  ;;  %v4148_v40 = vmul.f32 %v4145_v13, %v969_v61  ;;  %5869 = vst [vmem:[#allocation183_spill] sm:$0xff] %v4151_v4  ;;  %v4154_v59 = vmul.f32 %v4151_v4, %v970_v33  ;;  %v4160_v3 = vmul.f32 %v4157_v47, %v971_v28  ;;  %v5876_v13 = vld [vmem:[#allocation137_spill] sm:$0xff]  ;;  %v5878_v47 = vld [vmem:[#allocation138_spill] sm:$0xff] }
 0x129   : > { %2215 = vlog2.f32 %v5866_v54  ;;  %v2198_v7 = vpop.eup %2197  ;;  %v1018_v29 = vmul.f32 0.6931472, %v2180_v10  ;;  %v5873_v38 = vsub.f32 1.0, %v3870_v27  ;;  %v4165_v54 = vld [vmem:[%s2567_s4 + $0xf8] sm:$0xff]  ;;  %v4171_v24 = vmul.f32 %v5876_v13, %v1069_v5 }
 0x12a   : > { %5868 = vst [vmem:[#allocation182_spill] sm:$0xff] %v4148_v40  ;;  %5870 = vst [vmem:[#allocation184_spill] sm:$0xff] %v4154_v59  ;;  %v4168_v61 = vmul.f32 %v4165_v54, %v972_v15  ;;  %v2200_v33 = vpop.eup %2199  ;;  %v1020_v4 = vmul.f32 0.6931472, %v2182_v44  ;;  %v5877_v18 = vsub.f32 1.0, %v3877_v17  ;;  %v1073_v28 = vmax.f32 %v1014_v62, -100.0 }
 0x12b   : > { %5872 = vst [vmem:[#allocation186_spill] sm:$0xff] %v4160_v3  ;;  %2217 = vlog2.f32 %v5873_v38  ;;  %5874 = vst [vmem:[#allocation187_spill] sm:$0xff] %v4165_v54  ;;  %v4176_v45 = vmul.f32 %v5878_v47, %v1070_v19  ;;  %v2202_v10 = vpop.eup %2201  ;;  %v5879_v38 = vsub.f32 1.0, %v3882_v16  ;;  %v1074_v27 = vmax.f32 %v1016_v34, -100.0  ;;  %v5881_v54 = vld [vmem:[#allocation141_spill] sm:$0xff]  ;;  %v5888_v40 = vld [vmem:[#allocation144_spill] sm:$0xff] }
 0x12c   : > { %5875 = vst [vmem:[#allocation188_spill] sm:$0xff] %v4168_v61  ;;  %2219 = vlog2.f32 %v5877_v18  ;;  %v4181_v15 = vmul.f32 %v5880_v23, %v1071_v43  ;;  %v4184_v5 = vmul.f32 %v5881_v54, %v1072_v39  ;;  %v2204_v13 = vpop.eup %2203  ;;  %v1022_v44 = vmul.f32 0.6931472, %v2184_v63  ;;  %v5890_v8 = vld [vmem:[#allocation56_spill] sm:$0xff] }
 0x12d   : > { %2221 = vlog2.f32 %v5879_v38  ;;  %v1024_v60 = vmul.f32 0.6931472, %v2186_v0  ;;  %v1026_v17 = vmul.f32 0.6931472, %v2188_v31  ;;  %v5882_v18 = vsub.f32 1.0, %v3889_v9 }
 0x12e   : > { %v2206_v62 = vpop.eup %2205  ;;  %v1028_v19 = vmul.f32 0.6931472, %v2190_v26  ;;  %v1030_v47 = vmul.f32 0.6931472, %v2192_v58  ;;  %v5883_v16 = vsub.f32 1.0, %v3893_v11  ;;  %v1075_v34 = vmax.f32 %v1018_v29, -100.0 }
 0x12f   : > { %2223 = vlog2.f32 %v5882_v18  ;;  %v2208_v38 = vpop.eup %2207  ;;  %v1032_v43 = vmul.f32 0.6931472, %v2194_v49  ;;  %v1034_v23 = vmul.f32 0.6931472, %v2196_v21  ;;  %v5884_v39 = vsub.f32 1.0, %v3898_v46 }
 0x130   : > { %2225 = vlog2.f32 %v5883_v16  ;;  %v1076_v54 = vmax.f32 %v1020_v4, -100.0  ;;  %v2210_v63 = vpop.eup %2209  ;;  %v1036_v0 = vmul.f32 0.6931472, %v2198_v7  ;;  %v1038_v31 = vmul.f32 0.6931472, %v2200_v33  ;;  %v5886_v16 = vld [vmem:[#allocation142_spill] sm:$0xff] }
 0x131   : > { %2227 = vlog2.f32 %v5884_v39  ;;  %v1040_v61 = vmul.f32 0.6931472, %v2202_v10  ;;  %v5885_v18 = vsub.f32 1.0, %v3904_v50  ;;  %v2212_v26 = vpop.eup %2211  ;;  %v1077_v58 = vmax.f32 %v1022_v44, -100.0  ;;  %v5887_v39 = vld [vmem:[#allocation143_spill] sm:$0xff] }
 0x132   : > { %v1078_v9 = vmax.f32 %v1024_v60, -100.0  ;;  %v1079_v11 = vmax.f32 %v1026_v17, -100.0  ;;  %v4195_v29 = vmul.f32 %v5886_v16, %v1073_v28  ;;  %v2214_v49 = vpop.eup %2213  ;;  %v1042_v21 = vmul.f32 0.6931472, %v2204_v13  ;;  %v5889_v17 = vld [vmem:[#allocation145_spill] sm:$0xff] }
 0x133   : > { %2229 = vlog2.f32 %v5885_v18  ;;  %v1080_v3 = vmax.f32 %v1028_v19, -100.0  ;;  %v1081_v46 = vmax.f32 %v1030_v47, -100.0  ;;  %v1170_v4 = vmul.f32 %v5887_v39, %v1074_v27  ;;  %v2216_v59 = vpop.eup %2215  ;;  %v5891_v19 = vld [vmem:[#allocation57_spill] sm:$0xff] }
 0x134   : > { %v1044_v7 = vmul.f32 0.6931472, %v2206_v62  ;;  %v1082_v33 = vmax.f32 %v1032_v43, -100.0  ;;  %v1083_v10 = vmax.f32 %v1034_v23, -100.0  ;;  %v1171_v50 = vmul.f32 %v5888_v40, %v1075_v34  ;;  %v5893_v23 = vld [vmem:[#allocation60_spill] sm:$0xff]  ;;  %v5894_v34 = vld [vmem:[#allocation61_spill] sm:$0xff] }
 0x135   : > { %v2218_v18 = vpop.eup %2217  ;;  %v1084_v37 = vmax.f32 %v1036_v0, -100.0  ;;  %v1085_v44 = vmax.f32 %v1038_v31, -100.0  ;;  %v1086_v60 = vmax.f32 %v1040_v61, -100.0  ;;  %v1172_v41 = vmul.f32 %v5889_v17, %v1076_v54  ;;  %v5896_v17 = vld [vmem:[#allocation24_spill] sm:$0xff] }
 0x136   : > { %v2220_v28 = vpop.eup %2219  ;;  %v1046_v16 = vmul.f32 0.6931472, %v2208_v38  ;;  %v1173_v13 = vmul.f32 %v5890_v8, %v1077_v58  ;;  %v1174_v47 = vmul.f32 %v5891_v19, %v1078_v9  ;;  %v1175_v27 = vmul.f32 %v5892_v1, %v1079_v11  ;;  %v5897_v8 = vld [vmem:[#allocation28_spill] sm:$0xff]  ;;  %v5898_v19 = vld [vmem:[#allocation63_spill] sm:$0xff] }
 0x137   : > { %v2222_v39 = vpop.eup %2221  ;;  %v1048_v62 = vmul.f32 0.6931472, %v2210_v63  ;;  %v1087_v43 = vmax.f32 %v1042_v21, -100.0  ;;  %v1176_v53 = vmul.f32 %v5893_v23, %v1080_v3  ;;  %v1177_v40 = vmul.f32 %v5894_v34, %v1081_v46  ;;  %v5899_v1 = vld [vmem:[#allocation64_spill] sm:$0xff] }
 0x138   : > { %v1050_v31 = vmul.f32 0.6931472, %v2212_v26  ;;  %v1088_v61 = vmax.f32 %v1044_v7, -100.0  ;;  %v1178_v54 = vmul.f32 %v5895_v32, %v1082_v33  ;;  %v1179_v38 = vmul.f32 %v5896_v17, %v1083_v10  ;;  %v5901_v17 = vld [vmem:[#allocation29_spill] sm:$0xff] }
 0x139   : > { %v2224_v0 = vpop.eup %2223  ;;  %v1052_v58 = vmul.f32 0.6931472, %v2214_v49  ;;  %v1180_v9 = vmul.f32 %v5897_v8, %v1084_v37  ;;  %v1181_v11 = vmul.f32 %v5898_v19, %v1085_v44  ;;  %v1182_v63 = vmul.f32 %v5899_v1, %v1086_v60  ;;  %v5902_v8 = vld [vmem:[#allocation65_spill] sm:$0xff] }
 0x13a   : > { %v2226_v55 = vpop.eup %2225  ;;  %v1054_v51 = vmul.f32 0.6931472, %v2216_v59  ;;  %v1056_v3 = vmul.f32 0.6931472, %v2218_v18  ;;  %v1089_v23 = vmax.f32 %v1046_v16, -100.0  ;;  %v4212_v46 = vadd.f32 %v4171_v24, %v3925_v52 }
 0x13b   : > { %v2228_v21 = vpop.eup %2227  ;;  %v1058_v7 = vmul.f32 0.6931472, %v2220_v28  ;;  %v1060_v33 = vmul.f32 0.6931472, %v2222_v39  ;;  %v1090_v10 = vmax.f32 %v1048_v62, -100.0  ;;  %v1183_v49 = vmul.f32 %v5901_v17, %v1087_v43  ;;  %v5905_v62 = vld [vmem:[#allocation66_spill] sm:$0xff] }
 0x13c   : > { %5900 = vst [vmem:[#allocation61_spill] sm:$0xff] %v4212_v46  ;;  %v1062_v32 = vmul.f32 0.6931472, %v2224_v0  ;;  %v1091_v37 = vmax.f32 %v1050_v31, -100.0  ;;  %v1184_v44 = vmul.f32 %v5902_v8, %v1088_v61  ;;  %v4218_v60 = vadd.f32 %v4176_v45, %v3932_v36  ;;  %v5906_v17 = vld [vmem:[#allocation30_spill] sm:$0xff] }
 0x13d   : > { %v2230_v26 = vpop.eup %2229  ;;  %v1064_v59 = vmul.f32 0.6931472, %v2226_v55  ;;  %v1066_v16 = vmul.f32 0.6931472, %v2228_v21  ;;  %v1092_v18 = vmax.f32 %v1052_v58, -100.0  ;;  %v4222_v24 = vadd.f32 %v4181_v15, %v3940_v25  ;;  %v5908_v55 = vld [vmem:[#allocation67_spill] sm:$0xff] }
 0x13e   : > { %5903 = vst [vmem:[#allocation64_spill] sm:$0xff] %v4218_v60  ;;  %v1068_v52 = vmul.f32 0.6931472, %v2230_v26  ;;  %v1093_v39 = vmax.f32 %v1054_v51, -100.0  ;;  %v1094_v28 = vmax.f32 %v1056_v3, -100.0  ;;  %v1185_v43 = vmul.f32 %v5905_v62, %v1089_v23  ;;  %v5910_v15 = vld [vmem:[#allocation146_spill] sm:$0xff] }
 0x13f   : > { %5904 = vst [vmem:[#allocation65_spill] sm:$0xff] %v4222_v24  ;;  %v1095_v0 = vmax.f32 %v1058_v7, -100.0  ;;  %v1096_v31 = vmax.f32 %v1060_v33, -100.0  ;;  %v1186_v61 = vmul.f32 %v5906_v17, %v1090_v10  ;;  %v4228_v45 = vadd.f32 %v4184_v5, %v3947_v56  ;;  %v5912_v3 = vld [vmem:[#allocation68_spill] sm:$0xff]  ;;  %v5915_v56 = vld [vmem:[#allocation69_spill] sm:$0xff]  ;;  %v6019_v60 = vld [vmem:[#allocation59_spill] sm:$0xff] }
 0x140   : > { %v1097_v36 = vmax.f32 %v1062_v32, -100.0  ;;  %v1187_v58 = vmul.f32 %v5908_v55, %v1091_v37  ;;  %v4233_v25 = vadd.f32 %v4195_v29, %v3956_v12  ;;  %v4236_v51 = vadd.f32 %v1170_v4, %v5910_v15  ;;  %v5913_v7 = vld [vmem:[#allocation148_spill] sm:$0xff]  ;;  %v5916_v32 = vld [vmem:[#allocation70_spill] sm:$0xff]  ;;  %v5918_v12 = vld [vmem:[#allocation71_spill] sm:$0xff] }
 0x141   : > { %5907 = vst [vmem:[#allocation66_spill] sm:$0xff] %v4228_v45  ;;  %v1098_v21 = vmax.f32 %v1064_v59, -100.0  ;;  %v1099_v23 = vmax.f32 %v1066_v16, -100.0  ;;  %v1188_v26 = vmul.f32 %v5912_v3, %v1092_v18  ;;  %v4240_v33 = vadd.f32 %v1171_v50, %v5913_v7  ;;  %v5919_v55 = vld [vmem:[#allocation72_spill] sm:$0xff]  ;;  %v5920_v15 = vld [vmem:[#allocation151_spill] sm:$0xff]  ;;  %v5922_v16 = vld [vmem:[#allocation153_spill] sm:$0xff] }
 0x142   : > { %5909 = vst [vmem:[#allocation189_spill] sm:$0xff] %v4233_v25  ;;  %5911 = vst [vmem:[#allocation146_spill] sm:$0xff] %v4236_v51  ;;  %v1100_v10 = vmax.f32 %v1068_v52, -100.0  ;;  %v1189_v5 = vmul.f32 %v5915_v56, %v1093_v39  ;;  %v1190_v17 = vmul.f32 %v5916_v32, %v1094_v28  ;;  %v4245_v37 = vadd.f32 %v1172_v41, %v3976_v35  ;;  %v5924_v50 = vld [vmem:[#allocation35_spill] sm:$0xff]  ;;  %v5929_v41 = vld [vmem:[#allocation73_spill] sm:$0xff] }
 0x143   : > { %5914 = vst [vmem:[#allocation148_spill] sm:$0xff] %v4240_v33  ;;  %v1191_v29 = vmul.f32 %v5918_v12, %v1095_v0  ;;  %v1192_v4 = vmul.f32 %v5919_v55, %v1096_v31  ;;  %v4250_v59 = vadd.f32 %v1173_v13, %v5920_v15  ;;  %v4253_v18 = vadd.f32 %v1174_v47, %v5922_v16  ;;  %v5925_v52 = vld [vmem:[#allocation155_spill] sm:$0xff]  ;;  %v5930_v0 = vld [vmem:[#allocation74_spill] sm:$0xff]  ;;  %v6017_v24 = vld [vmem:[#allocation160_spill] sm:$0xff] }
 0x144   : > { %5917 = vst [vmem:[#allocation190_spill] sm:$0xff] %v4245_v37  ;;  %v1193_v7 = vmul.f32 %v5924_v50, %v1097_v36  ;;  %v4257_v3 = vadd.f32 %v1175_v27, %v5925_v52  ;;  %v4260_v39 = vadd.f32 %v1176_v53, %v4004_v30  ;;  %v4263_v35 = vadd.f32 %v1177_v40, %v4016_v48  ;;  %v5933_v36 = vld [vmem:[#allocation39_spill] sm:$0xff]  ;;  %v5939_v40 = vld [vmem:[#allocation166_spill] sm:$0xff] }
 0x145   : > { %5921 = vst [vmem:[#allocation151_spill] sm:$0xff] %v4250_v59  ;;  %5923 = vst [vmem:[#allocation153_spill] sm:$0xff] %v4253_v18  ;;  %v1194_v28 = vmul.f32 %v5929_v41, %v1098_v21  ;;  %v1195_v31 = vmul.f32 %v5930_v0, %v1099_v23  ;;  %v4268_v13 = vadd.f32 %v1178_v54, %v4024_v14  ;;  %v5941_v54 = vld [vmem:[#allocation168_spill] sm:$0xff]  ;;  %v6009_v59 = vld [vmem:[#allocation158_spill] sm:$0xff]  ;;  %v6020_v46 = vsub.f32 1.0, %v6019_v60 }
 0x146   : > { %5926 = vst [vmem:[#allocation155_spill] sm:$0xff] %v4257_v3  ;;  %5927 = vst [vmem:[#allocation191_spill] sm:$0xff] %v4260_v39  ;;  %v4271_v47 = vadd.f32 %v1179_v38, %v4034_v2  ;;  %v1196_v15 = vmul.f32 %v5933_v36, %v1100_v10  ;;  %v4275_v27 = vadd.f32 %v1180_v9, %v4042_v57  ;;  %v5943_v57 = vld [vmem:[#allocation170_spill] sm:$0xff]  ;;  %v6005_v39 = vld [vmem:[#allocation157_spill] sm:$0xff] }
 0x147   : > { %5928 = vst [vmem:[#allocation192_spill] sm:$0xff] %v4263_v35  ;;  %5931 = vst [vmem:[#allocation193_spill] sm:$0xff] %v4268_v13  ;;  %v4278_v30 = vadd.f32 %v1181_v11, %v4052_v6  ;;  %v4281_v48 = vadd.f32 %v1182_v63, %v4058_v22  ;;  %v4284_v53 = vadd.f32 %v1183_v49, %v4064_v20  ;;  %v5945_v6 = vld [vmem:[#allocation172_spill] sm:$0xff]  ;;  %v5947_v22 = vld [vmem:[#allocation174_spill] sm:$0xff] }
 0x148   : > { %5932 = vst [vmem:[#allocation194_spill] sm:$0xff] %v4271_v47  ;;  %5934 = vst [vmem:[#allocation195_spill] sm:$0xff] %v4275_v27  ;;  %v4287_v14 = vadd.f32 %v1184_v44, %v4072_v42  ;;  %v4290_v2 = vadd.f32 %v1185_v43, %v5939_v40  ;;  %v4293_v38 = vadd.f32 %v1186_v61, %v5941_v54  ;;  %v5949_v20 = vld [vmem:[#allocation176_spill] sm:$0xff]  ;;  %v5951_v42 = vld [vmem:[#allocation178_spill] sm:$0xff] }
 0x149   : > { %5935 = vst [vmem:[#allocation196_spill] sm:$0xff] %v4278_v30  ;;  %5936 = vst [vmem:[#allocation197_spill] sm:$0xff] %v4281_v48  ;;  %v4296_v9 = vadd.f32 %v1187_v58, %v5943_v57  ;;  %v4299_v11 = vadd.f32 %v1188_v26, %v5945_v6  ;;  %v4302_v63 = vadd.f32 %v1189_v5, %v5947_v22  ;;  %v5953_v43 = vld [vmem:[#allocation180_spill] sm:$0xff]  ;;  %v5955_v61 = vld [vmem:[#allocation182_spill] sm:$0xff] }
 0x14a   : > { %5937 = vst [vmem:[#allocation198_spill] sm:$0xff] %v4284_v53  ;;  %5938 = vst [vmem:[#allocation199_spill] sm:$0xff] %v4287_v14  ;;  %v4305_v49 = vadd.f32 %v1190_v17, %v5949_v20  ;;  %v4308_v44 = vadd.f32 %v1191_v29, %v5951_v42  ;;  %v4311_v21 = vadd.f32 %v1192_v4, %v5953_v43  ;;  %v5957_v58 = vld [vmem:[#allocation184_spill] sm:$0xff]  ;;  %v5959_v26 = vld [vmem:[#allocation186_spill] sm:$0xff] }
 0x14b   : > { %5940 = vst [vmem:[#allocation166_spill] sm:$0xff] %v4290_v2  ;;  %5942 = vst [vmem:[#allocation168_spill] sm:$0xff] %v4293_v38  ;;  %v4314_v23 = vadd.f32 %v1193_v7, %v5955_v61  ;;  %v4317_v10 = vadd.f32 %v1194_v28, %v5957_v58  ;;  %v4320_v16 = vadd.f32 %v1195_v31, %v5959_v26  ;;  %v5961_v5 = vld [vmem:[#allocation188_spill] sm:$0xff]  ;;  %v5963_v57 = vld [vmem:[#allocation50_spill] sm:$0xff] }
 0x14c   : > { %5944 = vst [vmem:[#allocation170_spill] sm:$0xff] %v4296_v9  ;;  %5946 = vst [vmem:[#allocation172_spill] sm:$0xff] %v4299_v11  ;;  %v4323_v52 = vadd.f32 %v1196_v15, %v5961_v5  ;;  %v5964_v20 = vsub.f32 1.0, %v5963_v57  ;;  %v5965_v31 = vld [vmem:[#allocation131_spill] sm:$0xff]  ;;  %v5968_v61 = vld [vmem:[#allocation134_spill] sm:$0xff] }
 0x14d   : > { %5948 = vst [vmem:[#allocation174_spill] sm:$0xff] %v4302_v63  ;;  %5950 = vst [vmem:[#allocation176_spill] sm:$0xff] %v4305_v49  ;;  %v5966_v43 = vld [vmem:[#allocation75_spill] sm:$0xff]  ;;  %v5969_v58 = vld [vmem:[#allocation76_spill] sm:$0xff] }
 0x14e   : > { %5952 = vst [vmem:[#allocation178_spill] sm:$0xff] %v4308_v44  ;;  %5954 = vst [vmem:[#allocation180_spill] sm:$0xff] %v4311_v21  ;;  %v4360_v42 = vmul.f32 %v5965_v31, %v5964_v20  ;;  %v5967_v28 = vsub.f32 1.0, %v5966_v43  ;;  %v5970_v26 = vsub.f32 1.0, %v5969_v58  ;;  %v5971_v7 = vld [vmem:[#allocation135_spill] sm:$0xff]  ;;  %v5972_v15 = vld [vmem:[#allocation82_spill] sm:$0xff] }
 0x14f   : > { %5956 = vst [vmem:[#allocation182_spill] sm:$0xff] %v4314_v23  ;;  %5958 = vst [vmem:[#allocation184_spill] sm:$0xff] %v4317_v10  ;;  %v5973_v4 = vsub.f32 1.0, %v5972_v15  ;;  %v5974_v6 = vld [vmem:[#allocation136_spill] sm:$0xff]  ;;  %v5975_v22 = vld [vmem:[#allocation77_spill] sm:$0xff] }
 0x150   : > { %5960 = vst [vmem:[#allocation186_spill] sm:$0xff] %v4320_v16  ;;  %5962 = vst [vmem:[#allocation188_spill] sm:$0xff] %v4323_v52  ;;  %v4365_v54 = vmul.f32 %v5968_v61, %v5967_v28  ;;  %v4370_v5 = vmul.f32 %v5971_v7, %v5970_v26  ;;  %v5976_v29 = vsub.f32 1.0, %v5975_v22  ;;  %v5977_v17 = vld [vmem:[#allocation139_spill] sm:$0xff]  ;;  %v5979_v52 = vld [vmem:[#allocation78_spill] sm:$0xff] }
 0x151   : > { %v4375_v40 = vmul.f32 %v5974_v6, %v5973_v4  ;;  %v5980_v16 = vsub.f32 1.0, %v5979_v52  ;;  %v5981_v10 = vld [vmem:[#allocation147_spill] sm:$0xff]  ;;  %v5985_v44 = vld [vmem:[#allocation149_spill] sm:$0xff]  ;;  %v5987_v49 = vld [vmem:[#allocation80_spill] sm:$0xff] }
 0x152   : > { %v4380_v20 = vmul.f32 %v5977_v17, %v5976_v29  ;;  %v5983_v23 = vld [vmem:[#allocation79_spill] sm:$0xff]  ;;  %v5988_v63 = vsub.f32 1.0, %v5987_v49  ;;  %v5989_v11 = vld [vmem:[#allocation150_spill] sm:$0xff]  ;;  %v5993_v2 = vld [vmem:[#allocation152_spill] sm:$0xff] }
 0x153   : > { %v4385_v28 = vmul.f32 %v5981_v10, %v5980_v16  ;;  %v5984_v21 = vsub.f32 1.0, %v5983_v23  ;;  %v5991_v9 = vld [vmem:[#allocation83_spill] sm:$0xff]  ;;  %v5995_v14 = vld [vmem:[#allocation84_spill] sm:$0xff]  ;;  %v5997_v48 = vld [vmem:[#allocation154_spill] sm:$0xff] }
 0x154   : > { %5978 = vst [vmem:[#allocation50_spill] sm:$0xff] %v4380_v20  ;;  %v4395_v4 = vmul.f32 %v5989_v11, %v5988_v63  ;;  %v5992_v38 = vsub.f32 1.0, %v5991_v9  ;;  %v5996_v53 = vsub.f32 1.0, %v5995_v14  ;;  %v5999_v30 = vld [vmem:[#allocation85_spill] sm:$0xff]  ;;  %v6001_v47 = vld [vmem:[#allocation156_spill] sm:$0xff]  ;;  %v6007_v3 = vld [vmem:[#allocation51_spill] sm:$0xff] }
 0x155   : > { %5982 = vst [vmem:[#allocation75_spill] sm:$0xff] %v4385_v28  ;;  %v4390_v26 = vmul.f32 %v5985_v44, %v5984_v21  ;;  %v6000_v27 = vsub.f32 1.0, %v5999_v30  ;;  %v6003_v13 = vld [vmem:[#allocation89_spill] sm:$0xff]  ;;  %v6008_v18 = vsub.f32 1.0, %v6007_v3  ;;  %v6011_v37 = vld [vmem:[#allocation54_spill] sm:$0xff]  ;;  %v6013_v51 = vld [vmem:[#allocation159_spill] sm:$0xff] }
 0x156   : > { %5990 = vst [vmem:[#allocation82_spill] sm:$0xff] %v4395_v4  ;;  %v4400_v29 = vmul.f32 %v5993_v2, %v5992_v38  ;;  %v4405_v16 = vmul.f32 %v5997_v48, %v5996_v53  ;;  %v6004_v35 = vsub.f32 1.0, %v6003_v13  ;;  %v6012_v33 = vsub.f32 1.0, %v6011_v37  ;;  %v6015_v25 = vld [vmem:[#allocation55_spill] sm:$0xff]  ;;  %v6025_v2 = vld [vmem:[#allocation162_spill] sm:$0xff]  ;;  %v6033_v17 = vld [vmem:[#allocation164_spill] sm:$0xff] }
 0x157   : > { %5986 = vst [vmem:[#allocation76_spill] sm:$0xff] %v4390_v26  ;;  %v4410_v21 = vmul.f32 %v6001_v47, %v6000_v27  ;;  %v4420_v38 = vmul.f32 %v6009_v59, %v6008_v18  ;;  %v6016_v45 = vsub.f32 1.0, %v6015_v25  ;;  %v6021_v47 = vld [vmem:[#allocation161_spill] sm:$0xff]  ;;  %v6027_v59 = vld [vmem:[#allocation94_spill] sm:$0xff]  ;;  %v6029_v44 = vld [vmem:[#allocation163_spill] sm:$0xff] }
 0x158   : > { %5994 = vst [vmem:[#allocation77_spill] sm:$0xff] %v4400_v29  ;;  %5998 = vst [vmem:[#allocation78_spill] sm:$0xff] %v4405_v16  ;;  %v4415_v63 = vmul.f32 %v6005_v39, %v6004_v35  ;;  %v4425_v53 = vmul.f32 %v6013_v51, %v6012_v33  ;;  %v4435_v35 = vmul.f32 %v6021_v47, %v6020_v46  ;;  %v6023_v39 = vld [vmem:[#allocation93_spill] sm:$0xff]  ;;  %v6028_v11 = vsub.f32 1.0, %v6027_v59  ;;  %v6031_v51 = vld [vmem:[#allocation95_spill] sm:$0xff] }
 0x159   : > { %6002 = vst [vmem:[#allocation79_spill] sm:$0xff] %v4410_v21  ;;  %6010 = vst [vmem:[#allocation83_spill] sm:$0xff] %v4420_v38  ;;  %v4430_v27 = vmul.f32 %v6017_v24, %v6016_v45  ;;  %v6024_v48 = vsub.f32 1.0, %v6023_v39  ;;  %v6032_v10 = vsub.f32 1.0, %v6031_v51  ;;  %v6035_v24 = vld [vmem:[#allocation96_spill] sm:$0xff]  ;;  %v6037_v7 = vld [vmem:[#allocation165_spill] sm:$0xff] }
 0x15a   : > { %6006 = vst [vmem:[#allocation80_spill] sm:$0xff] %v4415_v63  ;;  %6014 = vst [vmem:[#allocation84_spill] sm:$0xff] %v4425_v53  ;;  %v4445_v33 = vmul.f32 %v6029_v44, %v6028_v11  ;;  %v6036_v6 = vsub.f32 1.0, %v6035_v24  ;;  %v6039_v47 = vld [vmem:[#allocation97_spill] sm:$0xff]  ;;  %v6041_v31 = vld [vmem:[#allocation167_spill] sm:$0xff] }
 0x15b   : > { %6018 = vst [vmem:[#allocation85_spill] sm:$0xff] %v4430_v27  ;;  %6022 = vst [vmem:[#allocation89_spill] sm:$0xff] %v4435_v35  ;;  %v4440_v18 = vmul.f32 %v6025_v2, %v6024_v48  ;;  %v4450_v45 = vmul.f32 %v6033_v17, %v6032_v10  ;;  %v6040_v61 = vsub.f32 1.0, %v6039_v47  ;;  %v6043_v2 = vld [vmem:[#allocation98_spill] sm:$0xff]  ;;  %v6045_v35 = vld [vmem:[#allocation169_spill] sm:$0xff] }
 0x15c   : > { %6030 = vst [vmem:[#allocation54_spill] sm:$0xff] %v4445_v33  ;;  %v4455_v46 = vmul.f32 %v6037_v7, %v6036_v6  ;;  %v6047_v44 = vld [vmem:[#allocation99_spill] sm:$0xff]  ;;  %v6051_v17 = vld [vmem:[#allocation100_spill] sm:$0xff]  ;;  %v6053_v53 = vld [vmem:[#allocation173_spill] sm:$0xff] }
 0x15d   : > { %6026 = vst [vmem:[#allocation51_spill] sm:$0xff] %v4440_v18  ;;  %6034 = vst [vmem:[#allocation55_spill] sm:$0xff] %v4450_v45  ;;  %v4460_v48 = vmul.f32 %v6041_v31, %v6040_v61  ;;  %v6044_v18 = vsub.f32 1.0, %v6043_v2  ;;  %v6048_v33 = vsub.f32 1.0, %v6047_v44  ;;  %v6049_v27 = vld [vmem:[#allocation171_spill] sm:$0xff]  ;;  %v6052_v45 = vsub.f32 1.0, %v6051_v17 }
 0x15e   : > { %6038 = vst [vmem:[#allocation59_spill] sm:$0xff] %v4455_v46  ;;  %v6055_v7 = vld [vmem:[#allocation101_spill] sm:$0xff]  ;;  %v6057_v38 = vld [vmem:[#allocation175_spill] sm:$0xff]  ;;  %v6059_v31 = vld [vmem:[#allocation102_spill] sm:$0xff] }
 0x15f   : > { %6042 = vst [vmem:[#allocation93_spill] sm:$0xff] %v4460_v48  ;;  %v4465_v11 = vmul.f32 %v6045_v35, %v6044_v18  ;;  %v4470_v10 = vmul.f32 %v6049_v27, %v6048_v33  ;;  %v4475_v6 = vmul.f32 %v6053_v53, %v6052_v45  ;;  %v6056_v46 = vsub.f32 1.0, %v6055_v7  ;;  %v6061_v63 = vld [vmem:[#allocation177_spill] sm:$0xff]  ;;  %v6063_v35 = vld [vmem:[#allocation103_spill] sm:$0xff]  ;;  %v6067_v27 = vld [vmem:[#allocation104_spill] sm:$0xff] }
 0x160   : > { %v6060_v48 = vsub.f32 1.0, %v6059_v31  ;;  %v6065_v21 = vld [vmem:[#allocation179_spill] sm:$0xff]  ;;  %v6069_v16 = vld [vmem:[#allocation181_spill] sm:$0xff] }
 0x161   : > { %6046 = vst [vmem:[#allocation94_spill] sm:$0xff] %v4465_v11  ;;  %6050 = vst [vmem:[#allocation95_spill] sm:$0xff] %v4470_v10  ;;  %v4480_v61 = vmul.f32 %v6057_v38, %v6056_v46  ;;  %v6064_v11 = vsub.f32 1.0, %v6063_v35  ;;  %v6068_v10 = vsub.f32 1.0, %v6067_v27  ;;  %v6071_v53 = vld [vmem:[#allocation125_spill] sm:$0xff]  ;;  %v6073_v29 = vld [vmem:[#allocation183_spill] sm:$0xff] }
 0x162   : > { %6054 = vst [vmem:[#allocation96_spill] sm:$0xff] %v4475_v6  ;;  %v4485_v18 = vmul.f32 %v6061_v63, %v6060_v48  ;;  %v6072_v6 = vsub.f32 1.0, %v6071_v53  ;;  %v6075_v38 = vld [vmem:[#allocation105_spill] sm:$0xff]  ;;  %v6079_v63 = vld [vmem:[#allocation128_spill] sm:$0xff]  ;;  %v6081_v26 = vld [vmem:[#allocation187_spill] sm:$0xff] }
 0x163   : > { %6058 = vst [vmem:[#allocation97_spill] sm:$0xff] %v4480_v61  ;;  %v4490_v33 = vmul.f32 %v6065_v21, %v6064_v11  ;;  %v4495_v45 = vmul.f32 %v6069_v16, %v6068_v10  ;;  %v6076_v61 = vsub.f32 1.0, %v6075_v38  ;;  %v6077_v4 = vld [vmem:[#allocation185_spill] sm:$0xff]  ;;  %v6082_v21 = vld [vmem:[#allocation46_spill] sm:$0xff] }
 0x164   : > { %6062 = vst [vmem:[#allocation98_spill] sm:$0xff] %v4485_v18  ;;  %v4500_v46 = vmul.f32 %v6073_v29, %v6072_v6  ;;  %v6080_v18 = vsub.f32 1.0, %v6079_v63  ;;  %v6084_v10 = vld [vmem:[#allocation138_spill] sm:$0xff]  ;;  %v6086_v29 = vld [vmem:[#allocation141_spill] sm:$0xff] }
 0x165   : > { %6066 = vst [vmem:[#allocation99_spill] sm:$0xff] %v4490_v33  ;;  %6070 = vst [vmem:[#allocation100_spill] sm:$0xff] %v4495_v45  ;;  %v4505_v48 = vmul.f32 %v6077_v4, %v6076_v61  ;;  %v6083_v33 = vld [vmem:[#allocation137_spill] sm:$0xff]  ;;  %v1294_v16 = vmul.f32 %v6084_v10, %v5963_v57  ;;  %v6085_v45 = vld [vmem:[#allocation140_spill] sm:$0xff] }
 0x166   : > { %6074 = vst [vmem:[#allocation101_spill] sm:$0xff] %v4500_v46  ;;  %v4510_v11 = vmul.f32 %v6081_v26, %v6080_v18  ;;  %v1293_v28 = vmul.f32 %v6083_v33, %v6082_v21  ;;  %v1295_v6 = vmul.f32 %v6085_v45, %v5966_v43  ;;  %v1296_v46 = vmul.f32 %v6086_v29, %v5969_v58  ;;  %v6087_v61 = vld [vmem:[#allocation142_spill] sm:$0xff]  ;;  %v6089_v18 = vld [vmem:[#allocation144_spill] sm:$0xff]  ;;  %v6090_v21 = vld [vmem:[#allocation145_spill] sm:$0xff] }
 0x167   : > { %6078 = vst [vmem:[#allocation102_spill] sm:$0xff] %v4505_v48  ;;  %v1297_v4 = vmul.f32 %v6087_v61, %v5972_v15  ;;  %v6088_v48 = vld [vmem:[#allocation143_spill] sm:$0xff]  ;;  %v1299_v26 = vmul.f32 %v6089_v18, %v5979_v52  ;;  %v1300_v33 = vmul.f32 %v6090_v21, %v5983_v23  ;;  %v6091_v57 = vld [vmem:[#allocation56_spill] sm:$0xff]  ;;  %v6092_v43 = vld [vmem:[#allocation57_spill] sm:$0xff] }
 0x168   : > { %v1298_v20 = vmul.f32 %v6088_v48, %v5975_v22  ;;  %v1301_v10 = vmul.f32 %v6091_v57, %v5987_v49  ;;  %v1302_v45 = vmul.f32 %v6092_v43, %v5991_v9  ;;  %v6093_v58 = vld [vmem:[#allocation58_spill] sm:$0xff]  ;;  %v6094_v15 = vld [vmem:[#allocation60_spill] sm:$0xff]  ;;  %v1305_v22 = vmul.f32 %v5894_v34, %v6003_v13 }
 0x169   : > { %v1303_v29 = vmul.f32 %v6093_v58, %v5995_v14  ;;  %v1304_v61 = vmul.f32 %v6094_v15, %v5999_v30  ;;  %v6095_v52 = vld [vmem:[#allocation62_spill] sm:$0xff]  ;;  %v6096_v23 = vld [vmem:[#allocation24_spill] sm:$0xff]  ;;  %v1309_v9 = vmul.f32 %v5898_v19, %v6019_v60  ;;  %v1310_v14 = vmul.f32 %v5899_v1, %v6023_v39  ;;  %v6098_v30 = vld [vmem:[#allocation29_spill] sm:$0xff] }
 0x16a   : > { %v1306_v18 = vmul.f32 %v6095_v52, %v6007_v3  ;;  %v1307_v21 = vmul.f32 %v6096_v23, %v6011_v37  ;;  %v6097_v49 = vld [vmem:[#allocation28_spill] sm:$0xff]  ;;  %v1311_v15 = vmul.f32 %v6098_v30, %v6027_v59  ;;  %v1312_v13 = vmul.f32 %v5902_v8, %v6031_v51  ;;  %v6099_v37 = vld [vmem:[#allocation30_spill] sm:$0xff] }
 0x16b   : > { %v1308_v57 = vmul.f32 %v6097_v49, %v6015_v25  ;;  %v1313_v3 = vmul.f32 %v5905_v62, %v6035_v24  ;;  %v1314_v23 = vmul.f32 %v6099_v37, %v6039_v47  ;;  %v6100_v25 = vld [vmem:[#allocation67_spill] sm:$0xff]  ;;  %v6101_v60 = vld [vmem:[#allocation68_spill] sm:$0xff]  ;;  %v1317_v39 = vmul.f32 %v5915_v56, %v6051_v17  ;;  %v6102_v56 = vld [vmem:[#allocation106_spill] sm:$0xff] }
 0x16c   : > { %v1315_v49 = vmul.f32 %v6100_v25, %v6043_v2  ;;  %v1316_v19 = vmul.f32 %v6101_v60, %v6047_v44  ;;  %v1318_v59 = vmul.f32 %v5916_v32, %v6055_v7  ;;  %v1319_v51 = vmul.f32 %v5918_v12, %v6059_v31  ;;  %v6104_v12 = vld [vmem:[#allocation75_spill] sm:$0xff]  ;;  %v6107_v25 = vld [vmem:[#allocation77_spill] sm:$0xff] }
 0x16d   : > { %v1320_v24 = vmul.f32 %v5919_v55, %v6063_v35  ;;  %v1321_v47 = vmul.f32 %v5924_v50, %v6067_v27  ;;  %v1322_v2 = vmul.f32 %v5929_v41, %v6071_v53  ;;  %v1323_v44 = vmul.f32 %v5930_v0, %v6075_v38  ;;  %v6103_v27 = vld [vmem:[#allocation50_spill] sm:$0xff]  ;;  %v6105_v41 = vld [vmem:[#allocation76_spill] sm:$0xff] }
 0x16e   : > { %v1324_v17 = vmul.f32 %v5933_v36, %v6079_v63  ;;  %v1325_v7 = vadd.f32 %v1293_v28, %v6102_v56  ;;  %v1326_v32 = vadd.f32 %v1294_v16, %v4360_v42  ;;  %v1327_v31 = vadd.f32 %v1295_v6, %v4365_v54  ;;  %v6106_v38 = vld [vmem:[#allocation82_spill] sm:$0xff]  ;;  %v6109_v28 = vld [vmem:[#allocation79_spill] sm:$0xff]  ;;  %v6110_v16 = vld [vmem:[#allocation80_spill] sm:$0xff] }
 0x16f   : > { %v1328_v35 = vadd.f32 %v1296_v46, %v4370_v5  ;;  %v1329_v55 = vadd.f32 %v1297_v4, %v4375_v40  ;;  %v1330_v50 = vadd.f32 %v1298_v20, %v6103_v27  ;;  %v1331_v53 = vadd.f32 %v1299_v26, %v6104_v12  ;;  %v6108_v36 = vld [vmem:[#allocation78_spill] sm:$0xff]  ;;  %v6111_v6 = vld [vmem:[#allocation83_spill] sm:$0xff]  ;;  %v6112_v46 = vld [vmem:[#allocation84_spill] sm:$0xff] }
 0x170   : > { %v1332_v60 = vadd.f32 %v1300_v33, %v6105_v41  ;;  %v1333_v0 = vadd.f32 %v1301_v10, %v6106_v38  ;;  %v1334_v63 = vadd.f32 %v1302_v45, %v6107_v25  ;;  %v1335_v56 = vadd.f32 %v1303_v29, %v6108_v36  ;;  %v6113_v4 = vld [vmem:[#allocation85_spill] sm:$0xff]  ;;  %v6115_v26 = vld [vmem:[#allocation51_spill] sm:$0xff]  ;;  %v6116_v33 = vld [vmem:[#allocation54_spill] sm:$0xff] }
 0x171   : > { %v1336_v42 = vadd.f32 %v1304_v61, %v6109_v28  ;;  %v1337_v54 = vadd.f32 %v1305_v22, %v6110_v16  ;;  %v1338_v5 = vadd.f32 %v1306_v18, %v6111_v6  ;;  %v1339_v40 = vadd.f32 %v1307_v21, %v6112_v46  ;;  %v6114_v27 = vld [vmem:[#allocation89_spill] sm:$0xff]  ;;  %v6117_v38 = vld [vmem:[#allocation55_spill] sm:$0xff]  ;;  %v6120_v28 = vld [vmem:[#allocation94_spill] sm:$0xff] }
 0x172   : > { %v1340_v20 = vadd.f32 %v1308_v57, %v6113_v4  ;;  %v1341_v12 = vadd.f32 %v1309_v9, %v6114_v27  ;;  %v1342_v41 = vadd.f32 %v1310_v14, %v6115_v26  ;;  %v1343_v10 = vadd.f32 %v1311_v15, %v6116_v33  ;;  %v6118_v25 = vld [vmem:[#allocation59_spill] sm:$0xff]  ;;  %v6119_v29 = vld [vmem:[#allocation93_spill] sm:$0xff]  ;;  %v6122_v6 = vld [vmem:[#allocation96_spill] sm:$0xff] }
 0x173   : > { %v1344_v45 = vadd.f32 %v1312_v13, %v6117_v38  ;;  %v1345_v36 = vadd.f32 %v1313_v3, %v6118_v25  ;;  %v1346_v61 = vadd.f32 %v1314_v23, %v6119_v29  ;;  %v1347_v22 = vadd.f32 %v1315_v49, %v6120_v28  ;;  %v6121_v16 = vld [vmem:[#allocation95_spill] sm:$0xff]  ;;  %v6123_v46 = vld [vmem:[#allocation97_spill] sm:$0xff]  ;;  %v6124_v4 = vld [vmem:[#allocation98_spill] sm:$0xff] }
 0x174   : > { %v1348_v18 = vadd.f32 %v1316_v19, %v6121_v16  ;;  %v1349_v21 = vadd.f32 %v1317_v39, %v6122_v6  ;;  %v1350_v57 = vadd.f32 %v1318_v59, %v6123_v46  ;;  %v1351_v9 = vadd.f32 %v1319_v51, %v6124_v4  ;;  %v6125_v27 = vld [vmem:[#allocation99_spill] sm:$0xff]  ;;  %v6126_v26 = vld [vmem:[#allocation100_spill] sm:$0xff]  ;;  %v6127_v33 = vld [vmem:[#allocation101_spill] sm:$0xff] }
 0x175   : > { %v1352_v14 = vadd.f32 %v1320_v24, %v6125_v27  ;;  %v1353_v15 = vadd.f32 %v1321_v47, %v6126_v26  ;;  %v1354_v13 = vadd.f32 %v1322_v2, %v6127_v33  ;;  %v6128_v38 = vld [vmem:[#allocation102_spill] sm:$0xff]  ;;  %v4610_v23 = vadd.f32 %v1324_v17, %v4510_v11 }
 0x176   : > { %v4607_v3 = vadd.f32 %v1323_v44, %v6128_v38  ;;  %v4612_v49 = vmul.f32 %v1325_v7, %v1325_v7  ;;  %v4614_v19 = vmul.f32 %v1326_v32, %v1326_v32  ;;  %v4616_v39 = vmul.f32 %v1327_v31, %v1327_v31 }
 0x177   : > { %6130 = vst [vmem:[#allocation104_spill] sm:$0xff] %v4610_v23  ;;  %v4618_v59 = vmul.f32 %v1328_v35, %v1328_v35  ;;  %v4620_v51 = vmul.f32 %v1329_v55, %v1329_v55  ;;  %v4622_v24 = vmul.f32 %v1330_v50, %v1330_v50  ;;  %v4624_v47 = vmul.f32 %v1331_v53, %v1331_v53 }
 0x178   : > { %6129 = vst [vmem:[#allocation103_spill] sm:$0xff] %v4607_v3  ;;  %v4626_v2 = vmul.f32 %v1332_v60, %v1332_v60  ;;  %v4628_v44 = vmul.f32 %v1333_v0, %v1333_v0  ;;  %v4630_v11 = vmul.f32 %v1334_v63, %v1334_v63  ;;  %v4632_v17 = vmul.f32 %v1335_v56, %v1335_v56 }
 0x179   : > { %v4634_v32 = vmul.f32 %v1336_v42, %v1336_v42  ;;  %v4636_v7 = vmul.f32 %v1337_v54, %v1337_v54  ;;  %v4638_v31 = vmul.f32 %v1338_v5, %v1338_v5  ;;  %v4640_v55 = vmul.f32 %v1339_v40, %v1339_v40 }
 0x17a   : > { %v4642_v50 = vmul.f32 %v1340_v20, %v1340_v20  ;;  %v4644_v35 = vmul.f32 %v1341_v12, %v1341_v12  ;;  %v4646_v60 = vmul.f32 %v1342_v41, %v1342_v41  ;;  %v4648_v0 = vmul.f32 %v1343_v10, %v1343_v10 }
 0x17b   : > { %6131 = vst [vmem:[#allocation125_spill] sm:$0xff] %v4640_v55  ;;  %v4650_v53 = vmul.f32 %v1344_v45, %v1344_v45  ;;  %v4652_v63 = vmul.f32 %v1345_v36, %v1345_v36  ;;  %v4654_v56 = vmul.f32 %v1346_v61, %v1346_v61  ;;  %v4656_v42 = vmul.f32 %v1347_v22, %v1347_v22  ;;  %v6147_v45 = vld [vmem:[#allocation131_spill] sm:$0xff]  ;;  %v6148_v36 = vld [vmem:[#allocation134_spill] sm:$0xff]  ;;  %v6150_v22 = vld [vmem:[#allocation136_spill] sm:$0xff] }
 0x17c   : > { %6132 = vst [vmem:[#allocation105_spill] sm:$0xff] %v4642_v50  ;;  %6133 = vst [vmem:[#allocation128_spill] sm:$0xff] %v4644_v35  ;;  %v4658_v54 = vmul.f32 %v1348_v18, %v1348_v18  ;;  %v4660_v5 = vmul.f32 %v1349_v21, %v1349_v21  ;;  %v4662_v40 = vmul.f32 %v1350_v57, %v1350_v57  ;;  %v1390_v25 = vmul.f32 0.25, %v6147_v45  ;;  %v6149_v61 = vld [vmem:[#allocation135_spill] sm:$0xff]  ;;  %v6153_v57 = vld [vmem:[#allocation149_spill] sm:$0xff] }
 0x17d   : > { %6134 = vst [vmem:[#allocation46_spill] sm:$0xff] %v4646_v60  ;;  %6135 = vst [vmem:[#allocation143_spill] sm:$0xff] %v4648_v0  ;;  %v4664_v20 = vmul.f32 %v1351_v9, %v1351_v9  ;;  %v4666_v12 = vmul.f32 %v1352_v14, %v1352_v14  ;;  %v4668_v41 = vmul.f32 %v1353_v15, %v1353_v15  ;;  %v1391_v29 = vmul.f32 0.25, %v6148_v36  ;;  %v6151_v18 = vld [vmem:[#allocation139_spill] sm:$0xff]  ;;  %v6154_v9 = vld [vmem:[#allocation150_spill] sm:$0xff] }
 0x17e   : > { %6136 = vst [vmem:[#allocation57_spill] sm:$0xff] %v4650_v53  ;;  %6137 = vst [vmem:[#allocation58_spill] sm:$0xff] %v4652_v63  ;;  %v4670_v10 = vmul.f32 %v1354_v13, %v1354_v13  ;;  %v1392_v28 = vmul.f32 0.25, %v6149_v61  ;;  %v1393_v16 = vmul.f32 0.25, %v6150_v22  ;;  %v1394_v6 = vmul.f32 0.25, %v6151_v18  ;;  %v6152_v21 = vld [vmem:[#allocation147_spill] sm:$0xff] }
 0x17f   : > { %6138 = vst [vmem:[#allocation62_spill] sm:$0xff] %v4654_v56  ;;  %6139 = vst [vmem:[#allocation29_spill] sm:$0xff] %v4656_v42  ;;  %v4678_v46 = vmul.f32 0.25, %v6152_v21  ;;  %v4681_v4 = vmul.f32 0.25, %v6153_v57  ;;  %v4684_v27 = vmul.f32 0.25, %v6154_v9  ;;  %v6155_v14 = vld [vmem:[#allocation152_spill] sm:$0xff] }
 0x180   : > { %6140 = vst [vmem:[#allocation30_spill] sm:$0xff] %v4658_v54  ;;  %6141 = vst [vmem:[#allocation106_spill] sm:$0xff] %v4660_v5  ;;  %v4687_v26 = vmul.f32 0.25, %v6155_v14  ;;  %v6156_v15 = vld [vmem:[#allocation154_spill] sm:$0xff]  ;;  %v6157_v13 = vld [vmem:[#allocation156_spill] sm:$0xff] }
 0x181   : > { %6142 = vst [vmem:[#allocation50_spill] sm:$0xff] %v4662_v40  ;;  %6143 = vst [vmem:[#allocation75_spill] sm:$0xff] %v4664_v20  ;;  %v4690_v33 = vmul.f32 0.25, %v6156_v15  ;;  %v4693_v38 = vmul.f32 0.25, %v6157_v13  ;;  %v6158_v45 = vld [vmem:[#allocation157_spill] sm:$0xff]  ;;  %v6159_v61 = vld [vmem:[#allocation158_spill] sm:$0xff] }
 0x182   : > { %6144 = vst [vmem:[#allocation76_spill] sm:$0xff] %v4666_v12  ;;  %6145 = vst [vmem:[#allocation82_spill] sm:$0xff] %v4668_v41  ;;  %v4696_v36 = vmul.f32 0.25, %v6158_v45  ;;  %v4699_v22 = vmul.f32 0.25, %v6159_v61  ;;  %v6160_v18 = vld [vmem:[#allocation159_spill] sm:$0xff]  ;;  %v6161_v57 = vld [vmem:[#allocation160_spill] sm:$0xff] }
 0x183   : > { %6146 = vst [vmem:[#allocation77_spill] sm:$0xff] %v4670_v10  ;;  %v4702_v21 = vmul.f32 0.25, %v6160_v18  ;;  %v4705_v9 = vmul.f32 0.25, %v6161_v57  ;;  %v6162_v14 = vld [vmem:[#allocation161_spill] sm:$0xff]  ;;  %v6163_v15 = vld [vmem:[#allocation162_spill] sm:$0xff]  ;;  %v6164_v13 = vld [vmem:[#allocation163_spill] sm:$0xff] }
 0x184   : > { %v4708_v10 = vmul.f32 0.25, %v6162_v14  ;;  %v4711_v23 = vmul.f32 0.25, %v6163_v15  ;;  %v4714_v41 = vmul.f32 0.25, %v6164_v13  ;;  %v6165_v45 = vld [vmem:[#allocation164_spill] sm:$0xff]  ;;  %v6167_v61 = vld [vmem:[#allocation137_spill] sm:$0xff]  ;;  %v6168_v20 = vld [vmem:[#allocation138_spill] sm:$0xff] }
 0x185   : > { %v4717_v3 = vmul.f32 0.25, %v6165_v45  ;;  %v1421_v12 = vmul.f32 0.75, %v6167_v61  ;;  %v1422_v18 = vmul.f32 0.75, %v6168_v20  ;;  %v6169_v40 = vld [vmem:[#allocation165_spill] sm:$0xff]  ;;  %v6171_v57 = vld [vmem:[#allocation167_spill] sm:$0xff] }
 0x186   : > { %v4722_v5 = vmul.f32 0.25, %v6169_v40  ;;  %v4725_v54 = vmul.f32 0.25, %v6171_v57  ;;  %v6173_v14 = vld [vmem:[#allocation169_spill] sm:$0xff]  ;;  %v6175_v15 = vld [vmem:[#allocation171_spill] sm:$0xff]  ;;  %v6183_v40 = vld [vmem:[#allocation140_spill] sm:$0xff] }
 0x187   : > { %6166 = vst [vmem:[#allocation78_spill] sm:$0xff] %v4717_v3  ;;  %v4728_v42 = vmul.f32 0.25, %v6173_v14  ;;  %v4731_v56 = vmul.f32 0.25, %v6175_v15  ;;  %v6177_v13 = vld [vmem:[#allocation173_spill] sm:$0xff]  ;;  %v6179_v45 = vld [vmem:[#allocation175_spill] sm:$0xff]  ;;  %v1423_v0 = vmul.f32 0.75, %v6183_v40  ;;  %v1454_v35 = vadd.f32 %v1422_v18, %v1390_v25 }
 0x188   : > { %6170 = vst [vmem:[#allocation79_spill] sm:$0xff] %v4722_v5  ;;  %6172 = vst [vmem:[#allocation80_spill] sm:$0xff] %v4725_v54  ;;  %v4734_v63 = vmul.f32 0.25, %v6177_v13  ;;  %v4737_v53 = vmul.f32 0.25, %v6179_v45  ;;  %v6181_v61 = vld [vmem:[#allocation177_spill] sm:$0xff]  ;;  %v6184_v60 = vld [vmem:[#allocation179_spill] sm:$0xff] }
 0x189   : > { %6174 = vst [vmem:[#allocation83_spill] sm:$0xff] %v4728_v42  ;;  %6176 = vst [vmem:[#allocation84_spill] sm:$0xff] %v4731_v56  ;;  %v4740_v20 = vmul.f32 0.25, %v6181_v61  ;;  %v4744_v57 = vmul.f32 0.25, %v6184_v60  ;;  %v6186_v54 = vld [vmem:[#allocation181_spill] sm:$0xff]  ;;  %v6188_v15 = vld [vmem:[#allocation183_spill] sm:$0xff] }
 0x18a   : > { %6178 = vst [vmem:[#allocation85_spill] sm:$0xff] %v4734_v63  ;;  %6180 = vst [vmem:[#allocation89_spill] sm:$0xff] %v4737_v53  ;;  %v4747_v14 = vmul.f32 0.25, %v6186_v54  ;;  %v4750_v56 = vmul.f32 0.25, %v6188_v15  ;;  %v6190_v13 = vld [vmem:[#allocation185_spill] sm:$0xff]  ;;  %v6192_v45 = vld [vmem:[#allocation187_spill] sm:$0xff] }
 0x18b   : > { %6182 = vst [vmem:[#allocation51_spill] sm:$0xff] %v4740_v20  ;;  %6185 = vst [vmem:[#allocation54_spill] sm:$0xff] %v4744_v57  ;;  %v4753_v63 = vmul.f32 0.25, %v6190_v13  ;;  %v4756_v53 = vmul.f32 0.25, %v6192_v45  ;;  %v6194_v61 = vld [vmem:[#allocation141_spill] sm:$0xff]  ;;  %v6196_v60 = vld [vmem:[#allocation142_spill] sm:$0xff] }
 0x18c   : > { %6187 = vst [vmem:[#allocation55_spill] sm:$0xff] %v4747_v14  ;;  %6189 = vst [vmem:[#allocation59_spill] sm:$0xff] %v4750_v56  ;;  %v1424_v20 = vmul.f32 0.75, %v6194_v61  ;;  %v6195_v42 = vld [vmem:[#allocation81_spill] sm:$0xff]  ;;  %v1425_v57 = vmul.f32 0.75, %v6196_v60  ;;  %v1426_v5 = vmul.f32 0.75, %v6088_v48 }
 0x18d   : > { %6191 = vst [vmem:[#allocation93_spill] sm:$0xff] %v4753_v63  ;;  %6193 = vst [vmem:[#allocation94_spill] sm:$0xff] %v4756_v53  ;;  %v1453_v40 = vadd.f32 %v1421_v12, %v6195_v42  ;;  %v6197_v54 = vld [vmem:[#allocation144_spill] sm:$0xff]  ;;  %v6198_v50 = vld [vmem:[#allocation145_spill] sm:$0xff]  ;;  %v1430_v13 = vmul.f32 0.75, %v6092_v43  ;;  %v1431_v45 = vmul.f32 0.75, %v6093_v58  ;;  %v1455_v53 = vadd.f32 %v1423_v0, %v1391_v29 }
 0x18e   : > { %v1427_v14 = vmul.f32 0.75, %v6197_v54  ;;  %v1428_v15 = vmul.f32 0.75, %v6198_v50  ;;  %v6199_v56 = vld [vmem:[#allocation56_spill] sm:$0xff]  ;;  %v4772_v42 = vmul.f32 0.75, %v5894_v34  ;;  %v4775_v48 = vmul.f32 0.75, %v6095_v52  ;;  %v6203_v18 = vld [vmem:[#allocation61_spill] sm:$0xff] }
 0x18f   : > { %v1429_v3 = vmul.f32 0.75, %v6199_v56  ;;  %v6200_v61 = vld [vmem:[#allocation60_spill] sm:$0xff]  ;;  %v1456_v43 = vadd.f32 %v1424_v20, %v1392_v28  ;;  %v6204_v58 = vsub.f32 0.0, %v6203_v18  ;;  %v4791_v34 = vmul.f32 0.75, %v5899_v1  ;;  %v6212_v1 = vld [vmem:[#allocation67_spill] sm:$0xff] }
 0x190   : > { %v4769_v63 = vmul.f32 0.75, %v6200_v61  ;;  %v6201_v12 = vld [vmem:[#allocation24_spill] sm:$0xff]  ;;  %v6207_v61 = vld [vmem:[#allocation63_spill] sm:$0xff]  ;;  %v4794_v52 = vmul.f32 0.75, %v6098_v30  ;;  %v4800_v28 = vmul.f32 0.75, %v5905_v62  ;;  %v1457_v20 = vadd.f32 %v1425_v57, %v1393_v16 }
 0x191   : > { %v4778_v25 = vmul.f32 0.75, %v6201_v12  ;;  %v6202_v50 = vld [vmem:[#allocation28_spill] sm:$0xff]  ;;  %v1485_v0 = vmul.f32 %v1453_v40, %v6204_v58  ;;  %v4788_v55 = vmul.f32 0.75, %v6207_v61  ;;  %v4797_v12 = vmul.f32 0.75, %v5902_v8  ;;  %v6209_v40 = vld [vmem:[#allocation65_spill] sm:$0xff] }
 0x192   : > { %v4781_v56 = vmul.f32 0.75, %v6202_v50  ;;  %v6205_v29 = vld [vmem:[#allocation64_spill] sm:$0xff]  ;;  %6208 = vst [vmem:[#allocation95_spill] sm:$0xff] %v4800_v28  ;;  %v6210_v50 = vsub.f32 0.0, %v6209_v40  ;;  %v4807_v58 = vmul.f32 0.75, %v6099_v37  ;;  %v6216_v8 = vld [vmem:[#allocation69_spill] sm:$0xff]  ;;  %v1458_v62 = vadd.f32 %v1426_v5, %v1394_v6 }
 0x193   : > { %v6206_v60 = vsub.f32 0.0, %v6205_v29  ;;  %v4810_v29 = vmul.f32 0.75, %v6212_v1  ;;  %v6214_v30 = vld [vmem:[#allocation68_spill] sm:$0xff]  ;;  %v4816_v61 = vmul.f32 0.75, %v6216_v8  ;;  %v6217_v28 = vld [vmem:[#allocation66_spill] sm:$0xff] }
 0x194   : > { %v1487_v18 = vmul.f32 %v1455_v53, %v6210_v50  ;;  %6211 = vst [vmem:[#allocation96_spill] sm:$0xff] %v4807_v58  ;;  %v6218_v16 = vsub.f32 0.0, %v6217_v28  ;;  %v1517_v53 = vmul.f32 %v1485_v0, %v4612_v49  ;;  %v6219_v50 = vld [vmem:[#allocation70_spill] sm:$0xff]  ;;  %v6221_v58 = vld [vmem:[#allocation71_spill] sm:$0xff]  ;;  %v6225_v5 = vld [vmem:[#allocation72_spill] sm:$0xff] }
 0x195   : > { %v1486_v54 = vmul.f32 %v1454_v35, %v6206_v60  ;;  %v4804_v35 = vstv %s1850_s21  ;;  %6213 = vst [vmem:[#allocation97_spill] sm:$0xff] %v4810_v29  ;;  %v4813_v60 = vmul.f32 0.75, %v6214_v30  ;;  %v4823_v37 = vmul.f32 0.75, %v6219_v50  ;;  %v6223_v29 = vld [vmem:[#allocation11_spill] sm:$0xff]  ;;  %v6227_v49 = vld [vmem:[#allocation189_spill] sm:$0xff] }
 0x196   : > { %v1488_v57 = vmul.f32 %v1456_v43, %v6218_v16  ;;  %v4826_v1 = vmul.f32 0.75, %v6221_v58  ;;  %v1582_v30 = vadd.s32 %v4804_v35, %v6223_v29  ;;  %v4833_v6 = vmul.f32 0.75, %v6225_v5  ;;  %v6229_v28 = vld [vmem:[#allocation35_spill] sm:$0xff]  ;;  %v6230_v58 = vld [vmem:[#allocation73_spill] sm:$0xff]  ;;  %v6232_v5 = vld [vmem:[#allocation146_spill] sm:$0xff] }
 0x197   : > { %6215 = vst [vmem:[#allocation98_spill] sm:$0xff] %v4813_v60  ;;  %v1518_v40 = vmul.f32 %v1486_v54, %v4614_v19  ;;  %6220 = vst [vmem:[#allocation99_spill] sm:$0xff] %v4823_v37  ;;  %v6224_v60 = vld [vmem:[#allocation12_spill] sm:$0xff]  ;;  %v1459_v43 = vadd.f32 %v1427_v14, %v4678_v46  ;;  %v6228_v0 = vsub.f32 0.0, %v6227_v49  ;;  %v1519_v54 = vmul.f32 %v1487_v18, %v4616_v39  ;;  %v6234_v14 = vld [vmem:[#allocation90_spill] sm:$0xff] }
 0x198   : > { %6222 = vst [vmem:[#allocation100_spill] sm:$0xff] %v4826_v1  ;;  %v1583_v8 = vadd.s32 %v4804_v35, %v6224_v60  ;;  %6226 = vst [vmem:[#allocation101_spill] sm:$0xff] %v4833_v6  ;;  %v4840_v16 = vmul.f32 0.75, %v6229_v28  ;;  %v4843_v50 = vmul.f32 0.75, %v6230_v58  ;;  %v1460_v29 = vadd.f32 %v1428_v15, %v4681_v4  ;;  %v6231_v1 = vld [vmem:[#allocation13_spill] sm:$0xff]  ;;  %v6235_v49 = vld [vmem:[#allocation91_spill] sm:$0xff] }
 0x199   : > { %v1489_v19 = vmul.f32 %v1457_v20, %v6228_v0  ;;  %v1584_v60 = vadd.s32 %v4804_v35, %v6231_v1  ;;  %v6233_v6 = vsub.f32 0.0, %v6232_v5  ;;  %v1520_v46 = vmul.f32 %v1488_v57, %v4618_v59  ;;  %v6236_v18 = vld [vmem:[#allocation74_spill] sm:$0xff]  ;;  %v6238_v15 = vld [vmem:[#allocation148_spill] sm:$0xff] }
 0x19a   : > { %v1549_v20 = vmul.f32 %v6234_v14, %v1517_v53  ;;  %v1550_v39 = vmul.f32 %v6235_v49, %v1518_v40  ;;  %v4854_v0 = vmul.f32 0.75, %v6236_v18  ;;  %v6237_v28 = vld [vmem:[#allocation14_spill] sm:$0xff]  ;;  %vm1614_vm3 = vcmp.lt.s32.totalorder %v1582_v30, 16  ;;  %v6240_v59 = vld [vmem:[#allocation92_spill] sm:$0xff]  ;;  %v6243_v49 = vld [vmem:[#allocation15_spill] sm:$0xff] }
 0x19b   : > { %v1490_v37 = vmul.f32 %v1458_v62, %v6233_v6  ;;  %v1585_v58 = vadd.s32 %v4804_v35, %v6237_v28  ;;  %vm1615_vm14 = vcmp.lt.s32.totalorder %v1583_v8, 16  ;;  %v1461_v4 = vadd.f32 %v1429_v3, %v4684_v27  ;;  %v6241_v40 = vld [vmem:[#allocation190_spill] sm:$0xff]  ;;  %v6244_v8 = vld [vmem:[#allocation52_spill] sm:$0xff] }
 0x19c   : > { %v6239_v1 = vsub.f32 0.0, %v6238_v15  ;;  %v1521_v62 = vmul.f32 %v1489_v19, %v4620_v51  ;;  %v1551_v57 = vmul.f32 %v6240_v59, %v1519_v54  ;;  %v1462_v53 = vadd.f32 %v1430_v13, %v4687_v26  ;;  %v6246_v19 = vld [vmem:[#allocation16_spill] sm:$0xff]  ;;  %v6247_v13 = vld [vmem:[#allocation151_spill] sm:$0xff] }
 0x19d   : > { %v6242_v6 = vsub.f32 0.0, %v6241_v40  ;;  %v1586_v18 = vadd.s32 %v4804_v35, %v6243_v49  ;;  %vm1616_vm4 = vcmp.lt.s32.totalorder %v1584_v60, 16  ;;  %v1522_v30 = vmul.f32 %v1490_v37, %v4622_v24 }
 0x19e   : > { %v1491_v5 = vmul.f32 %v1459_v43, %v6239_v1  ;;  %v1552_v3 = vmul.f32 %v6244_v8, %v1520_v46  ;;  %v1646_v27 = vsel %vm1614_vm3, %v1549_v20, 0.0  ;;  %v1647_v28 = vsel %vm1615_vm14, %v1550_v39, 0.0  ;;  %v6245_v43 = vld [vmem:[#allocation39_spill] sm:$0xff]  ;;  %v6249_v1 = vld [vmem:[#allocation53_spill] sm:$0xff] }
 0x19f   : > { %v1492_v14 = vmul.f32 %v1460_v29, %v6242_v6  ;;  %v4871_v15 = vmul.f32 0.75, %v6245_v43  ;;  %v1463_v51 = vadd.f32 %v1431_v45, %v4690_v33  ;;  %v1587_v26 = vadd.s32 %v4804_v35, %v6246_v19  ;;  %v6250_v20 = vld [vmem:[#allocation17_spill] sm:$0xff]  ;;  %v6253_v6 = vld [vmem:[#allocation107_spill] sm:$0xff] }
 0x1a0   : > { %vm1617_vm5 = vcmp.lt.s32.totalorder %v1585_v58, 16  ;;  %v6248_v54 = vsub.f32 0.0, %v6247_v13  ;;  %v1523_v60 = vmul.f32 %v1491_v5, %v4624_v47  ;;  %v1553_v24 = vmul.f32 %v6249_v1, %v1521_v62  ;;  %v6251_v45 = vld [vmem:[#allocation153_spill] sm:$0xff]  ;;  %v6254_v5 = vld [vmem:[#allocation18_spill] sm:$0xff] }
 0x1a1   : > { %v1648_v37 = vsel %vm1616_vm4, %v1551_v57, 0.0  ;;  %v1464_v46 = vadd.f32 %v4769_v63, %v4693_v38  ;;  %v1588_v39 = vadd.s32 %v4804_v35, %v6250_v20  ;;  %vm1618_vm6 = vcmp.lt.s32.totalorder %v1586_v18, 16  ;;  %v6255_v38 = vld [vmem:[#allocation155_spill] sm:$0xff] }
 0x1a2   : > { %v1493_v29 = vmul.f32 %v1461_v4, %v6248_v54  ;;  %v1678_v33 = vadd.f32 %v1647_v28, %v1646_v27  ;;  %v6252_v59 = vsub.f32 0.0, %v6251_v45  ;;  %v1524_v58 = vmul.f32 %v1492_v14, %v4626_v2  ;;  %v6257_v27 = vld [vmem:[#allocation108_spill] sm:$0xff]  ;;  %v6258_v14 = vld [vmem:[#allocation19_spill] sm:$0xff] }
 0x1a3   : > { %v1554_v4 = vmul.f32 %v6253_v6, %v1522_v30  ;;  %v1649_v49 = vsel %vm1617_vm5, %v1552_v3, 0.0  ;;  %v1465_v47 = vadd.f32 %v4772_v42, %v4696_v36  ;;  %v1589_v62 = vadd.s32 %v4804_v35, %v6254_v5  ;;  %v6259_v42 = vld [vmem:[#allocation191_spill] sm:$0xff]  ;;  %v6262_v54 = vld [vmem:[#allocation20_spill] sm:$0xff] }
 0x1a4   : > { %v1494_v40 = vmul.f32 %v1462_v53, %v6252_v59  ;;  %vm1619_vm7 = vcmp.lt.s32.totalorder %v1587_v26, 16  ;;  %v1679_v63 = vadd.f32 %v1678_v33, %v1648_v37  ;;  %v6256_v57 = vsub.f32 0.0, %v6255_v38  ;;  %v6261_v26 = vld [vmem:[#allocation109_spill] sm:$0xff]  ;;  %v6265_v37 = vld [vmem:[#allocation110_spill] sm:$0xff]  ;;  %v6273_v38 = vld [vmem:[#allocation112_spill] sm:$0xff] }
 0x1a5   : > { %v1525_v8 = vmul.f32 %v1493_v29, %v4628_v44  ;;  %v1555_v53 = vmul.f32 %v6257_v27, %v1523_v60  ;;  %v1650_v28 = vsel %vm1618_vm6, %v1553_v24, 0.0  ;;  %v1466_v2 = vadd.f32 %v4775_v48, %v4699_v22  ;;  %v6263_v48 = vld [vmem:[#allocation192_spill] sm:$0xff] }
 0x1a6   : > { %v1495_v18 = vmul.f32 %v1463_v51, %v6256_v57  ;;  %v1590_v30 = vadd.s32 %v4804_v35, %v6258_v14  ;;  %vm1620_vm10 = vcmp.lt.s32.totalorder %v1588_v39, 16  ;;  %v1680_v36 = vadd.f32 %v1679_v63, %v1649_v49  ;;  %v6266_v39 = vld [vmem:[#allocation21_spill] sm:$0xff]  ;;  %v6270_v49 = vld [vmem:[#allocation22_spill] sm:$0xff] }
 0x1a7   : > { %v6260_v3 = vsub.f32 0.0, %v6259_v42  ;;  %v1526_v19 = vmul.f32 %v1494_v40, %v4630_v11  ;;  %v1556_v51 = vmul.f32 %v6261_v26, %v1524_v58  ;;  %v1651_v13 = vsel %vm1619_vm7, %v1554_v4, 0.0  ;;  %v6269_v58 = vld [vmem:[#allocation111_spill] sm:$0xff]  ;;  %v6277_v14 = vld [vmem:[#allocation113_spill] sm:$0xff] }
 0x1a8   : > { %v1467_v44 = vadd.f32 %v4778_v25, %v4702_v21  ;;  %v1591_v29 = vadd.s32 %v4804_v35, %v6262_v54  ;;  %vm1621_vm11 = vcmp.lt.s32.totalorder %v1589_v62, 16  ;;  %v1681_v22 = vadd.f32 %v1680_v36, %v1650_v28  ;;  %v6267_v25 = vld [vmem:[#allocation193_spill] sm:$0xff] }
 0x1a9   : > { %v1496_v43 = vmul.f32 %v1464_v46, %v6260_v3  ;;  %v6264_v60 = vsub.f32 0.0, %v6263_v48  ;;  %v1527_v24 = vmul.f32 %v1495_v18, %v4632_v17  ;;  %v1557_v46 = vmul.f32 %v6265_v37, %v1525_v8  ;;  %v6274_v8 = vld [vmem:[#allocation23_spill] sm:$0xff]  ;;  %v6278_v42 = vld [vmem:[#allocation25_spill] sm:$0xff] }
 0x1aa   : > { %v1652_v20 = vsel %vm1620_vm10, %v1555_v53, 0.0  ;;  %v1468_v11 = vadd.f32 %v4781_v56, %v4705_v9  ;;  %v1592_v33 = vadd.s32 %v4804_v35, %v6266_v39  ;;  %vm1622_vm12 = vcmp.lt.s32.totalorder %v1590_v30, 16  ;;  %v6271_v56 = vld [vmem:[#allocation194_spill] sm:$0xff]  ;;  %v6281_v26 = vld [vmem:[#allocation125_spill] sm:$0xff]  ;;  %v6289_v39 = vld [vmem:[#allocation79_spill] sm:$0xff] }
 0x1ab   : > { %v1497_v1 = vmul.f32 %v1465_v47, %v6264_v60  ;;  %v1682_v21 = vadd.f32 %v1681_v22, %v1651_v13  ;;  %v6268_v45 = vsub.f32 0.0, %v6267_v25  ;;  %v1528_v40 = vmul.f32 %v1496_v43, %v4634_v32  ;;  %v6282_v13 = vld [vmem:[#allocation114_spill] sm:$0xff]  ;;  %v6291_v25 = vld [vmem:[#allocation27_spill] sm:$0xff] }
 0x1ac   : > { %v1558_v6 = vmul.f32 %v6269_v58, %v1526_v19  ;;  %v1653_v4 = vsel %vm1621_vm11, %v1556_v51, 0.0  ;;  %v1469_v17 = vadd.f32 %v4788_v55, %v4708_v10  ;;  %v1593_v47 = vadd.s32 %v4804_v35, %v6270_v49  ;;  %v6275_v10 = vld [vmem:[#allocation195_spill] sm:$0xff]  ;;  %v6284_v22 = vld [vmem:[#allocation26_spill] sm:$0xff] }
 0x1ad   : > { %v1498_v59 = vmul.f32 %v1466_v2, %v6268_v45  ;;  %vm1623_vm13 = vcmp.lt.s32.totalorder %v1591_v29, 16  ;;  %v1683_v9 = vadd.f32 %v1682_v21, %v1652_v20  ;;  %v6272_v5 = vsub.f32 0.0, %v6271_v56  ;;  %v6297_v56 = vld [vmem:[#allocation96_spill] sm:$0xff] }
 0x1ae   : > { %v1529_v63 = vmul.f32 %v1497_v1, %v4636_v7  ;;  %v1559_v57 = vmul.f32 %v6273_v38, %v1527_v24  ;;  %v1654_v18 = vsel %vm1622_vm12, %v1557_v46, 0.0  ;;  %v1470_v32 = vadd.f32 %v4791_v34, %v4711_v23  ;;  %v6279_v34 = vld [vmem:[#allocation196_spill] sm:$0xff]  ;;  %v6287_v24 = vld [vmem:[#allocation105_spill] sm:$0xff]  ;;  %v6288_v46 = vld [vmem:[#allocation115_spill] sm:$0xff] }
 0x1af   : > { %v1499_v62 = vmul.f32 %v1467_v44, %v6272_v5  ;;  %v1594_v27 = vadd.s32 %v4804_v35, %v6274_v8  ;;  %vm1624_vm15 = vcmp.lt.s32.totalorder %v1592_v33, 16  ;;  %v1684_v55 = vadd.f32 %v1683_v9, %v1653_v4  ;;  %v6290_v33 = vld [vmem:[#allocation95_spill] sm:$0xff]  ;;  %v6296_v9 = vld [vmem:[#allocation80_spill] sm:$0xff]  ;;  %v6301_v8 = vld [vmem:[#allocation46_spill] sm:$0xff] }
 0x1b0   : > { %v6276_v53 = vsub.f32 0.0, %v6275_v10  ;;  %v1530_v2 = vmul.f32 %v1498_v59, %v4638_v31  ;;  %v1560_v30 = vmul.f32 %v6277_v14, %v1528_v40  ;;  %v1655_v36 = vsel %vm1623_vm13, %v1558_v6, 0.0  ;;  %v6283_v31 = vld [vmem:[#allocation78_spill] sm:$0xff]  ;;  %v6294_v6 = vld [vmem:[#allocation128_spill] sm:$0xff] }
 0x1b1   : > { %v1471_v7 = vadd.f32 %v4794_v52, %v4714_v41  ;;  %v1595_v3 = vadd.s32 %v4804_v35, %v6278_v42  ;;  %vm1625_vm8 = vcmp.lt.s32.totalorder %v1593_v47, 16  ;;  %v1685_v23 = vadd.f32 %v1684_v55, %v1654_v18  ;;  %v6285_v52 = vld [vmem:[#allocation197_spill] sm:$0xff]  ;;  %v6292_v59 = vld [vmem:[#allocation198_spill] sm:$0xff] }
 0x1b2   : > { %v1500_v28 = vmul.f32 %v1468_v11, %v6276_v53  ;;  %v6280_v43 = vsub.f32 0.0, %v6279_v34  ;;  %v1531_v51 = vmul.f32 %v1499_v62, %v6281_v26  ;;  %v1561_v44 = vmul.f32 %v6282_v13, %v1529_v63  ;;  %v6298_v62 = vld [vmem:[#allocation31_spill] sm:$0xff]  ;;  %v6302_v55 = vld [vmem:[#allocation117_spill] sm:$0xff]  ;;  %v6306_v42 = vld [vmem:[#allocation166_spill] sm:$0xff] }
 0x1b3   : > { %v1656_v54 = vsel %vm1624_vm15, %v1559_v57, 0.0  ;;  %v1472_v29 = vadd.f32 %v4797_v12, %v6283_v31  ;;  %v1596_v48 = vadd.s32 %v4804_v35, %v6284_v22  ;;  %vm1626_vm9 = vcmp.lt.s32.totalorder %v1594_v27, 16  ;;  %v6299_v57 = vld [vmem:[#allocation199_spill] sm:$0xff]  ;;  %v6310_v13 = vld [vmem:[#allocation84_spill] sm:$0xff]  ;;  %v6312_v31 = vld [vmem:[#allocation33_spill] sm:$0xff] }
 0x1b4   : > { %v1501_v19 = vmul.f32 %v1469_v17, %v6280_v43  ;;  %v1686_v41 = vadd.f32 %v1685_v23, %v1655_v36  ;;  %v6286_v60 = vsub.f32 0.0, %v6285_v52  ;;  %v1532_v37 = vmul.f32 %v1500_v28, %v6287_v24  ;;  %v6295_v17 = vld [vmem:[#allocation116_spill] sm:$0xff]  ;;  %v6303_v28 = vld [vmem:[#allocation83_spill] sm:$0xff] }
 0x1b5   : > { %v1562_v20 = vmul.f32 %v6288_v46, %v1530_v2  ;;  %v1657_v11 = vsel %vm1625_vm8, %v1560_v30, 0.0  ;;  %v1473_v21 = vadd.f32 %v6290_v33, %v6289_v39  ;;  %v1597_v45 = vadd.s32 %v4804_v35, %v6291_v25  ;;  %v6304_v2 = vld [vmem:[#allocation97_spill] sm:$0xff]  ;;  %v6305_v30 = vld [vmem:[#allocation32_spill] sm:$0xff]  ;;  %v6308_v34 = vld [vmem:[#allocation143_spill] sm:$0xff] }
 0x1b6   : > { %v1502_v1 = vmul.f32 %v1470_v32, %v6286_v60  ;;  %vm1627_vm0 = vcmp.lt.s32.totalorder %v1595_v3, 16  ;;  %v1687_v12 = vadd.f32 %v1686_v41, %v1656_v54  ;;  %v6293_v40 = vsub.f32 0.0, %v6292_v59  ;;  %v6315_v60 = vld [vmem:[#allocation57_spill] sm:$0xff]  ;;  %v6316_v24 = vld [vmem:[#allocation119_spill] sm:$0xff]  ;;  %v6318_v39 = vld [vmem:[#allocation34_spill] sm:$0xff] }
 0x1b7   : > { %v1533_v4 = vmul.f32 %v1501_v19, %v6294_v6  ;;  %v1563_v49 = vmul.f32 %v6295_v17, %v1531_v51  ;;  %v1658_v47 = vsel %vm1626_vm9, %v1561_v44, 0.0  ;;  %v1474_v5 = vadd.f32 %v6297_v56, %v6296_v9  ;;  %v6309_v19 = vld [vmem:[#allocation118_spill] sm:$0xff]  ;;  %v6323_v17 = vld [vmem:[#allocation89_spill] sm:$0xff]  ;;  %v6325_v9 = vld [vmem:[#allocation36_spill] sm:$0xff] }
 0x1b8   : > { %v1503_v58 = vmul.f32 %v1471_v7, %v6293_v40  ;;  %v1598_v63 = vadd.s32 %v4804_v35, %v6298_v62  ;;  %vm1628_vm1 = vcmp.lt.s32.totalorder %v1596_v48, 16  ;;  %v1688_v38 = vadd.f32 %v1687_v12, %v1657_v11  ;;  %v6311_v44 = vld [vmem:[#allocation98_spill] sm:$0xff]  ;;  %v6313_v48 = vld [vmem:[#allocation168_spill] sm:$0xff] }
 0x1b9   : > { %v6300_v18 = vsub.f32 0.0, %v6299_v57  ;;  %v1534_v27 = vmul.f32 %v1502_v1, %v6301_v8  ;;  %v1564_v10 = vmul.f32 %v6302_v55, %v1532_v37  ;;  %v1659_v53 = vsel %vm1627_vm0, %v1562_v20, 0.0  ;;  %v6317_v20 = vld [vmem:[#allocation85_spill] sm:$0xff]  ;;  %v6319_v25 = vld [vmem:[#allocation170_spill] sm:$0xff]  ;;  %v6331_v55 = vld [vmem:[#allocation100_spill] sm:$0xff] }
 0x1ba   : > { %v1475_v14 = vadd.f32 %v6304_v2, %v6303_v28  ;;  %v1599_v36 = vadd.s32 %v4804_v35, %v6305_v30  ;;  %vm1629_vm2 = vcmp.lt.s32.totalorder %v1597_v45, 16  ;;  %v1689_v7 = vadd.f32 %v1688_v38, %v1658_v47  ;;  %v6321_v59 = vld [vmem:[#allocation58_spill] sm:$0xff] }
 0x1bb   : > { %v1504_v32 = vmul.f32 %v1472_v29, %v6300_v18  ;;  %v6307_v3 = vsub.f32 0.0, %v6306_v42  ;;  %v1535_v43 = vmul.f32 %v1503_v58, %v6308_v34  ;;  %v1565_v26 = vmul.f32 %v6309_v19, %v1533_v4  ;;  %v6322_v58 = vld [vmem:[#allocation120_spill] sm:$0xff]  ;;  %v6328_v38 = vld [vmem:[#allocation62_spill] sm:$0xff]  ;;  %v6329_v18 = vld [vmem:[#allocation121_spill] sm:$0xff] }
 0x1bc   : > { %v1660_v51 = vsel %vm1628_vm1, %v1563_v49, 0.0  ;;  %v1476_v54 = vadd.f32 %v6311_v44, %v6310_v13  ;;  %v1600_v29 = vadd.s32 %v4804_v35, %v6312_v31  ;;  %vm1630_vm3 = vcmp.lt.s32.totalorder %v1598_v63, 16  ;;  %v6324_v49 = vld [vmem:[#allocation99_spill] sm:$0xff]  ;;  %v6338_v19 = vld [vmem:[#allocation101_spill] sm:$0xff] }
 0x1bd   : > { %v1505_v23 = vmul.f32 %v1473_v21, %v6307_v3  ;;  %v1690_v22 = vadd.f32 %v1689_v7, %v1659_v53  ;;  %v6314_v41 = vsub.f32 0.0, %v6313_v48  ;;  %v1536_v1 = vmul.f32 %v1504_v32, %v6315_v60  ;;  %v6332_v53 = vld [vmem:[#allocation37_spill] sm:$0xff]  ;;  %v6336_v3 = vld [vmem:[#allocation122_spill] sm:$0xff] }
 0x1be   : > { %v1566_v37 = vmul.f32 %v6316_v24, %v1534_v27  ;;  %v1661_v46 = vsel %vm1629_vm2, %v1564_v10, 0.0  ;;  %v1477_v11 = vadd.f32 %v4816_v61, %v6317_v20  ;;  %v1601_v33 = vadd.s32 %v4804_v35, %v6318_v39  ;;  %v6330_v27 = vld [vmem:[#allocation51_spill] sm:$0xff]  ;;  %v6335_v7 = vld [vmem:[#allocation29_spill] sm:$0xff]  ;;  %v6347_v39 = vld [vmem:[#allocation178_spill] sm:$0xff] }
 0x1bf   : > { %v1506_v52 = vmul.f32 %v1474_v5, %v6314_v41  ;;  %vm1631_vm14 = vcmp.lt.s32.totalorder %v1599_v36, 16  ;;  %v1691_v21 = vadd.f32 %v1690_v22, %v1660_v51  ;;  %v6320_v45 = vsub.f32 0.0, %v6319_v25  ;;  %v6326_v5 = vld [vmem:[#allocation172_spill] sm:$0xff]  ;;  %v6339_v51 = vld [vmem:[#allocation38_spill] sm:$0xff]  ;;  %v6343_v41 = vld [vmem:[#allocation123_spill] sm:$0xff] }
 0x1c0   : > { %v1537_v40 = vmul.f32 %v1505_v23, %v6321_v59  ;;  %v1567_v6 = vmul.f32 %v6322_v58, %v1535_v43  ;;  %v1662_v4 = vsel %vm1630_vm3, %v1565_v26, 0.0  ;;  %v1478_v47 = vadd.f32 %v6324_v49, %v6323_v17  ;;  %v6337_v43 = vld [vmem:[#allocation54_spill] sm:$0xff]  ;;  %v6351_v58 = vld [vmem:[#allocation59_spill] sm:$0xff] }
 0x1c1   : > { %v1507_v12 = vmul.f32 %v1475_v14, %v6320_v45  ;;  %v1602_v56 = vadd.s32 %v4804_v35, %v6325_v9  ;;  %vm1632_vm4 = vcmp.lt.s32.totalorder %v1600_v29, 16  ;;  %v1692_v61 = vadd.f32 %v1691_v21, %v1661_v46  ;;  %v6333_v14 = vld [vmem:[#allocation174_spill] sm:$0xff]  ;;  %v6353_v49 = vld [vmem:[#allocation87_spill] sm:$0xff] }
 0x1c2   : > { %v6327_v62 = vsub.f32 0.0, %v6326_v5  ;;  %v1538_v57 = vmul.f32 %v1506_v52, %v6328_v38  ;;  %v1568_v32 = vmul.f32 %v6329_v18, %v1536_v1  ;;  %v1663_v8 = vsel %vm1631_vm14, %v1566_v37, 0.0  ;;  %v6342_v22 = vld [vmem:[#allocation30_spill] sm:$0xff]  ;;  %v6344_v1 = vld [vmem:[#allocation55_spill] sm:$0xff]  ;;  %v6345_v37 = vld [vmem:[#allocation40_spill] sm:$0xff] }
 0x1c3   : > { %v1479_v10 = vadd.f32 %v6331_v55, %v6330_v27  ;;  %v1603_v28 = vadd.s32 %v4804_v35, %v6332_v53  ;;  %vm1633_vm5 = vcmp.lt.s32.totalorder %v1601_v33, 16  ;;  %v1693_v2 = vadd.f32 %v1692_v61, %v1662_v4  ;;  %v6349_v25 = vld [vmem:[#allocation106_spill] sm:$0xff]  ;;  %v6352_v4 = vld [vmem:[#allocation41_spill] sm:$0xff]  ;;  %v6362_v53 = vld [vmem:[#allocation75_spill] sm:$0xff] }
 0x1c4   : > { %v1508_v63 = vmul.f32 %v1476_v54, %v6327_v62  ;;  %v6334_v30 = vsub.f32 0.0, %v6333_v14  ;;  %v1539_v42 = vmul.f32 %v1507_v12, %v6335_v7  ;;  %v1569_v23 = vmul.f32 %v6336_v3, %v1537_v40  ;;  %v6340_v54 = vld [vmem:[#allocation176_spill] sm:$0xff]  ;;  %v6356_v61 = vld [vmem:[#allocation50_spill] sm:$0xff] }
 0x1c5   : > { %v1664_v34 = vsel %vm1632_vm4, %v1567_v6, 0.0  ;;  %v1480_v26 = vadd.f32 %v6338_v19, %v6337_v43  ;;  %v1604_v13 = vadd.s32 %v4804_v35, %v6339_v51  ;;  %vm1634_vm6 = vcmp.lt.s32.totalorder %v1602_v56, 16  ;;  %v6350_v12 = vld [vmem:[#allocation124_spill] sm:$0xff]  ;;  %v6357_v62 = vld [vmem:[#allocation126_spill] sm:$0xff]  ;;  %v6369_v51 = vld [vmem:[#allocation129_spill] sm:$0xff] }
 0x1c6   : > { %v1509_v36 = vmul.f32 %v1477_v11, %v6334_v30  ;;  %v1694_v44 = vadd.f32 %v1693_v2, %v1663_v8  ;;  %v6341_v31 = vsub.f32 0.0, %v6340_v54  ;;  %v1540_v48 = vmul.f32 %v1508_v63, %v6342_v22  ;;  %v6346_v11 = vld [vmem:[#allocation86_spill] sm:$0xff]  ;;  %v6363_v2 = vld [vmem:[#allocation127_spill] sm:$0xff]  ;;  %v6368_v19 = vld [vmem:[#allocation76_spill] sm:$0xff] }
 0x1c7   : > { %v1570_v52 = vmul.f32 %v6343_v41, %v1538_v57  ;;  %v1665_v60 = vsel %vm1633_vm5, %v1568_v32, 0.0  ;;  %v1481_v24 = vadd.f32 %v4840_v16, %v6344_v1  ;;  %v1605_v46 = vadd.s32 %v4804_v35, %v6345_v37  ;;  %v6358_v57 = vld [vmem:[#allocation93_spill] sm:$0xff]  ;;  %v6359_v32 = vld [vmem:[#allocation42_spill] sm:$0xff]  ;;  %v6370_v54 = vld [vmem:[#allocation103_spill] sm:$0xff] }
 0x1c8   : > { %v1510_v29 = vmul.f32 %v1478_v47, %v6341_v31  ;;  %vm1635_vm7 = vcmp.lt.s32.totalorder %v1603_v28, 16  ;;  %v1695_v20 = vadd.f32 %v1694_v44, %v1664_v34  ;;  %vm522_vm10 = vcmp.ge.f32.partialorder %v6346_v11, 0.0  ;;  %v6354_v47 = vld [vmem:[#allocation180_spill] sm:$0xff]  ;;  %v6360_v27 = vld [vmem:[#allocation182_spill] sm:$0xff] }
 0x1c9   : > { %v6348_v33 = vsub.f32 0.0, %v6347_v39  ;;  %v1541_v45 = vmul.f32 %v1509_v36, %v6349_v25  ;;  %v1571_v59 = vmul.f32 %v6350_v12, %v1539_v42  ;;  %v1666_v40 = vsel %vm1634_vm6, %v1569_v23, 0.0  ;;  %v6364_v36 = vld [vmem:[#allocation94_spill] sm:$0xff]  ;;  %v6365_v42 = vld [vmem:[#allocation43_spill] sm:$0xff]  ;;  %v6366_v23 = vld [vmem:[#allocation184_spill] sm:$0xff] }
 0x1ca   : > { %v1482_v6 = vadd.f32 %v4843_v50, %v6351_v58  ;;  %v1606_v16 = vadd.s32 %v4804_v35, %v6352_v4  ;;  %vm1636_vm11 = vcmp.lt.s32.totalorder %v1604_v13, 16  ;;  %v1696_v17 = vadd.f32 %v1695_v20, %v1665_v60  ;;  %v6374_v60 = vld [vmem:[#allocation82_spill] sm:$0xff]  ;;  %v6376_v20 = vld [vmem:[#allocation104_spill] sm:$0xff] }
 0x1cb   : > { %v1511_v21 = vmul.f32 %v1479_v10, %v6348_v33  ;;  %vm523_vm12 = vcmp.ge.f32.partialorder %v6353_v49, 0.0  ;;  %v6355_v9 = vsub.f32 0.0, %v6354_v47  ;;  %v1542_v5 = vmul.f32 %v1510_v29, %v6356_v61  ;;  %v6371_v29 = vld [vmem:[#allocation44_spill] sm:$0xff]  ;;  %v6377_v33 = vld [vmem:[#allocation45_spill] sm:$0xff] }
 0x1cc   : > { %v1572_v63 = vmul.f32 %v6357_v62, %v1540_v48  ;;  %v1667_v38 = vsel %vm1635_vm7, %v1570_v52, 0.0  ;;  %v1483_v18 = vadd.f32 %v4854_v0, %v6358_v57  ;;  %v1607_v50 = vadd.s32 %v4804_v35, %v6359_v32  ;;  %v6372_v48 = vld [vmem:[#allocation186_spill] sm:$0xff]  ;;  %v6386_v32 = vld [vmem:[#allocation48_spill] sm:$0xff] }
 0x1cd   : > { %v1512_v56 = vmul.f32 %v1480_v26, %v6355_v9  ;;  %vm1637_vm13 = vcmp.lt.s32.totalorder %v1605_v46, 16  ;;  %v1697_v8 = vadd.f32 %v1696_v17, %v1666_v40  ;;  %v6361_v55 = vsub.f32 0.0, %v6360_v27  ;;  %v6380_v40 = vld [vmem:[#allocation77_spill] sm:$0xff]  ;;  %v6383_v9 = vld [vmem:[#allocation47_spill] sm:$0xff] }
 0x1ce   : > { %v1543_v28 = vmul.f32 %v1511_v21, %v6362_v53  ;;  %v1573_v14 = vmul.f32 %v6363_v2, %v1541_v45  ;;  %v1668_v30 = vsel %vm1636_vm11, %v1571_v59, 0.0  ;;  %v1484_v7 = vadd.f32 %v4871_v15, %v6364_v36  ;;  %v6378_v45 = vld [vmem:[#allocation188_spill] sm:$0xff]  ;;  %v6387_v53 = vld [vmem:[#allocation49_spill] sm:$0xff] }
 0x1cf   : > { %v1513_v10 = vmul.f32 %v1481_v24, %v6361_v55  ;;  %v1608_v3 = vadd.s32 %v4804_v35, %v6365_v42  ;;  %vm1638_vm15 = vcmp.lt.s32.totalorder %v1606_v16, 16  ;;  %v1698_v0 = vadd.f32 %v1697_v8, %v1667_v38  ;;  %v6375_v24 = vld [vmem:[#allocation130_spill] sm:$0xff] }
 0x1d0   : > { %v6367_v34 = vsub.f32 0.0, %v6366_v23  ;;  %v1544_v26 = vmul.f32 %v1512_v56, %v6368_v19  ;;  %v1574_v13 = vmul.f32 %v6369_v51, %v1542_v5  ;;  %v1669_v44 = vsel %vm1637_vm13, %v1572_v63, 0.0  ;;  %v6384_v5 = vld [vmem:[#allocation88_spill] sm:$0xff]  ;;  %v6385_v63 = vld [vmem:[#allocation133_spill] sm:$0xff] }
 0x1d1   : > { %v1387_v31 = vmul.f32 %v6370_v54, %v6370_v54  ;;  %v1609_v22 = vadd.s32 %v4804_v35, %v6371_v29  ;;  %vm1639_vm8 = vcmp.lt.s32.totalorder %v1607_v50, 16  ;;  %v1699_v15 = vadd.f32 %v1698_v0, %v1668_v30 }
 0x1d2   : > { %v1514_v43 = vmul.f32 %v1482_v6, %v6367_v34  ;;  %v6373_v41 = vsub.f32 0.0, %v6372_v48  ;;  %v1545_v1 = vmul.f32 %v1513_v10, %v6374_v60  ;;  %v1575_v37 = vmul.f32 %v6375_v24, %v1543_v28  ;;  %v6381_v6 = vld [vmem:[#allocation132_spill] sm:$0xff] }
 0x1d3   : > { %v1670_v46 = vsel %vm1638_vm15, %v1573_v14, 0.0  ;;  %v1388_v39 = vmul.f32 %v6376_v20, %v6376_v20  ;;  %v1610_v21 = vadd.s32 %v4804_v35, %v6377_v33  ;;  %vm1640_vm9 = vcmp.lt.s32.totalorder %v1608_v3, 16 }
 0x1d4   : > { %v1515_v52 = vmul.f32 %v1483_v18, %v6373_v41  ;;  %v1700_v25 = vadd.f32 %v1699_v15, %v1669_v44  ;;  %v6379_v12 = vsub.f32 0.0, %v6378_v45  ;;  %v1546_v58 = vmul.f32 %v1514_v43, %v6380_v40 }
 0x1d5   : > { %v1576_v4 = vmul.f32 %v6381_v6, %v1544_v26  ;;  %v1671_v16 = vsel %vm1639_vm8, %v1574_v13, 0.0  ;;  %v6382_v17 = vmov 0.0   ;;  %v1611_v56 = vadd.s32 %v4804_v35, %v6383_v9 }
 0x1d6   : > { %v1516_v59 = vmul.f32 %v1484_v7, %v6379_v12  ;;  %v1880_v47 = vsel %vm522_vm10, 1.0, %v6382_v17  ;;  %vm1641_vm0 = vcmp.lt.s32.totalorder %v1609_v22, 16  ;;  %v1701_v61 = vadd.f32 %v1700_v25, %v1670_v46 }
 0x1d7   : > { %vm524_vm1 = vcmp.ge.f32.partialorder %v6384_v5, 0.0  ;;  %v1547_v62 = vmul.f32 %v1515_v52, %v1387_v31  ;;  %v1577_v38 = vmul.f32 %v6385_v63, %v1545_v1  ;;  %v1672_v57 = vsel %vm1640_vm9, %v1575_v37, 0.0 }
 0x1d8   : > { %v1881_v18 = vsel %vm523_vm12, 1.0, %v6382_v17  ;;  %v1612_v11 = vadd.s32 %v4804_v35, %v6386_v32  ;;  %vm1642_vm2 = vcmp.lt.s32.totalorder %v1610_v21, 16  ;;  %v1702_v50 = vadd.f32 %v1701_v61, %v1671_v16 }
 0x1d9   : > { %v1548_v8 = vmul.f32 %v1516_v59, %v1388_v39  ;;  %v1578_v27 = vmul.f32 %v1880_v47, %v1546_v58  ;;  %v1673_v55 = vsel %vm1641_vm0, %v1576_v4, 0.0  ;;  %v1882_v10 = vsel %vm524_vm1, 1.0, %v6382_v17 }
 0x1da   : > { %v1613_v28 = vadd.s32 %v4804_v35, %v6387_v53  ;;  %vm1643_vm3 = vcmp.lt.s32.totalorder %v1611_v56, 16  ;;  %v1703_v2 = vadd.f32 %v1702_v50, %v1672_v57  ;;  %v1579_v14 = vmul.f32 %v1881_v18, %v1547_v62 }
 0x1db   : > { %v1674_v49 = vsel %vm1642_vm2, %v1577_v38, 0.0  ;;  %vm1644_vm14 = vcmp.lt.s32.totalorder %v1612_v11, 16  ;;  %v1580_v36 = vmul.f32 %v1882_v10, %v1548_v8  ;;  %v1675_v7 = vsel %vm1643_vm3, %v1578_v27, 0.0 }
 0x1dc   : > { %v1704_v30 = vadd.f32 %v1703_v2, %v1673_v55  ;;  %vm1645_vm4 = vcmp.lt.s32.totalorder %v1613_v28, 16  ;;  %v1676_v3 = vsel %vm1644_vm14, %v1579_v14, 0.0 }
 0x1dd   : > { %v1677_v23 = vsel %vm1645_vm4, %v1580_v36, 0.0 }
 0x1de   : > { %v1705_v42 = vadd.f32 %v1704_v30, %v1674_v49 }
 0x1e0   : > { %v1706_v0 = vadd.f32 %v1705_v42, %v1675_v7 }
 0x1e2   : > { %v1707_v34 = vadd.f32 %v1706_v0, %v1676_v3 }
 0x1e4   : > { %v1708_v35 = vadd.f32 %v1707_v34, %v1677_v23 }
 0x1e6   : > { %1712 = vst [vmem:[%s245_s8] sm:$0xff] %v1708_v35 }
 0x1e7   : > { %2332 = shalt.err (!%p2329_p8)
}
 0x1e8   : > { %s2333_s30 = scalar_lea.hbm %s5086_s17, 128  ;;  %s2337_s4 = scalar_lea.hbm %s5141_s2, 256 }
 0x1e9   : > { %p2334_p9 = scmp.ne.s32.totalorder %s5086_s17, %s2333_s30  ;;  %p2338_p0 = scmp.lt.u32.totalorder %s5086_s17, %s5141_s2 }
 0x1ea   : > { %p2339_p1 = scmp.lt.u32.totalorder %s2337_s4, %s2333_s30  ;;  %p2341_p2 = scmp.lt.u32.totalorder %s2333_s30, %s5086_s17 }
 0x1eb   : > { %p2335_p10 = pnand %p2334_p9, %p2519_p12 }
 0x1ec   : > { %p2340_p6 = por %p2339_p1, %p2338_p0 }
 0x1ed   : > { %p2336_p11 = pneg %p2335_p10 }
 0x1ee   : > { %p2342_p3 = por %p2341_p2, %p2340_p6 }
 0x1f0   : > { %p2343_p5 = pnand %p2342_p3, %p2336_p11 }
 0x1f2   : > { %2346 = shalt.err (!%p2343_p5)
}
 0x1f3   : > { %1891 = dma.vmem_to_hbm [thread:$0]  (%p2519_p12), %s5088_s20, 128, %s5086_s17, %s1714_s18  }
 0x1f4 PF: > { %s1739_s6 = sand.u32 1, %s2402_s9   ;;  %p6388_p4 = scmp.ge.s32.totalorder %s2430_s16, 2 }
 0x1f5   : > { %s1740_s7 = scalar_lea.sflag [#allocation4], %s1739_s6 }
 0x1f6   : > { %p1894_p7 = pnand %p6388_p4, %p2523_p13 }
 0x1f8   : > { %2392 = dma.done.wait (!%p1894_p7), %s1740_s7, 128  }
 0x1f9   : > { %2394 = vsyncadd (!%p1894_p7), %s1740_s7, 4294967168  ;;  %s21_s16 = sadd.s32 1, %s2430_s16   ;;  %s6389_s9 = smov %s2406_s10 }
 0x1fa   : > { %p18_p8 = scmp.ge.s32.totalorder %s21_s16, 4   ;;  %s6390_s10 = smov %s2410_s11 }
 0x1fb   : > { %s6391_s11 = smov %s2513_s24  ;;  %s6392_s12 = smov %s2418_s13 }
 0x1fc   : > { %s5129_s13 = smov 0   ;;  %s6393_s14 = smov %s2426_s15 }
 0x1fd   : > { %s6394_s15 = smov %s6396_s19  ;;  %20 = sbr.rel (!%p18_p8) target bundleno = 9 (0x9), region = 90 }
 0x204   :  { %1745 = vsyncpa [#allocation3], 1 }
 0x205   :  { %1747 = vsyncpa [#allocation3 + $0x1], 1 }
 0x206   :  { %1748 = vsyncpa [#allocation6], 1 }
 0x207   :  { %1750 = vsyncpa [#allocation6 + $0x1], 1 }
 0x208   :  { %1751 = vsyncpa [#allocation4], 1 }
 0x209   :  { %1753 = vsyncpa [#allocation4 + $0x1], 1 }

</bundles_post_ra>
